<compile_context>
chip_gen: v6e
topology: v6e:2x2x1
jax: 0.10.0
libtpu: 0.0.40
codegen_flags: <defaults>
</compile_context>

<pallas_src>
import jax
import jax.numpy as jnp
import numpy as np
from jax.experimental import pallas as pl
from jax.experimental.pallas import tpu as pltpu

HB = 32   # rows reserved per image in the row dimension (28 rows + pad + spare)
G = 8     # zero guard rows at both ends of every row slab


def cnn_kernel(x1_ref, a1_ref, p1a_ref, p1b_ref, b1_ref,
               a2_ref, q2a_ref, q2b_ref, b2_ref, f_ref, bfc_ref,
               o_ref, hp1_buf, x2_buf, hp2_buf, act2_buf):
    f32 = jnp.float32
    n_img = o_ref.shape[0]
    R = n_img * HB

    # ---- conv1: 3x3 conv as 3 row-shifted, lane-dense MXU matmuls ----------
    out1 = jnp.zeros((R, 256), f32)
    for dy in range(3):
        s = G + dy - 1
        out1 = out1 + jnp.dot(x1_ref[s:s + R, :], a1_ref[dy],
                              preferred_element_type=f32)

    # ---- maxpool1, horizontal half (lane-pair selection via 0/1 matmuls) ---
    hp1 = jnp.maximum(
        jnp.dot(out1, p1a_ref[...], preferred_element_type=f32),
        jnp.dot(out1, p1b_ref[...], preferred_element_type=f32))
    hp1_buf[...] = jnp.zeros(hp1_buf.shape, f32)
    hp1_buf[G:G + R, :] = hp1

    # ---- maxpool1 vertical half + hoisted bias/ReLU + padding-row zeroing --
    vp1 = jnp.maximum(hp1_buf[G:G + R, :], hp1_buf[G + 1:G + 1 + R, :])
    act1 = jnp.maximum(vp1 + b1_ref[...], 0.0)
    hrow = jax.lax.broadcasted_iota(jnp.int32, (R, 1), 0) % HB
    valid = ((hrow % 2) == 1) & (hrow <= 27)     # rows that hold pooled pixels
    x2_buf[...] = jnp.zeros(x2_buf.shape, f32)
    x2_buf[G:G + R, :] = jnp.where(valid, act1, 0.0)

    # ---- conv2 (operates on the row-dilated pooled grid) -------------------
    out2 = jnp.zeros((R, 256), f32)
    for dy in range(3):
        s = G + 2 * (dy - 1)
        out2 = out2 + jnp.dot(x2_buf[s:s + R, :], a2_ref[dy],
                              preferred_element_type=f32)

    # ---- maxpool2 + hoisted bias/ReLU --------------------------------------
    hp2 = jnp.maximum(
        jnp.dot(out2, q2a_ref[...], preferred_element_type=f32),
        jnp.dot(out2, q2b_ref[...], preferred_element_type=f32))
    hp2_buf[...] = jnp.zeros(hp2_buf.shape, f32)
    hp2_buf[G:G + R, :] = hp2
    vp2 = jnp.maximum(hp2_buf[G:G + R, :], hp2_buf[G + 2:G + 2 + R, :])
    act2 = jnp.maximum(vp2 + b2_ref[...], 0.0)
    act2_buf[...] = jnp.zeros(act2_buf.shape, f32)
    act2_buf[G:G + R, :] = act2

    # ---- fc1: flatten + Linear folded into 7 row-shifted matmuls ----------
    fc = jnp.zeros((R, 128), f32)
    for h3 in range(7):
        s = G + 4 * h3
        fc = fc + jnp.dot(act2_buf[s:s + R, :], f_ref[h3],
                          preferred_element_type=f32)
    fc = fc + bfc_ref[...]

    # one logits row per image (lane-dense; host slices lanes [:10])
    for n in range(n_img):
        o_ref[n:n + 1, :] = fc[n * HB + 1:n * HB + 2, :]


def init_params(key, in_channels=1, num_classes=10):
    k1, k2, k3, k4, k5, k6 = jax.random.split(key, 6)

    def unif(k, shape, fan_in):
        bound = 1.0 / float(fan_in) ** 0.5
        return jax.random.uniform(k, shape, jnp.float32, -bound, bound)

    return {
        "w1": unif(k1, (8, in_channels, 3, 3), 9 * in_channels),   # OIHW (torch)
        "b1": unif(k2, (8,), 9 * in_channels),
        "w2": unif(k3, (16, 8, 3, 3), 9 * 8),
        "b2": unif(k4, (16,), 9 * 8),
        "w_fc": unif(k5, (num_classes, 16 * 7 * 7), 16 * 7 * 7),   # (out,in)
        "b_fc": unif(k6, (num_classes,), 16 * 7 * 7),
    }


def fold_params(params):
    """One-time host-side folding of torch-layout weights into the kernel's
    lane-dense tap / pool-selection / FC matrices."""
    w1 = np.asarray(params["w1"], np.float32)
    b1 = np.asarray(params["b1"], np.float32)
    w2 = np.asarray(params["w2"], np.float32)
    b2 = np.asarray(params["b2"], np.float32)
    wfc = np.asarray(params["w_fc"], np.float32)
    bfc = np.asarray(params["b_fc"], np.float32)

    # conv1: input lane = padded col w' (0..29); output lane = w*8 + c_out.
    A1 = np.zeros((3, 128, 256), np.float32)
    w = np.arange(28)
    for dy in range(3):
        for dx in range(3):
            for co in range(8):
                A1[dy, w + dx, w * 8 + co] = w1[co, 0, dy, dx]

    # pool1 horizontal pair-selection + repack to layer-2 lane layout
    # dest lane = (wo+1)*8 + c  (w2' = wo+1, i.e. layer-2 padded col)
    P1a = np.zeros((256, 128), np.float32)
    P1b = np.zeros((256, 128), np.float32)
    wo = np.arange(14)
    for c in range(8):
        P1a[(2 * wo) * 8 + c, (wo + 1) * 8 + c] = 1.0
        P1b[(2 * wo + 1) * 8 + c, (wo + 1) * 8 + c] = 1.0

    b1l = np.zeros((1, 128), np.float32)
    b1l[0, 8:120] = np.tile(b1, 14)          # bias only on real (non-pad) lanes

    # conv2: input lane = w2'*8 + cin (w2' 0..15); output lane = wo2*16 + cout.
    A2 = np.zeros((3, 128, 256), np.float32)
    for dy in range(3):
        for dx in range(3):
            for ci in range(8):
                for co in range(16):
                    A2[dy, (wo + dx) * 8 + ci, wo * 16 + co] = w2[co, ci, dy, dx]

    # pool2 horizontal pair-selection; dest lane = w3*16 + c
    Q2a = np.zeros((256, 128), np.float32)
    Q2b = np.zeros((256, 128), np.float32)
    w3 = np.arange(7)
    for c in range(16):
        Q2a[(2 * w3) * 16 + c, w3 * 16 + c] = 1.0
        Q2b[(2 * w3 + 1) * 16 + c, w3 * 16 + c] = 1.0

    b2l = np.zeros((1, 128), np.float32)
    b2l[0, 0:112] = np.tile(b2, 7)

    # fc1 folded per spatial row h3; torch flatten order (c, h3, w3).
    F = np.zeros((7, 128, 128), np.float32)
    for h3 in range(7):
        for c in range(16):
            for o in range(10):
                F[h3, w3 * 16 + c, o] = wfc[o, c * 49 + h3 * 7 + w3]

    bfl = np.zeros((1, 128), np.float32)
    bfl[0, :10] = bfc

    j = lambda a: jnp.asarray(a, jnp.float32)
    return {"a1": j(A1), "p1a": j(P1a), "p1b": j(P1b), "b1": j(b1l),
            "a2": j(A2), "q2a": j(Q2a), "q2b": j(Q2b), "b2": j(b2l),
            "f": j(F), "bfc": j(bfl)}


def cnn_forward(x_nchw, fp):
    n_img = x_nchw.shape[0]
    # glue: zero-pad the 28x28 image into the kernel's (N*32 rows, 128 lanes)
    # slab (pad + reshape only -- no im2col, no transpose).
    xp = jnp.pad(x_nchw[:, 0].astype(jnp.float32),
                 ((0, 0), (1, 1), (1, 1)))                       # (N,30,30)
    xp = jnp.pad(xp, ((0, 0), (0, HB - 30), (0, 128 - 30)))      # (N,32,128)
    x1 = jnp.pad(xp.reshape(n_img * HB, 128), ((G, G), (0, 0)))  # (N*32+16,128)

    out = pl.pallas_call(
        cnn_kernel,
        out_shape=jax.ShapeDtypeStruct((n_img, 128), jnp.float32),
        in_specs=[pl.BlockSpec(memory_space=pltpu.MemorySpace.VMEM)] * 11,
        out_specs=pl.BlockSpec(memory_space=pltpu.MemorySpace.VMEM),
        scratch_shapes=[
            pltpu.VMEM((n_img * HB + 2 * G, 128), jnp.float32),  # hp1
            pltpu.VMEM((n_img * HB + 2 * G, 128), jnp.float32),  # x2 (layer-2 in)
            pltpu.VMEM((n_img * HB + 2 * G, 128), jnp.float32),  # hp2
            pltpu.VMEM((n_img * HB + 4 * G, 128), jnp.float32),  # act2 (+FC reach)
        ],
    )(x1, fp["a1"], fp["p1a"], fp["p1b"], fp["b1"],
      fp["a2"], fp["q2a"], fp["q2b"], fp["b2"], fp["f"], fp["bfc"])
    return out[:, :10]


if __name__ == "__main__":
    key = jax.random.PRNGKey(0)
    kx, kp = jax.random.split(key)
    # fc1 = Linear(16*7*7, 10) implies 28x28 spatial input with 1 channel.
    x = jax.random.normal(kx, (2, 1, 28, 28), jnp.float32)   # NCHW, like PyTorch
    params = init_params(kp, in_channels=1, num_classes=10)
    fparams = fold_params(params)                            # one-time host folding
    out = jax.jit(cnn_forward)(x, fparams)
    out = jax.block_until_ready(out)
    assert out.shape == (2, 10) and out.dtype == jnp.float32
    print("KERNEL_OK")
</pallas_src>

<mosaic_0001>
module attributes {stable_mosaic.version = 11 : i64} {
  func.func @cnn_kernel(%arg0: memref<80x128xf32, #tpu.memory_space<vmem>>, %arg1: memref<3x128x256xf32, #tpu.memory_space<vmem>>, %arg2: memref<256x128xf32, #tpu.memory_space<vmem>>, %arg3: memref<256x128xf32, #tpu.memory_space<vmem>>, %arg4: memref<1x128xf32, #tpu.memory_space<vmem>>, %arg5: memref<3x128x256xf32, #tpu.memory_space<vmem>>, %arg6: memref<256x128xf32, #tpu.memory_space<vmem>>, %arg7: memref<256x128xf32, #tpu.memory_space<vmem>>, %arg8: memref<1x128xf32, #tpu.memory_space<vmem>>, %arg9: memref<7x128x128xf32, #tpu.memory_space<vmem>>, %arg10: memref<1x128xf32, #tpu.memory_space<vmem>>, %arg11: memref<2x128xf32, #tpu.memory_space<vmem>>, %arg12: memref<80x128xf32, #tpu.memory_space<vmem>>, %arg13: memref<80x128xf32, #tpu.memory_space<vmem>>, %arg14: memref<80x128xf32, #tpu.memory_space<vmem>>, %arg15: memref<96x128xf32, #tpu.memory_space<vmem>>) attributes {dimension_semantics = [], scalar_prefetch = 0 : i64, scratch_operands = 4 : i64, tpu.core_type = #tpu.core_type<tc>} {
    %cst = arith.constant 0.000000e+00 : f32
    %0 = vector.broadcast %cst : f32 to vector<64x256xf32>
    %c7 = arith.constant 7 : index
    %c0 = arith.constant 0 : index
    %1 = vector.load %arg0[%c7, %c0] : memref<80x128xf32, #tpu.memory_space<vmem>>, vector<64x128xf32>
    %c0_0 = arith.constant 0 : index
    %c0_1 = arith.constant 0 : index
    %c0_2 = arith.constant 0 : index
    %2 = vector.load %arg1[%c0_0, %c0_1, %c0_2] : memref<3x128x256xf32, #tpu.memory_space<vmem>>, vector<1x128x256xf32>
    %3 = vector.shape_cast %2 : vector<1x128x256xf32> to vector<128x256xf32>
    %cst_3 = arith.constant dense<0.000000e+00> : vector<64x256xf32>
    %4 = tpu.matmul %1, %3, %cst_3 {dimension_numbers = #tpu.dot_dimension_numbers<[1], [0], [0], [1], [0, 0, 1, 1], [], []>} : vector<64x128xf32>, vector<128x256xf32>, vector<64x256xf32> -> vector<64x256xf32>
    %5 = arith.addf %0, %4 : vector<64x256xf32>
    %c8 = arith.constant 8 : index
    %c0_4 = arith.constant 0 : index
    %6 = vector.load %arg0[%c8, %c0_4] : memref<80x128xf32, #tpu.memory_space<vmem>>, vector<64x128xf32>
    %c1 = arith.constant 1 : index
    %c0_5 = arith.constant 0 : index
    %c0_6 = arith.constant 0 : index
    %7 = vector.load %arg1[%c1, %c0_5, %c0_6] : memref<3x128x256xf32, #tpu.memory_space<vmem>>, vector<1x128x256xf32>
    %8 = vector.shape_cast %7 : vector<1x128x256xf32> to vector<128x256xf32>
    %cst_7 = arith.constant dense<0.000000e+00> : vector<64x256xf32>
    %9 = tpu.matmul %6, %8, %cst_7 {dimension_numbers = #tpu.dot_dimension_numbers<[1], [0], [0], [1], [0, 0, 1, 1], [], []>} : vector<64x128xf32>, vector<128x256xf32>, vector<64x256xf32> -> vector<64x256xf32>
    %10 = arith.addf %5, %9 : vector<64x256xf32>
    %c9 = arith.constant 9 : index
    %c0_8 = arith.constant 0 : index
    %11 = vector.load %arg0[%c9, %c0_8] : memref<80x128xf32, #tpu.memory_space<vmem>>, vector<64x128xf32>
    %c2 = arith.constant 2 : index
    %c0_9 = arith.constant 0 : index
    %c0_10 = arith.constant 0 : index
    %12 = vector.load %arg1[%c2, %c0_9, %c0_10] : memref<3x128x256xf32, #tpu.memory_space<vmem>>, vector<1x128x256xf32>
    %13 = vector.shape_cast %12 : vector<1x128x256xf32> to vector<128x256xf32>
    %cst_11 = arith.constant dense<0.000000e+00> : vector<64x256xf32>
    %14 = tpu.matmul %11, %13, %cst_11 {dimension_numbers = #tpu.dot_dimension_numbers<[1], [0], [0], [1], [0, 0, 1, 1], [], []>} : vector<64x128xf32>, vector<128x256xf32>, vector<64x256xf32> -> vector<64x256xf32>
    %15 = arith.addf %10, %14 : vector<64x256xf32>
    %c0_12 = arith.constant 0 : index
    %c0_13 = arith.constant 0 : index
    %16 = vector.load %arg2[%c0_12, %c0_13] : memref<256x128xf32, #tpu.memory_space<vmem>>, vector<256x128xf32>
    %cst_14 = arith.constant dense<0.000000e+00> : vector<64x128xf32>
    %17 = tpu.matmul %15, %16, %cst_14 {dimension_numbers = #tpu.dot_dimension_numbers<[1], [0], [0], [1], [0, 0, 1, 1], [], []>} : vector<64x256xf32>, vector<256x128xf32>, vector<64x128xf32> -> vector<64x128xf32>
    %c0_15 = arith.constant 0 : index
    %c0_16 = arith.constant 0 : index
    %18 = vector.load %arg3[%c0_15, %c0_16] : memref<256x128xf32, #tpu.memory_space<vmem>>, vector<256x128xf32>
    %cst_17 = arith.constant dense<0.000000e+00> : vector<64x128xf32>
    %19 = tpu.matmul %15, %18, %cst_17 {dimension_numbers = #tpu.dot_dimension_numbers<[1], [0], [0], [1], [0, 0, 1, 1], [], []>} : vector<64x256xf32>, vector<256x128xf32>, vector<64x128xf32> -> vector<64x128xf32>
    %20 = arith.maximumf %17, %19 : vector<64x128xf32>
    %cst_18 = arith.constant 0.000000e+00 : f32
    %21 = vector.broadcast %cst_18 : f32 to vector<80x128xf32>
    %c0_19 = arith.constant 0 : index
    %c0_20 = arith.constant 0 : index
    %22 = vector.load %arg12[%c0_19, %c0_20] : memref<80x128xf32, #tpu.memory_space<vmem>>, vector<80x128xf32>
    tpu.vector_store %arg12[%c0_19, %c0_20], %21 {strides = array<i32>} : memref<80x128xf32, #tpu.memory_space<vmem>>, vector<80x128xf32>,
    %c8_21 = arith.constant 8 : index
    %c0_22 = arith.constant 0 : index
    %23 = vector.load %arg12[%c8_21, %c0_22] : memref<80x128xf32, #tpu.memory_space<vmem>>, vector<64x128xf32>
    tpu.vector_store %arg12[%c8_21, %c0_22], %20 {strides = array<i32>} : memref<80x128xf32, #tpu.memory_space<vmem>>, vector<64x128xf32>,
    %c8_23 = arith.constant 8 : index
    %c0_24 = arith.constant 0 : index
    %24 = vector.load %arg12[%c8_23, %c0_24] : memref<80x128xf32, #tpu.memory_space<vmem>>, vector<64x128xf32>
    %c9_25 = arith.constant 9 : index
    %c0_26 = arith.constant 0 : index
    %25 = vector.load %arg12[%c9_25, %c0_26] : memref<80x128xf32, #tpu.memory_space<vmem>>, vector<64x128xf32>
    %26 = arith.maximumf %24, %25 : vector<64x128xf32>
    %c0_27 = arith.constant 0 : index
    %c0_28 = arith.constant 0 : index
    %27 = vector.load %arg4[%c0_27, %c0_28] : memref<1x128xf32, #tpu.memory_space<vmem>>, vector<1x128xf32>
    %28 = vector.broadcast %27 : vector<1x128xf32> to vector<64x128xf32>
    %29 = arith.addf %26, %28 : vector<64x128xf32>
    %cst_29 = arith.constant 0.000000e+00 : f32
    %30 = vector.broadcast %cst_29 : f32 to vector<64x128xf32>
    %31 = arith.maximumf %29, %30 : vector<64x128xf32>
    %32 = tpu.iota {dimensions = array<i32: 0>} : vector<64x1xi32>
    %c32_i32 = arith.constant 32 : i32
    %c0_i32 = arith.constant 0 : i32
    %33 = arith.cmpi eq, %c32_i32, %c0_i32 : i32
    %c1_i32 = arith.constant 1 : i32
    %34 = arith.select %33, %c1_i32, %c32_i32 : i32
    %35 = vector.broadcast %34 : i32 to vector<64x1xi32>
    %36 = arith.remsi %32, %35 : vector<64x1xi32>
    %c0_i32_30 = arith.constant 0 : i32
    %37 = vector.broadcast %c0_i32_30 : i32 to vector<64x1xi32>
    %38 = arith.cmpi ne, %36, %37 : vector<64x1xi32>
    %c0_i32_31 = arith.constant 0 : i32
    %39 = vector.broadcast %c0_i32_31 : i32 to vector<64x1xi32>
    %40 = arith.cmpi slt, %36, %39 : vector<64x1xi32>
    %c0_i32_32 = arith.constant 0 : i32
    %41 = arith.cmpi slt, %34, %c0_i32_32 : i32
    %42 = vector.broadcast %41 : i1 to vector<64x1xi1>
    %43 = vector.broadcast %42 : vector<64x1xi1> to vector<64x1xi1>
    %44 = arith.xori %40, %43 : vector<64x1xi1>
    %45 = arith.andi %44, %38 : vector<64x1xi1>
    %46 = vector.broadcast %34 : i32 to vector<64x1xi32>
    %47 = arith.addi %36, %46 : vector<64x1xi32>
    %48 = arith.select %45, %47, %36 : vector<64x1xi1>, vector<64x1xi32>
    %c2_i32 = arith.constant 2 : i32
    %c0_i32_33 = arith.constant 0 : i32
    %49 = arith.cmpi eq, %c2_i32, %c0_i32_33 : i32
    %c1_i32_34 = arith.constant 1 : i32
    %50 = arith.select %49, %c1_i32_34, %c2_i32 : i32
    %51 = vector.broadcast %50 : i32 to vector<64x1xi32>
    %52 = arith.remsi %48, %51 : vector<64x1xi32>
    %c0_i32_35 = arith.constant 0 : i32
    %53 = vector.broadcast %c0_i32_35 : i32 to vector<64x1xi32>
    %54 = arith.cmpi ne, %52, %53 : vector<64x1xi32>
    %c0_i32_36 = arith.constant 0 : i32
    %55 = vector.broadcast %c0_i32_36 : i32 to vector<64x1xi32>
    %56 = arith.cmpi slt, %52, %55 : vector<64x1xi32>
    %c0_i32_37 = arith.constant 0 : i32
    %57 = arith.cmpi slt, %50, %c0_i32_37 : i32
    %58 = vector.broadcast %57 : i1 to vector<64x1xi1>
    %59 = vector.broadcast %58 : vector<64x1xi1> to vector<64x1xi1>
    %60 = arith.xori %56, %59 : vector<64x1xi1>
    %61 = arith.andi %60, %54 : vector<64x1xi1>
    %62 = vector.broadcast %50 : i32 to vector<64x1xi32>
    %63 = arith.addi %52, %62 : vector<64x1xi32>
    %64 = arith.select %61, %63, %52 : vector<64x1xi1>, vector<64x1xi32>
    %c1_i32_38 = arith.constant 1 : i32
    %65 = vector.broadcast %c1_i32_38 : i32 to vector<64x1xi32>
    %66 = arith.cmpi eq, %64, %65 : vector<64x1xi32>
    %c27_i32 = arith.constant 27 : i32
    %67 = vector.broadcast %c27_i32 : i32 to vector<64x1xi32>
    %68 = arith.cmpi sle, %48, %67 : vector<64x1xi32>
    %69 = arith.andi %66, %68 : vector<64x1xi1>
    %cst_39 = arith.constant 0.000000e+00 : f32
    %70 = vector.broadcast %cst_39 : f32 to vector<80x128xf32>
    %c0_40 = arith.constant 0 : index
    %c0_41 = arith.constant 0 : index
    %71 = vector.load %arg13[%c0_40, %c0_41] : memref<80x128xf32, #tpu.memory_space<vmem>>, vector<80x128xf32>
    tpu.vector_store %arg13[%c0_40, %c0_41], %70 {strides = array<i32>} : memref<80x128xf32, #tpu.memory_space<vmem>>, vector<80x128xf32>,
    %cst_42 = arith.constant 0.000000e+00 : f32
    %72 = vector.shape_cast %69 : vector<64x1xi1> to vector<64x1xi1>
    %73 = vector.broadcast %72 : vector<64x1xi1> to vector<64x128xi1>
    %74 = vector.broadcast %cst_42 : f32 to vector<64x128xf32>
    %75 = arith.select %73, %31, %74 : vector<64x128xi1>, vector<64x128xf32>
    %c8_43 = arith.constant 8 : index
    %c0_44 = arith.constant 0 : index
    %76 = vector.load %arg13[%c8_43, %c0_44] : memref<80x128xf32, #tpu.memory_space<vmem>>, vector<64x128xf32>
    tpu.vector_store %arg13[%c8_43, %c0_44], %75 {strides = array<i32>} : memref<80x128xf32, #tpu.memory_space<vmem>>, vector<64x128xf32>,
    %cst_45 = arith.constant 0.000000e+00 : f32
    %77 = vector.broadcast %cst_45 : f32 to vector<64x256xf32>
    %c6 = arith.constant 6 : index
    %c0_46 = arith.constant 0 : index
    %78 = vector.load %arg13[%c6, %c0_46] : memref<80x128xf32, #tpu.memory_space<vmem>>, vector<64x128xf32>
    %c0_47 = arith.constant 0 : index
    %c0_48 = arith.constant 0 : index
    %c0_49 = arith.constant 0 : index
    %79 = vector.load %arg5[%c0_47, %c0_48, %c0_49] : memref<3x128x256xf32, #tpu.memory_space<vmem>>, vector<1x128x256xf32>
    %80 = vector.shape_cast %79 : vector<1x128x256xf32> to vector<128x256xf32>
    %cst_50 = arith.constant dense<0.000000e+00> : vector<64x256xf32>
    %81 = tpu.matmul %78, %80, %cst_50 {dimension_numbers = #tpu.dot_dimension_numbers<[1], [0], [0], [1], [0, 0, 1, 1], [], []>} : vector<64x128xf32>, vector<128x256xf32>, vector<64x256xf32> -> vector<64x256xf32>
    %82 = arith.addf %77, %81 : vector<64x256xf32>
    %c8_51 = arith.constant 8 : index
    %c0_52 = arith.constant 0 : index
    %83 = vector.load %arg13[%c8_51, %c0_52] : memref<80x128xf32, #tpu.memory_space<vmem>>, vector<64x128xf32>
    %c1_53 = arith.constant 1 : index
    %c0_54 = arith.constant 0 : index
    %c0_55 = arith.constant 0 : index
    %84 = vector.load %arg5[%c1_53, %c0_54, %c0_55] : memref<3x128x256xf32, #tpu.memory_space<vmem>>, vector<1x128x256xf32>
    %85 = vector.shape_cast %84 : vector<1x128x256xf32> to vector<128x256xf32>
    %cst_56 = arith.constant dense<0.000000e+00> : vector<64x256xf32>
    %86 = tpu.matmul %83, %85, %cst_56 {dimension_numbers = #tpu.dot_dimension_numbers<[1], [0], [0], [1], [0, 0, 1, 1], [], []>} : vector<64x128xf32>, vector<128x256xf32>, vector<64x256xf32> -> vector<64x256xf32>
    %87 = arith.addf %82, %86 : vector<64x256xf32>
    %c10 = arith.constant 10 : index
    %c0_57 = arith.constant 0 : index
    %88 = vector.load %arg13[%c10, %c0_57] : memref<80x128xf32, #tpu.memory_space<vmem>>, vector<64x128xf32>
    %c2_58 = arith.constant 2 : index
    %c0_59 = arith.constant 0 : index
    %c0_60 = arith.constant 0 : index
    %89 = vector.load %arg5[%c2_58, %c0_59, %c0_60] : memref<3x128x256xf32, #tpu.memory_space<vmem>>, vector<1x128x256xf32>
    %90 = vector.shape_cast %89 : vector<1x128x256xf32> to vector<128x256xf32>
    %cst_61 = arith.constant dense<0.000000e+00> : vector<64x256xf32>
    %91 = tpu.matmul %88, %90, %cst_61 {dimension_numbers = #tpu.dot_dimension_numbers<[1], [0], [0], [1], [0, 0, 1, 1], [], []>} : vector<64x128xf32>, vector<128x256xf32>, vector<64x256xf32> -> vector<64x256xf32>
    %92 = arith.addf %87, %91 : vector<64x256xf32>
    %c0_62 = arith.constant 0 : index
    %c0_63 = arith.constant 0 : index
    %93 = vector.load %arg6[%c0_62, %c0_63] : memref<256x128xf32, #tpu.memory_space<vmem>>, vector<256x128xf32>
    %cst_64 = arith.constant dense<0.000000e+00> : vector<64x128xf32>
    %94 = tpu.matmul %92, %93, %cst_64 {dimension_numbers = #tpu.dot_dimension_numbers<[1], [0], [0], [1], [0, 0, 1, 1], [], []>} : vector<64x256xf32>, vector<256x128xf32>, vector<64x128xf32> -> vector<64x128xf32>
    %c0_65 = arith.constant 0 : index
    %c0_66 = arith.constant 0 : index
    %95 = vector.load %arg7[%c0_65, %c0_66] : memref<256x128xf32, #tpu.memory_space<vmem>>, vector<256x128xf32>
    %cst_67 = arith.constant dense<0.000000e+00> : vector<64x128xf32>
    %96 = tpu.matmul %92, %95, %cst_67 {dimension_numbers = #tpu.dot_dimension_numbers<[1], [0], [0], [1], [0, 0, 1, 1], [], []>} : vector<64x256xf32>, vector<256x128xf32>, vector<64x128xf32> -> vector<64x128xf32>
    %97 = arith.maximumf %94, %96 : vector<64x128xf32>
    %cst_68 = arith.constant 0.000000e+00 : f32
    %98 = vector.broadcast %cst_68 : f32 to vector<80x128xf32>
    %c0_69 = arith.constant 0 : index
    %c0_70 = arith.constant 0 : index
    %99 = vector.load %arg14[%c0_69, %c0_70] : memref<80x128xf32, #tpu.memory_space<vmem>>, vector<80x128xf32>
    tpu.vector_store %arg14[%c0_69, %c0_70], %98 {strides = array<i32>} : memref<80x128xf32, #tpu.memory_space<vmem>>, vector<80x128xf32>,
    %c8_71 = arith.constant 8 : index
    %c0_72 = arith.constant 0 : index
    %100 = vector.load %arg14[%c8_71, %c0_72] : memref<80x128xf32, #tpu.memory_space<vmem>>, vector<64x128xf32>
    tpu.vector_store %arg14[%c8_71, %c0_72], %97 {strides = array<i32>} : memref<80x128xf32, #tpu.memory_space<vmem>>, vector<64x128xf32>,
    %c8_73 = arith.constant 8 : index
    %c0_74 = arith.constant 0 : index
    %101 = vector.load %arg14[%c8_73, %c0_74] : memref<80x128xf32, #tpu.memory_space<vmem>>, vector<64x128xf32>
    %c10_75 = arith.constant 10 : index
    %c0_76 = arith.constant 0 : index
    %102 = vector.load %arg14[%c10_75, %c0_76] : memref<80x128xf32, #tpu.memory_space<vmem>>, vector<64x128xf32>
    %103 = arith.maximumf %101, %102 : vector<64x128xf32>
    %c0_77 = arith.constant 0 : index
    %c0_78 = arith.constant 0 : index
    %104 = vector.load %arg8[%c0_77, %c0_78] : memref<1x128xf32, #tpu.memory_space<vmem>>, vector<1x128xf32>
    %105 = vector.broadcast %104 : vector<1x128xf32> to vector<64x128xf32>
    %106 = arith.addf %103, %105 : vector<64x128xf32>
    %cst_79 = arith.constant 0.000000e+00 : f32
    %107 = vector.broadcast %cst_79 : f32 to vector<64x128xf32>
    %108 = arith.maximumf %106, %107 : vector<64x128xf32>
    %cst_80 = arith.constant 0.000000e+00 : f32
    %109 = vector.broadcast %cst_80 : f32 to vector<96x128xf32>
    %c0_81 = arith.constant 0 : index
    %c0_82 = arith.constant 0 : index
    %110 = vector.load %arg15[%c0_81, %c0_82] : memref<96x128xf32, #tpu.memory_space<vmem>>, vector<96x128xf32>
    tpu.vector_store %arg15[%c0_81, %c0_82], %109 {strides = array<i32>} : memref<96x128xf32, #tpu.memory_space<vmem>>, vector<96x128xf32>,
    %c8_83 = arith.constant 8 : index
    %c0_84 = arith.constant 0 : index
    %111 = vector.load %arg15[%c8_83, %c0_84] : memref<96x128xf32, #tpu.memory_space<vmem>>, vector<64x128xf32>
    tpu.vector_store %arg15[%c8_83, %c0_84], %108 {strides = array<i32>} : memref<96x128xf32, #tpu.memory_space<vmem>>, vector<64x128xf32>,
    %cst_85 = arith.constant 0.000000e+00 : f32
    %112 = vector.broadcast %cst_85 : f32 to vector<64x128xf32>
    %c8_86 = arith.constant 8 : index
    %c0_87 = arith.constant 0 : index
    %113 = vector.load %arg15[%c8_86, %c0_87] : memref<96x128xf32, #tpu.memory_space<vmem>>, vector<64x128xf32>
    %c0_88 = arith.constant 0 : index
    %c0_89 = arith.constant 0 : index
    %c0_90 = arith.constant 0 : index
    %114 = vector.load %arg9[%c0_88, %c0_89, %c0_90] : memref<7x128x128xf32, #tpu.memory_space<vmem>>, vector<1x128x128xf32>
    %115 = vector.shape_cast %114 : vector<1x128x128xf32> to vector<128x128xf32>
    %cst_91 = arith.constant dense<0.000000e+00> : vector<64x128xf32>
    %116 = tpu.matmul %113, %115, %cst_91 {dimension_numbers = #tpu.dot_dimension_numbers<[1], [0], [0], [1], [0, 0, 1, 1], [], []>} : vector<64x128xf32>, vector<128x128xf32>, vector<64x128xf32> -> vector<64x128xf32>
    %117 = arith.addf %112, %116 : vector<64x128xf32>
    %c12 = arith.constant 12 : index
    %c0_92 = arith.constant 0 : index
    %118 = vector.load %arg15[%c12, %c0_92] : memref<96x128xf32, #tpu.memory_space<vmem>>, vector<64x128xf32>
    %c1_93 = arith.constant 1 : index
    %c0_94 = arith.constant 0 : index
    %c0_95 = arith.constant 0 : index
    %119 = vector.load %arg9[%c1_93, %c0_94, %c0_95] : memref<7x128x128xf32, #tpu.memory_space<vmem>>, vector<1x128x128xf32>
    %120 = vector.shape_cast %119 : vector<1x128x128xf32> to vector<128x128xf32>
    %cst_96 = arith.constant dense<0.000000e+00> : vector<64x128xf32>
    %121 = tpu.matmul %118, %120, %cst_96 {dimension_numbers = #tpu.dot_dimension_numbers<[1], [0], [0], [1], [0, 0, 1, 1], [], []>} : vector<64x128xf32>, vector<128x128xf32>, vector<64x128xf32> -> vector<64x128xf32>
    %122 = arith.addf %117, %121 : vector<64x128xf32>
    %c16 = arith.constant 16 : index
    %c0_97 = arith.constant 0 : index
    %123 = vector.load %arg15[%c16, %c0_97] : memref<96x128xf32, #tpu.memory_space<vmem>>, vector<64x128xf32>
    %c2_98 = arith.constant 2 : index
    %c0_99 = arith.constant 0 : index
    %c0_100 = arith.constant 0 : index
    %124 = vector.load %arg9[%c2_98, %c0_99, %c0_100] : memref<7x128x128xf32, #tpu.memory_space<vmem>>, vector<1x128x128xf32>
    %125 = vector.shape_cast %124 : vector<1x128x128xf32> to vector<128x128xf32>
    %cst_101 = arith.constant dense<0.000000e+00> : vector<64x128xf32>
    %126 = tpu.matmul %123, %125, %cst_101 {dimension_numbers = #tpu.dot_dimension_numbers<[1], [0], [0], [1], [0, 0, 1, 1], [], []>} : vector<64x128xf32>, vector<128x128xf32>, vector<64x128xf32> -> vector<64x128xf32>
    %127 = arith.addf %122, %126 : vector<64x128xf32>
    %c20 = arith.constant 20 : index
    %c0_102 = arith.constant 0 : index
    %128 = vector.load %arg15[%c20, %c0_102] : memref<96x128xf32, #tpu.memory_space<vmem>>, vector<64x128xf32>
    %c3 = arith.constant 3 : index
    %c0_103 = arith.constant 0 : index
    %c0_104 = arith.constant 0 : index
    %129 = vector.load %arg9[%c3, %c0_103, %c0_104] : memref<7x128x128xf32, #tpu.memory_space<vmem>>, vector<1x128x128xf32>
    %130 = vector.shape_cast %129 : vector<1x128x128xf32> to vector<128x128xf32>
    %cst_105 = arith.constant dense<0.000000e+00> : vector<64x128xf32>
    %131 = tpu.matmul %128, %130, %cst_105 {dimension_numbers = #tpu.dot_dimension_numbers<[1], [0], [0], [1], [0, 0, 1, 1], [], []>} : vector<64x128xf32>, vector<128x128xf32>, vector<64x128xf32> -> vector<64x128xf32>
    %132 = arith.addf %127, %131 : vector<64x128xf32>
    %c24 = arith.constant 24 : index
    %c0_106 = arith.constant 0 : index
    %133 = vector.load %arg15[%c24, %c0_106] : memref<96x128xf32, #tpu.memory_space<vmem>>, vector<64x128xf32>
    %c4 = arith.constant 4 : index
    %c0_107 = arith.constant 0 : index
    %c0_108 = arith.constant 0 : index
    %134 = vector.load %arg9[%c4, %c0_107, %c0_108] : memref<7x128x128xf32, #tpu.memory_space<vmem>>, vector<1x128x128xf32>
    %135 = vector.shape_cast %134 : vector<1x128x128xf32> to vector<128x128xf32>
    %cst_109 = arith.constant dense<0.000000e+00> : vector<64x128xf32>
    %136 = tpu.matmul %133, %135, %cst_109 {dimension_numbers = #tpu.dot_dimension_numbers<[1], [0], [0], [1], [0, 0, 1, 1], [], []>} : vector<64x128xf32>, vector<128x128xf32>, vector<64x128xf32> -> vector<64x128xf32>
    %137 = arith.addf %132, %136 : vector<64x128xf32>
    %c28 = arith.constant 28 : index
    %c0_110 = arith.constant 0 : index
    %138 = vector.load %arg15[%c28, %c0_110] : memref<96x128xf32, #tpu.memory_space<vmem>>, vector<64x128xf32>
    %c5 = arith.constant 5 : index
    %c0_111 = arith.constant 0 : index
    %c0_112 = arith.constant 0 : index
    %139 = vector.load %arg9[%c5, %c0_111, %c0_112] : memref<7x128x128xf32, #tpu.memory_space<vmem>>, vector<1x128x128xf32>
    %140 = vector.shape_cast %139 : vector<1x128x128xf32> to vector<128x128xf32>
    %cst_113 = arith.constant dense<0.000000e+00> : vector<64x128xf32>
    %141 = tpu.matmul %138, %140, %cst_113 {dimension_numbers = #tpu.dot_dimension_numbers<[1], [0], [0], [1], [0, 0, 1, 1], [], []>} : vector<64x128xf32>, vector<128x128xf32>, vector<64x128xf32> -> vector<64x128xf32>
    %142 = arith.addf %137, %141 : vector<64x128xf32>
    %c32 = arith.constant 32 : index
    %c0_114 = arith.constant 0 : index
    %143 = vector.load %arg15[%c32, %c0_114] : memref<96x128xf32, #tpu.memory_space<vmem>>, vector<64x128xf32>
    %c6_115 = arith.constant 6 : index
    %c0_116 = arith.constant 0 : index
    %c0_117 = arith.constant 0 : index
    %144 = vector.load %arg9[%c6_115, %c0_116, %c0_117] : memref<7x128x128xf32, #tpu.memory_space<vmem>>, vector<1x128x128xf32>
    %145 = vector.shape_cast %144 : vector<1x128x128xf32> to vector<128x128xf32>
    %cst_118 = arith.constant dense<0.000000e+00> : vector<64x128xf32>
    %146 = tpu.matmul %143, %145, %cst_118 {dimension_numbers = #tpu.dot_dimension_numbers<[1], [0], [0], [1], [0, 0, 1, 1], [], []>} : vector<64x128xf32>, vector<128x128xf32>, vector<64x128xf32> -> vector<64x128xf32>
    %147 = arith.addf %142, %146 : vector<64x128xf32>
    %c0_119 = arith.constant 0 : index
    %c0_120 = arith.constant 0 : index
    %148 = vector.load %arg10[%c0_119, %c0_120] : memref<1x128xf32, #tpu.memory_space<vmem>>, vector<1x128xf32>
    %149 = vector.broadcast %148 : vector<1x128xf32> to vector<64x128xf32>
    %150 = arith.addf %147, %149 : vector<64x128xf32>
    %151 = vector.extract_strided_slice %150 {offsets = [1, 0], sizes = [1, 128], strides = [1, 1]} : vector<64x128xf32> to vector<1x128xf32>
    %c0_121 = arith.constant 0 : index
    %c0_122 = arith.constant 0 : index
    %152 = vector.load %arg11[%c0_121, %c0_122] : memref<2x128xf32, #tpu.memory_space<vmem>>, vector<1x128xf32>
    tpu.vector_store %arg11[%c0_121, %c0_122], %151 {strides = array<i32>} : memref<2x128xf32, #tpu.memory_space<vmem>>, vector<1x128xf32>,
    %153 = vector.extract_strided_slice %150 {offsets = [33, 0], sizes = [1, 128], strides = [1, 1]} : vector<64x128xf32> to vector<1x128xf32>
    %c1_123 = arith.constant 1 : index
    %c0_124 = arith.constant 0 : index
    %154 = vector.load %arg11[%c1_123, %c0_124] : memref<2x128xf32, #tpu.memory_space<vmem>>, vector<1x128xf32>
    tpu.vector_store %arg11[%c1_123, %c0_124], %153 {strides = array<i32>} : memref<2x128xf32, #tpu.memory_space<vmem>>, vector<1x128xf32>,
    return
  }
}

</mosaic_0001>

<bundles_post_ra>
// kernel: cnn_forward.1
= control target key start
LH: loop header
LB: loop body
LE: loop exit
PB: predicated region body
PF: predicated region fallthrough
CT: control target
= control target key end

     0   :  { %16 = vsyncpa [#allocation7], 0  ;;  %s4585_s0 = inlined_call_operand.vmem [shape: f32[80,128], index: 0, kind: input, shape index: {}]   ;;  %s4586_s1 = inlined_call_operand.hbm [shape: f32[3,128,256], index: 1, kind: input, shape index: {}]   ;;  %s4587_s2 = inlined_call_operand.vmem [shape: f32[256,128], index: 2, kind: input, shape index: {}]   ;;  %s4588_s3 = inlined_call_operand.vmem [shape: f32[256,128], index: 3, kind: input, shape index: {}]   ;;  %s4589_s4 = inlined_call_operand.vmem [shape: f32[1,128], index: 4, kind: input, shape index: {}]   ;;  %s4590_s5 = inlined_call_operand.hbm [shape: f32[3,128,256], index: 5, kind: input, shape index: {}]   ;;  %s4591_s6 = inlined_call_operand.hbm [shape: f32[256,128], index: 6, kind: input, shape index: {}]   ;;  %s4592_s7 = inlined_call_operand.hbm [shape: f32[256,128], index: 7, kind: input, shape index: {}]   ;;  %s4593_s8 = inlined_call_operand.hbm [shape: f32[1,128], index: 8, kind: input, shape index: {}]   ;;  %s4594_s9 = inlined_call_operand.hbm [shape: f32[7,128,128], index: 9, kind: input, shape index: {}]   ;;  %s4595_s10 = inlined_call_operand.hbm [shape: f32[1,128], index: 10, kind: input, shape index: {}]   ;;  %s4596_s11 = inlined_call_operand.hbm [shape: f32[2,128], index: 11, kind: output, shape index: {}]  }
   0x1   :  { %17 = vsyncpa [#allocation10], 0 }
   0x2   :  { %18 = vsyncpa [#allocation13], 0 }
   0x3   :  { %19 = vsyncpa [#allocation16], 0 }
   0x4   :  { %20 = vsyncpa [#allocation8], 0  ;;  %s3899_s17 = smov [#allocation9]  }
   0x5   :  { %s46_s18 = sshll.u32 %s3899_s17, 4  ;;  %s47_s18 = int_to_ptr.vmem [resolvable:$true] %s46_s18 }
   0x6   :  { %s3737_s19 = scalar_lea.vmem %s47_s18, 12288  ;;  %p3742_p1 = scmp.lt.s32.totalorder %s47_s18, %s47_s18 }
   0x7   :  { %p3738_p0 = scmp.ne.s32.totalorder %s47_s18, %s3737_s19  ;;  %p3743_p2 = scmp.lt.s32.totalorder %s3737_s19, %s3737_s19 }
   0x9   :  { %p3744_p3 = por %p3743_p2, %p3742_p1 }
   0xb   :  { %p3745_p4 = pnand %p3744_p3, %p3738_p0 }
   0xd   :  { %3748 = shalt.err (!%p3745_p4)
}
   0xe   :  { %s3900_s20 = smov 256   ;;  %s3901_s21 = smov 16  }
   0xf   :  { %52 = dma.hbm_to_vmem [thread:$0]  %s4590_s5, 12288, %s47_s18, [#allocation10], %s3900_s20, %s3900_s20, %s3901_s21  }
  0x10   :  { %s3902_s24 = smov [#allocation12]   ;;  %s3903_s26 = smov [#allocation15]  }
  0x11   :  { %s70_s25 = sshll.u32 %s3902_s24, 4  ;;  %s92_s27 = sshll.u32 %s3903_s26, 4  ;;  %s71_s25 = int_to_ptr.vmem [resolvable:$true] %s70_s25  ;;  %s93_s27 = int_to_ptr.vmem [resolvable:$true] %s92_s27 }
  0x12   :  { %s3757_s28 = scalar_lea.vmem %s71_s25, 4096  ;;  %p3762_p6 = scmp.lt.s32.totalorder %s71_s25, %s71_s25 }
  0x13   :  { %p3758_p5 = scmp.ne.s32.totalorder %s71_s25, %s3757_s28  ;;  %p3763_p7 = scmp.lt.s32.totalorder %s3757_s28, %s3757_s28 }
  0x15   :  { %p3764_p8 = por %p3763_p7, %p3762_p6 }
  0x17   :  { %p3765_p9 = pnand %p3764_p8, %p3758_p5 }
  0x19   :  { %3768 = shalt.err (!%p3765_p9)
}
  0x1a   :  { %s3904_s29 = smov 128   ;;  %s3905_s30 = smov 8  }
  0x1b   :  { %76 = dma.hbm_to_vmem [thread:$0]  %s4592_s7, 4096, %s71_s25, [#allocation13], %s3904_s29, %s3904_s29, %s3905_s30  }
  0x1c   :  { %s3777_s5 = scalar_lea.vmem %s93_s27, 14336  ;;  %p3782_p11 = scmp.lt.s32.totalorder %s93_s27, %s93_s27 }
  0x1d   :  { %p3778_p10 = scmp.ne.s32.totalorder %s93_s27, %s3777_s5  ;;  %p3783_p12 = scmp.lt.s32.totalorder %s3777_s5, %s3777_s5 }
  0x1f   :  { %p3784_p13 = por %p3783_p12, %p3782_p11 }
  0x21   :  { %p3785_p0 = pnand %p3784_p13, %p3778_p10 }
  0x23   :  { %3788 = shalt.err (!%p3785_p0)
}
  0x24   :  { %98 = dma.hbm_to_vmem [thread:$0]  %s4594_s9, 14336, %s93_s27, [#allocation16], %s3904_s29, %s3904_s29, %s3905_s30  }
  0x25   :  { %s3906_s16 = smov [#allocation6]   ;;  %s3907_s18 = smov [#allocation11]  }
  0x26   :  { %s28_s17 = sshll.u32 %s3906_s16, 4  ;;  %s58_s7 = sshll.u32 %s3907_s18, 4  ;;  %s29_s17 = int_to_ptr.vmem [resolvable:$true] %s28_s17  ;;  %s59_s7 = int_to_ptr.vmem [resolvable:$true] %s58_s7 }
  0x27   :  { %s3797_s19 = scalar_lea.vmem %s29_s17, 12288  ;;  %p3802_p2 = scmp.lt.s32.totalorder %s29_s17, %s29_s17 }
  0x28   :  { %p3798_p1 = scmp.ne.s32.totalorder %s29_s17, %s3797_s19  ;;  %p3803_p3 = scmp.lt.s32.totalorder %s3797_s19, %s3797_s19 }
  0x2a   :  { %p3804_p4 = por %p3803_p3, %p3802_p2 }
  0x2c   :  { %p3805_p5 = pnand %p3804_p4, %p3798_p1 }
  0x2e   :  { %3808 = shalt.err (!%p3805_p5)
}
  0x2f   :  { %34 = dma.hbm_to_vmem [thread:$0]  %s4586_s1, 12288, %s29_s17, [#allocation7], %s3900_s20, %s3900_s20, %s3901_s21  }
  0x30   :  { %s3817_s9 = scalar_lea.vmem %s59_s7, 4096  ;;  %p3822_p7 = scmp.lt.s32.totalorder %s59_s7, %s59_s7 }
  0x31   :  { %p3818_p6 = scmp.ne.s32.totalorder %s59_s7, %s3817_s9  ;;  %p3823_p8 = scmp.lt.s32.totalorder %s3817_s9, %s3817_s9 }
  0x33   :  { %p3824_p9 = por %p3823_p8, %p3822_p7 }
  0x35   :  { %p3825_p10 = pnand %p3824_p9, %p3818_p6 }
  0x37   :  { %3828 = shalt.err (!%p3825_p10)
}
  0x38   :  { %64 = dma.hbm_to_vmem [thread:$0]  %s4591_s6, 4096, %s59_s7, [#allocation10], %s3904_s29, %s3904_s29, %s3905_s30  }
  0x39   :  { %s3908_s26 = smov [#allocation14]   ;;  %s3909_s28 = smov [#allocation17]  }
  0x3a   :  { %s83_s27 = sshll.u32 %s3908_s26, 4  ;;  %s105_s1 = sshll.u32 %s3909_s28, 4  ;;  %s84_s27 = int_to_ptr.vmem [resolvable:$true] %s83_s27  ;;  %s106_s1 = int_to_ptr.vmem [resolvable:$true] %s105_s1 }
  0x3b   :  { %s3837_s20 = scalar_lea.vmem %s84_s27, 16  ;;  %s3841_s21 = scalar_lea.vmem %s84_s27, 32 }
  0x3c   :  { %p3838_p11 = scmp.ne.s32.totalorder %s84_s27, %s3837_s20  ;;  %p3842_p12 = scmp.lt.s32.totalorder %s84_s27, %s84_s27 }
  0x3d   :  { %p3843_p13 = scmp.lt.s32.totalorder %s3841_s21, %s3837_s20 }
  0x3f   :  { %p3844_p0 = por %p3843_p13, %p3842_p12 }
  0x41   :  { %p3845_p1 = pnand %p3844_p0, %p3838_p11 }
  0x43   :  { %3848 = shalt.err (!%p3845_p1)
}
  0x44   :  { %86 = dma.hbm_to_vmem [thread:$0]  %s4593_s8, 16, %s84_s27, [#allocation13]  }
  0x45   :  { %s3857_s5 = scalar_lea.vmem %s106_s1, 16  ;;  %s3861_s6 = scalar_lea.vmem %s106_s1, 32 }
  0x46   :  { %p3858_p2 = scmp.ne.s32.totalorder %s106_s1, %s3857_s5  ;;  %p3862_p3 = scmp.lt.s32.totalorder %s106_s1, %s106_s1 }
  0x47   :  { %p3863_p4 = scmp.lt.s32.totalorder %s3861_s6, %s3857_s5 }
  0x49   :  { %p3864_p5 = por %p3863_p4, %p3862_p3 }
  0x4b   :  { %p3865_p6 = pnand %p3864_p5, %p3858_p2 }
  0x4d   :  { %3868 = shalt.err (!%p3865_p6)
}
  0x4e   :  { %108 = dma.hbm_to_vmem [thread:$0]  %s4595_s10, 16, %s106_s1, [#allocation16]  }
  0x4f   :  { %3889 = dma.done.wait [#allocation7], 12288  }
  0x50   :  { %3890 = vsyncadd [#allocation7], 4294955008 }
  0x51   :  { %3891 = dma.done.wait [#allocation10], 16384  }
  0x52   :  { %3892 = vsyncadd [#allocation10], 4294950912 }
  0x53   :  { %3893 = dma.done.wait [#allocation13], 4112  }
  0x54   :  { %3894 = vsyncadd [#allocation13], 4294963184 }
  0x55   :  { %3895 = dma.done.wait [#allocation16], 14352  }
  0x56   :  { %3896 = vsyncadd [#allocation16], 4294952944  ;;  %v3910_v0 = vmov 0.0   ;;  %v210_v1 = vld [vmem:[#allocation6 + $0x1f8] sm:$0xff]  ;;  %v209_v3 = vld [vmem:[#allocation6 + $0x1f0] sm:$0xff] }
  0x57   :  { %889 = vst [vmem:[#allocation2] sm:$0xff] %v3910_v0  ;;  %898 = vst [vmem:[#allocation2 + $0x48] sm:$0xff] %v3910_v0  ;;  %275 = vmatprep.mubr.f32.mxu0 %v3910_v0  ;;  %388 = vmatprep.mubr.f32.mxu1 %v3910_v0  ;;  %v169_v2 = vld [vmem:[#allocation6 + $0xf8] sm:$0xff]  ;;  %v168_v4 = vld [vmem:[#allocation6 + $0xf0] sm:$0xff] }
  0x58   :  { %1179 = vst [vmem:[#allocation3] sm:$0xff] %v3910_v0  ;;  %1188 = vst [vmem:[#allocation3 + $0x48] sm:$0xff] %v3910_v0  ;;  %211 = vmatprep.subr.mxu0 %v210_v1  ;;  %324 = vmatprep.subr.mxu1 %v169_v2  ;;  %v208_v5 = vld [vmem:[#allocation6 + $0x1e8] sm:$0xff]  ;;  %v207_v7 = vld [vmem:[#allocation6 + $0x1e0] sm:$0xff] }
  0x59   :  { %1989 = vst [vmem:[#allocation4 + $0x48] sm:$0xff] %v3910_v0  ;;  %2054 = vst [vmem:[#allocation5 + $0x48] sm:$0xff] %v3910_v0  ;;  %v167_v6 = vld [vmem:[#allocation6 + $0xe8] sm:$0xff]  ;;  %212 = vmatpush1.msra.mxu0 %v209_v3  ;;  %325 = vmatpush1.msra.mxu1 %v168_v4  ;;  %v166_v8 = vld [vmem:[#allocation6 + $0xe0] sm:$0xff] }
  0x5a   :  { %2055 = vst [vmem:[#allocation5 + $0x50] sm:$0xff] %v3910_v0  ;;  %2056 = vst [vmem:[#allocation5 + $0x58] sm:$0xff] %v3910_v0  ;;  %v206_v9 = vld [vmem:[#allocation6 + $0x1d8] sm:$0xff]  ;;  %213 = vmatprep.subr.mxu0 %v208_v5  ;;  %326 = vmatprep.subr.mxu1 %v167_v6  ;;  %v205_v11 = vld [vmem:[#allocation6 + $0x1d0] sm:$0xff] }
  0x5b   :  { %v165_v10 = vld [vmem:[#allocation6 + $0xd8] sm:$0xff]  ;;  %v164_v12 = vld [vmem:[#allocation6 + $0xd0] sm:$0xff]  ;;  %214 = vmatpush1.msra.mxu0 %v207_v7  ;;  %327 = vmatpush1.msra.mxu1 %v166_v8  ;;  %v204_v13 = vld [vmem:[#allocation6 + $0x1c8] sm:$0xff] }
  0x5c   :  { %v163_v14 = vld [vmem:[#allocation6 + $0xc8] sm:$0xff]  ;;  %215 = vmatprep.subr.mxu0 %v206_v9  ;;  %328 = vmatprep.subr.mxu1 %v165_v10  ;;  %v203_v15 = vld [vmem:[#allocation6 + $0x1c0] sm:$0xff]  ;;  %v202_v17 = vld [vmem:[#allocation6 + $0x1b8] sm:$0xff] }
  0x5d   :  { %v162_v16 = vld [vmem:[#allocation6 + $0xc0] sm:$0xff]  ;;  %216 = vmatpush1.msra.mxu0 %v205_v11  ;;  %329 = vmatpush1.msra.mxu1 %v164_v12  ;;  %v161_v18 = vld [vmem:[#allocation6 + $0xb8] sm:$0xff]  ;;  %v201_v19 = vld [vmem:[#allocation6 + $0x1b0] sm:$0xff] }
  0x5e   :  { %217 = vmatprep.subr.mxu0 %v204_v13  ;;  %330 = vmatprep.subr.mxu1 %v163_v14  ;;  %v160_v20 = vld [vmem:[#allocation6 + $0xb0] sm:$0xff]  ;;  %v200_v21 = vld [vmem:[#allocation6 + $0x1a8] sm:$0xff]  ;;  %v199_v23 = vld [vmem:[#allocation6 + $0x1a0] sm:$0xff] }
  0x5f   :  { %218 = vmatpush1.msra.mxu0 %v203_v15  ;;  %331 = vmatpush1.msra.mxu1 %v162_v16  ;;  %v159_v22 = vld [vmem:[#allocation6 + $0xa8] sm:$0xff]  ;;  %v158_v24 = vld [vmem:[#allocation6 + $0xa0] sm:$0xff]  ;;  %v198_v25 = vld [vmem:[#allocation6 + $0x198] sm:$0xff] }
  0x60   :  { %219 = vmatprep.subr.mxu0 %v202_v17  ;;  %332 = vmatprep.subr.mxu1 %v161_v18  ;;  %v157_v26 = vld [vmem:[#allocation6 + $0x98] sm:$0xff]  ;;  %v197_v27 = vld [vmem:[#allocation6 + $0x190] sm:$0xff]  ;;  %v196_v29 = vld [vmem:[#allocation6 + $0x188] sm:$0xff] }
  0x61   :  { %220 = vmatpush1.msra.mxu0 %v201_v19  ;;  %333 = vmatpush1.msra.mxu1 %v160_v20  ;;  %v156_v28 = vld [vmem:[#allocation6 + $0x90] sm:$0xff]  ;;  %v155_v30 = vld [vmem:[#allocation6 + $0x88] sm:$0xff]  ;;  %v195_v31 = vld [vmem:[#allocation6 + $0x180] sm:$0xff] }
  0x62   :  { %221 = vmatprep.subr.mxu0 %v200_v21  ;;  %334 = vmatprep.subr.mxu1 %v159_v22  ;;  %v154_v32 = vld [vmem:[#allocation6 + $0x80] sm:$0xff]  ;;  %v194_v33 = vld [vmem:[#allocation6 + $0x178] sm:$0xff]  ;;  %v193_v35 = vld [vmem:[#allocation6 + $0x170] sm:$0xff] }
  0x63   :  { %222 = vmatpush1.msra.mxu0 %v199_v23  ;;  %335 = vmatpush1.msra.mxu1 %v158_v24  ;;  %v153_v34 = vld [vmem:[#allocation6 + $0x78] sm:$0xff]  ;;  %v152_v36 = vld [vmem:[#allocation6 + $0x70] sm:$0xff]  ;;  %v192_v37 = vld [vmem:[#allocation6 + $0x168] sm:$0xff] }
  0x64   :  { %223 = vmatprep.subr.mxu0 %v198_v25  ;;  %336 = vmatprep.subr.mxu1 %v157_v26  ;;  %v151_v38 = vld [vmem:[#allocation6 + $0x68] sm:$0xff]  ;;  %v191_v39 = vld [vmem:[#allocation6 + $0x160] sm:$0xff]  ;;  %v190_v41 = vld [vmem:[#allocation6 + $0x158] sm:$0xff] }
  0x65   :  { %224 = vmatpush1.msra.mxu0 %v197_v27  ;;  %337 = vmatpush1.msra.mxu1 %v156_v28  ;;  %v150_v40 = vld [vmem:[#allocation6 + $0x60] sm:$0xff]  ;;  %v149_v42 = vld [vmem:[#allocation6 + $0x58] sm:$0xff]  ;;  %v189_v43 = vld [vmem:[#allocation6 + $0x150] sm:$0xff] }
  0x66   :  { %225 = vmatprep.subr.mxu0 %v196_v29  ;;  %338 = vmatprep.subr.mxu1 %v155_v30  ;;  %v148_v44 = vld [vmem:[#allocation6 + $0x50] sm:$0xff]  ;;  %v188_v45 = vld [vmem:[#allocation6 + $0x148] sm:$0xff]  ;;  %v187_v47 = vld [vmem:[#allocation6 + $0x140] sm:$0xff] }
  0x67   :  { %226 = vmatpush1.msra.mxu0 %v195_v31  ;;  %339 = vmatpush1.msra.mxu1 %v154_v32  ;;  %v147_v46 = vld [vmem:[#allocation6 + $0x48] sm:$0xff]  ;;  %v146_v48 = vld [vmem:[#allocation6 + $0x40] sm:$0xff]  ;;  %v186_v49 = vld [vmem:[#allocation6 + $0x138] sm:$0xff] }
  0x68   :  { %227 = vmatprep.subr.mxu0 %v194_v33  ;;  %340 = vmatprep.subr.mxu1 %v153_v34  ;;  %v145_v50 = vld [vmem:[#allocation6 + $0x38] sm:$0xff]  ;;  %v185_v51 = vld [vmem:[#allocation6 + $0x130] sm:$0xff]  ;;  %v184_v53 = vld [vmem:[#allocation6 + $0x128] sm:$0xff] }
  0x69   :  { %228 = vmatpush1.msra.mxu0 %v193_v35  ;;  %341 = vmatpush1.msra.mxu1 %v152_v36  ;;  %v144_v52 = vld [vmem:[#allocation6 + $0x30] sm:$0xff]  ;;  %v143_v54 = vld [vmem:[#allocation6 + $0x28] sm:$0xff]  ;;  %v183_v55 = vld [vmem:[#allocation6 + $0x120] sm:$0xff] }
  0x6a   :  { %229 = vmatprep.subr.mxu0 %v192_v37  ;;  %342 = vmatprep.subr.mxu1 %v151_v38  ;;  %v142_v56 = vld [vmem:[#allocation6 + $0x20] sm:$0xff]  ;;  %v182_v57 = vld [vmem:[#allocation6 + $0x118] sm:$0xff]  ;;  %v181_v59 = vld [vmem:[#allocation6 + $0x110] sm:$0xff] }
  0x6b   :  { %230 = vmatpush1.msra.mxu0 %v191_v39  ;;  %343 = vmatpush1.msra.mxu1 %v150_v40  ;;  %v141_v58 = vld [vmem:[#allocation6 + $0x18] sm:$0xff]  ;;  %v140_v60 = vld [vmem:[#allocation6 + $0x10] sm:$0xff]  ;;  %v180_v61 = vld [vmem:[#allocation6 + $0x108] sm:$0xff] }
  0x6c   :  { %231 = vmatprep.subr.mxu0 %v190_v41  ;;  %344 = vmatprep.subr.mxu1 %v149_v42  ;;  %v139_v62 = vld [vmem:[#allocation6 + $0x8] sm:$0xff]  ;;  %v179_v63 = vld [vmem:[#allocation6 + $0x100] sm:$0xff]  ;;  %v170_v2 = vld [vmem:[%s4585_s0 + $0x8] sm:$0xff] }
  0x6d   :  { %232 = vmatpush1.msra.mxu0 %v189_v43  ;;  %345 = vmatpush1.msra.mxu1 %v148_v44  ;;  %v138_v1 = vld [vmem:[#allocation6] sm:$0xff]  ;;  %v130_v3 = vld [vmem:[%s4585_s0 + $0x7] sm:$0xff]  ;;  %v475_v6 = vld [vmem:[#allocation6 + $0x2e8] sm:$0xff] }
  0x6e   :  { %233 = vmatprep.subr.mxu0 %v188_v45  ;;  %346 = vmatprep.subr.mxu1 %v147_v46  ;;  %v477_v4 = vld [vmem:[#allocation6 + $0x2f8] sm:$0xff]  ;;  %v476_v5 = vld [vmem:[#allocation6 + $0x2f0] sm:$0xff]  ;;  %v474_v7 = vld [vmem:[#allocation6 + $0x2e0] sm:$0xff] }
  0x6f   :  { %234 = vmatpush1.msra.mxu0 %v187_v47  ;;  %347 = vmatpush1.msra.mxu1 %v146_v48  ;;  %v131_v8 = vld [vmem:[%s4585_s0 + $0xf] sm:$0xff]  ;;  %v472_v11 = vld [vmem:[#allocation6 + $0x2d0] sm:$0xff]  ;;  %v471_v12 = vld [vmem:[#allocation6 + $0x2c8] sm:$0xff] }
  0x70   :  { %235 = vmatprep.subr.mxu0 %v186_v49  ;;  %348 = vmatprep.subr.mxu1 %v145_v50  ;;  %v171_v9 = vld [vmem:[%s4585_s0 + $0x10] sm:$0xff]  ;;  %v473_v10 = vld [vmem:[#allocation6 + $0x2d8] sm:$0xff]  ;;  %v172_v15 = vld [vmem:[%s4585_s0 + $0x18] sm:$0xff] }
  0x71   :  { %236 = vmatpush1.msra.mxu0 %v185_v51  ;;  %349 = vmatpush1.msra.mxu1 %v144_v52  ;;  %v470_v13 = vld [vmem:[#allocation6 + $0x2c0] sm:$0xff]  ;;  %v469_v16 = vld [vmem:[#allocation6 + $0x2b8] sm:$0xff]  ;;  %v468_v17 = vld [vmem:[#allocation6 + $0x2b0] sm:$0xff] }
  0x72   :  { %237 = vmatprep.subr.mxu0 %v184_v53  ;;  %350 = vmatprep.subr.mxu1 %v143_v54  ;;  %v132_v14 = vld [vmem:[%s4585_s0 + $0x17] sm:$0xff]  ;;  %v133_v20 = vld [vmem:[%s4585_s0 + $0x1f] sm:$0xff]  ;;  %v465_v22 = vld [vmem:[#allocation6 + $0x298] sm:$0xff] }
  0x73   :  { %238 = vmatpush1.msra.mxu0 %v183_v55  ;;  %351 = vmatpush1.msra.mxu1 %v142_v56  ;;  %v467_v18 = vld [vmem:[#allocation6 + $0x2a8] sm:$0xff]  ;;  %v466_v19 = vld [vmem:[#allocation6 + $0x2a0] sm:$0xff]  ;;  %v173_v21 = vld [vmem:[%s4585_s0 + $0x20] sm:$0xff] }
  0x74   :  { %239 = vmatprep.subr.mxu0 %v182_v57  ;;  %352 = vmatprep.subr.mxu1 %v141_v58  ;;  %v464_v23 = vld [vmem:[#allocation6 + $0x290] sm:$0xff]  ;;  %v463_v24 = vld [vmem:[#allocation6 + $0x288] sm:$0xff]  ;;  %v462_v25 = vld [vmem:[#allocation6 + $0x280] sm:$0xff] }
  0x75   :  { %240 = vmatpush1.msra.mxu0 %v181_v59  ;;  %353 = vmatpush1.msra.mxu1 %v140_v60  ;;  %v134_v26 = vld [vmem:[%s4585_s0 + $0x27] sm:$0xff]  ;;  %v459_v30 = vld [vmem:[#allocation6 + $0x268] sm:$0xff]  ;;  %v458_v31 = vld [vmem:[#allocation6 + $0x260] sm:$0xff] }
  0x76   :  { %241 = vmatprep.subr.mxu0 %v180_v61  ;;  %354 = vmatprep.subr.mxu1 %v139_v62  ;;  %v174_v27 = vld [vmem:[%s4585_s0 + $0x28] sm:$0xff]  ;;  %v460_v29 = vld [vmem:[#allocation6 + $0x270] sm:$0xff]  ;;  %v175_v33 = vld [vmem:[%s4585_s0 + $0x30] sm:$0xff] }
  0x77   :  { %242 = vmatpush1.msra.mxu0 %v179_v63  ;;  %355 = vmatpush1.msra.mxu1 %v138_v1  ;;  %v461_v28 = vld [vmem:[#allocation6 + $0x278] sm:$0xff]  ;;  %v456_v35 = vld [vmem:[#allocation6 + $0x250] sm:$0xff]  ;;  %v455_v36 = vld [vmem:[#allocation6 + $0x248] sm:$0xff] }
  0x78   :  { %276 = vmatmul.mubr.f32.vlgmr.msra.gmra.mxu0 %v170_v2  ;;  %389 = vmatmul.mubr.f32.vlgmr.msra.gmra.mxu1 %v130_v3  ;;  %v135_v32 = vld [vmem:[%s4585_s0 + $0x2f] sm:$0xff]  ;;  %v136_v38 = vld [vmem:[%s4585_s0 + $0x37] sm:$0xff]  ;;  %v452_v41 = vld [vmem:[#allocation6 + $0x230] sm:$0xff] }
  0x79   :  { %478 = vmatprep.subr.mxu0 %v477_v4  ;;  %281 = vmatprep.mubr.f32.mxu0 %v3910_v0  ;;  %v457_v34 = vld [vmem:[#allocation6 + $0x258] sm:$0xff]  ;;  %v454_v37 = vld [vmem:[#allocation6 + $0x240] sm:$0xff]  ;;  %v176_v39 = vld [vmem:[%s4585_s0 + $0x38] sm:$0xff] }
  0x7a   :  { %479 = vmatpush1.msra.mxu0 %v476_v5  ;;  %394 = vmatprep.mubr.f32.mxu1 %v3910_v0  ;;  %v453_v40 = vld [vmem:[#allocation6 + $0x238] sm:$0xff]  ;;  %v451_v42 = vld [vmem:[#allocation6 + $0x228] sm:$0xff]  ;;  %v450_v43 = vld [vmem:[#allocation6 + $0x220] sm:$0xff] }
  0x7b   :  { %480 = vmatprep.subr.mxu0 %v475_v6  ;;  %v137_v44 = vld [vmem:[%s4585_s0 + $0x3f] sm:$0xff]  ;;  %v449_v46 = vld [vmem:[#allocation6 + $0x218] sm:$0xff]  ;;  %v446_v49 = vld [vmem:[#allocation6 + $0x200] sm:$0xff] }
  0x7c   :  { %481 = vmatpush1.msra.mxu0 %v474_v7  ;;  %395 = vmatmul.mubr.f32.gmra.mxu1 %v131_v8  ;;  %v177_v45 = vld [vmem:[%s4585_s0 + $0x40] sm:$0xff]  ;;  %v447_v48 = vld [vmem:[#allocation6 + $0x208] sm:$0xff]  ;;  %v437_v50 = vld [vmem:[%s4585_s0 + $0x9] sm:$0xff] }
  0x7d   :  { %282 = vmatmul.mubr.f32.gmra.mxu0 %v171_v9  ;;  %482 = vmatprep.subr.mxu0 %v473_v10  ;;  %v448_v47 = vld [vmem:[#allocation6 + $0x210] sm:$0xff]  ;;  %v438_v51 = vld [vmem:[%s4585_s0 + $0x11] sm:$0xff]  ;;  %v441_v54 = vld [vmem:[%s4585_s0 + $0x29] sm:$0xff] }
  0x7e   :  { %483 = vmatpush1.msra.mxu0 %v472_v11  ;;  %287 = vmatprep.mubr.f32.mxu0 %v3910_v0  ;;  %v439_v52 = vld [vmem:[%s4585_s0 + $0x19] sm:$0xff]  ;;  %v440_v53 = vld [vmem:[%s4585_s0 + $0x21] sm:$0xff]  ;;  %v442_v55 = vld [vmem:[%s4585_s0 + $0x31] sm:$0xff] }
  0x7f   :  { %484 = vmatprep.subr.mxu0 %v471_v12  ;;  %400 = vmatprep.mubr.f32.mxu1 %v3910_v0  ;;  %v443_v56 = vld [vmem:[%s4585_s0 + $0x39] sm:$0xff]  ;;  %v444_v57 = vld [vmem:[%s4585_s0 + $0x41] sm:$0xff]  ;;  %v637_v61 = vld [vmem:[%s4587_s2 + $0xf0] sm:$0xff] }
  0x80   :  { %485 = vmatpush1.msra.mxu0 %v470_v13  ;;  %401 = vmatmul.mubr.f32.gmra.mxu1 %v132_v14  ;;  %v638_v58 = vld [vmem:[%s4587_s2 + $0xf8] sm:$0xff]  ;;  %v774_v62 = vld [vmem:[%s4588_s3 + $0xf0] sm:$0xff]  ;;  %v636_v2 = vld [vmem:[%s4587_s2 + $0xe8] sm:$0xff] }
  0x81   :  { %288 = vmatmul.mubr.f32.gmra.mxu0 %v172_v15  ;;  %486 = vmatprep.subr.mxu0 %v469_v16  ;;  %v775_v59 = vld [vmem:[%s4588_s3 + $0xf8] sm:$0xff]  ;;  %v621_v63 = vld [vmem:[%s4587_s2 + $0x70] sm:$0xff]  ;;  %v773_v3 = vld [vmem:[%s4588_s3 + $0xe8] sm:$0xff] }
  0x82   :  { %487 = vmatpush1.msra.mxu0 %v468_v17  ;;  %293 = vmatprep.mubr.f32.mxu0 %v3910_v0  ;;  %v622_v60 = vld [vmem:[%s4587_s2 + $0x78] sm:$0xff]  ;;  %v758_v1 = vld [vmem:[%s4588_s3 + $0x70] sm:$0xff]  ;;  %v620_v4 = vld [vmem:[%s4587_s2 + $0x68] sm:$0xff] }
  0x83   :  { %488 = vmatprep.subr.mxu0 %v467_v18  ;;  %406 = vmatprep.mubr.f32.mxu1 %v3910_v0  ;;  %v757_v5 = vld [vmem:[%s4588_s3 + $0x68] sm:$0xff]  ;;  %v635_v6 = vld [vmem:[%s4587_s2 + $0xe0] sm:$0xff]  ;;  %v634_v10 = vld [vmem:[%s4587_s2 + $0xd8] sm:$0xff] }
  0x84   :  { %489 = vmatpush1.msra.mxu0 %v466_v19  ;;  %407 = vmatmul.mubr.f32.gmra.mxu1 %v133_v20  ;;  %v772_v7 = vld [vmem:[%s4588_s3 + $0xe0] sm:$0xff]  ;;  %v771_v11 = vld [vmem:[%s4588_s3 + $0xd8] sm:$0xff]  ;;  %v633_v14 = vld [vmem:[%s4587_s2 + $0xd0] sm:$0xff] }
  0x85   :  { %294 = vmatmul.mubr.f32.gmra.mxu0 %v173_v21  ;;  %490 = vmatprep.subr.mxu0 %v465_v22  ;;  %v619_v8 = vld [vmem:[%s4587_s2 + $0x60] sm:$0xff]  ;;  %v618_v12 = vld [vmem:[%s4587_s2 + $0x58] sm:$0xff]  ;;  %v770_v15 = vld [vmem:[%s4588_s3 + $0xd0] sm:$0xff] }
  0x86   :  { %491 = vmatpush1.msra.mxu0 %v464_v23  ;;  %299 = vmatprep.mubr.f32.mxu0 %v3910_v0  ;;  %v756_v9 = vld [vmem:[%s4588_s3 + $0x60] sm:$0xff]  ;;  %v755_v13 = vld [vmem:[%s4588_s3 + $0x58] sm:$0xff]  ;;  %v617_v16 = vld [vmem:[%s4587_s2 + $0x50] sm:$0xff] }
  0x87   :  { %492 = vmatprep.subr.mxu0 %v463_v24  ;;  %412 = vmatprep.mubr.f32.mxu1 %v3910_v0  ;;  %v754_v17 = vld [vmem:[%s4588_s3 + $0x50] sm:$0xff]  ;;  %v632_v18 = vld [vmem:[%s4587_s2 + $0xc8] sm:$0xff]  ;;  %v631_v22 = vld [vmem:[%s4587_s2 + $0xc0] sm:$0xff] }
  0x88   :  { %493 = vmatpush1.msra.mxu0 %v462_v25  ;;  %413 = vmatmul.mubr.f32.gmra.mxu1 %v134_v26  ;;  %v769_v19 = vld [vmem:[%s4588_s3 + $0xc8] sm:$0xff]  ;;  %v768_v23 = vld [vmem:[%s4588_s3 + $0xc0] sm:$0xff]  ;;  %v630_v26 = vld [vmem:[%s4587_s2 + $0xb8] sm:$0xff] }
  0x89   :  { %300 = vmatmul.mubr.f32.gmra.mxu0 %v174_v27  ;;  %494 = vmatprep.subr.mxu0 %v461_v28  ;;  %v616_v20 = vld [vmem:[%s4587_s2 + $0x48] sm:$0xff]  ;;  %v615_v24 = vld [vmem:[%s4587_s2 + $0x40] sm:$0xff]  ;;  %v767_v27 = vld [vmem:[%s4588_s3 + $0xb8] sm:$0xff] }
  0x8a   :  { %495 = vmatpush1.msra.mxu0 %v460_v29  ;;  %305 = vmatprep.mubr.f32.mxu0 %v3910_v0  ;;  %v753_v21 = vld [vmem:[%s4588_s3 + $0x48] sm:$0xff]  ;;  %v752_v25 = vld [vmem:[%s4588_s3 + $0x40] sm:$0xff]  ;;  %v614_v28 = vld [vmem:[%s4587_s2 + $0x38] sm:$0xff] }
  0x8b   :  { %496 = vmatprep.subr.mxu0 %v459_v30  ;;  %418 = vmatprep.mubr.f32.mxu1 %v3910_v0  ;;  %v751_v29 = vld [vmem:[%s4588_s3 + $0x38] sm:$0xff]  ;;  %v629_v30 = vld [vmem:[%s4587_s2 + $0xb0] sm:$0xff] }
  0x8c   :  { %497 = vmatpush1.msra.mxu0 %v458_v31  ;;  %419 = vmatmul.mubr.f32.gmra.mxu1 %v135_v32  ;;  %v766_v31 = vld [vmem:[%s4588_s3 + $0xb0] sm:$0xff] }
  0x8d   :  { %306 = vmatmul.mubr.f32.gmra.mxu0 %v175_v33  ;;  %498 = vmatprep.subr.mxu0 %v457_v34  ;;  %v613_v32 = vld [vmem:[%s4587_s2 + $0x30] sm:$0xff]  ;;  %v628_v34 = vld [vmem:[%s4587_s2 + $0xa8] sm:$0xff] }
  0x8e   :  { %499 = vmatpush1.msra.mxu0 %v456_v35  ;;  %311 = vmatprep.mubr.f32.mxu0 %v3910_v0  ;;  %v750_v33 = vld [vmem:[%s4588_s3 + $0x30] sm:$0xff]  ;;  %v765_v35 = vld [vmem:[%s4588_s3 + $0xa8] sm:$0xff] }
  0x8f   :  { %500 = vmatprep.subr.mxu0 %v455_v36  ;;  %424 = vmatprep.mubr.f32.mxu1 %v3910_v0  ;;  %v612_v36 = vld [vmem:[%s4587_s2 + $0x28] sm:$0xff] }
  0x90   :  { %501 = vmatpush1.msra.mxu0 %v454_v37  ;;  %425 = vmatmul.mubr.f32.gmra.mxu1 %v136_v38  ;;  %v749_v37 = vld [vmem:[%s4588_s3 + $0x28] sm:$0xff]  ;;  %v627_v38 = vld [vmem:[%s4587_s2 + $0xa0] sm:$0xff] }
  0x91   :  { %312 = vmatmul.mubr.f32.gmra.mxu0 %v176_v39  ;;  %502 = vmatprep.subr.mxu0 %v453_v40  ;;  %v764_v39 = vld [vmem:[%s4588_s3 + $0xa0] sm:$0xff] }
  0x92   :  { %503 = vmatpush1.msra.mxu0 %v452_v41  ;;  %317 = vmatprep.mubr.f32.mxu0 %v3910_v0  ;;  %v611_v40 = vld [vmem:[%s4587_s2 + $0x20] sm:$0xff] }
  0x93   :  { %504 = vmatprep.subr.mxu0 %v451_v42  ;;  %430 = vmatprep.mubr.f32.mxu1 %v3910_v0  ;;  %v748_v41 = vld [vmem:[%s4588_s3 + $0x20] sm:$0xff]  ;;  %v626_v42 = vld [vmem:[%s4587_s2 + $0x98] sm:$0xff] }
  0x94   :  { %505 = vmatpush1.msra.mxu0 %v450_v43  ;;  %431 = vmatmul.mubr.f32.gmra.mxu1 %v137_v44  ;;  %v763_v43 = vld [vmem:[%s4588_s3 + $0x98] sm:$0xff] }
  0x95   :  { %318 = vmatmul.mubr.f32.gmra.mxu0 %v177_v45  ;;  %506 = vmatprep.subr.mxu0 %v449_v46  ;;  %v610_v44 = vld [vmem:[%s4587_s2 + $0x18] sm:$0xff]  ;;  %v625_v46 = vld [vmem:[%s4587_s2 + $0x90] sm:$0xff] }
  0x96   :  { %507 = vmatpush1.msra.mxu0 %v448_v47  ;;  %542 = vmatprep.mubr.f32.mxu0 %v3910_v0  ;;  %v747_v45 = vld [vmem:[%s4588_s3 + $0x18] sm:$0xff]  ;;  %v762_v47 = vld [vmem:[%s4588_s3 + $0x90] sm:$0xff] }
  0x97   :  { %508 = vmatprep.subr.mxu0 %v447_v48  ;;  %2974 = vmatprep.subr.mxu1 %v638_v58  ;;  %v609_v48 = vld [vmem:[%s4587_s2 + $0x10] sm:$0xff] }
  0x98   :  { %509 = vmatpush1.msra.mxu0 %v446_v49  ;;  %2975 = vmatpush3.msra.mxu1 %v622_v60  ;;  %v746_v49 = vld [vmem:[%s4588_s3 + $0x10] sm:$0xff] }
  0x99   :  { %543 = vmatmul.mubr.f32.vlgmr.msra.gmra.mxu0 %v437_v50  ;;  %3030 = vmatprep.subr.mxu0 %v775_v59  ;;  %v624_v50 = vld [vmem:[%s4587_s2 + $0x88] sm:$0xff] }
  0x9a   :  { %548 = vmatprep.mubr.f32.mxu0 %v3910_v0  ;;  %2976 = vmatprep.subr.mxu1 %v637_v61 }
  0x9b   :  { %2977 = vmatpush3.msra.mxu1 %v621_v63 }
  0x9c   :  { %2978 = vmatprep.subr.mxu1 %v636_v2 }
  0x9d   :  { %549 = vmatmul.mubr.f32.gmra.mxu0 %v438_v51  ;;  %2979 = vmatpush3.msra.mxu1 %v620_v4  ;;  %v761_v51 = vld [vmem:[%s4588_s3 + $0x88] sm:$0xff] }
  0x9e   :  { %554 = vmatprep.mubr.f32.mxu0 %v3910_v0  ;;  %2980 = vmatprep.subr.mxu1 %v635_v6 }
  0x9f   :  { %2981 = vmatpush3.msra.mxu1 %v619_v8 }
  0xa0   :  { %2982 = vmatprep.subr.mxu1 %v634_v10 }
  0xa1   :  { %555 = vmatmul.mubr.f32.gmra.mxu0 %v439_v52  ;;  %2983 = vmatpush3.msra.mxu1 %v618_v12  ;;  %v608_v52 = vld [vmem:[%s4587_s2 + $0x8] sm:$0xff] }
  0xa2   :  { %560 = vmatprep.mubr.f32.mxu0 %v3910_v0  ;;  %2984 = vmatprep.subr.mxu1 %v633_v14 }
  0xa3   :  { %2985 = vmatpush3.msra.mxu1 %v617_v16 }
  0xa4   :  { %2986 = vmatprep.subr.mxu1 %v632_v18 }
  0xa5   :  { %561 = vmatmul.mubr.f32.gmra.mxu0 %v440_v53  ;;  %2987 = vmatpush3.msra.mxu1 %v616_v20  ;;  %v745_v53 = vld [vmem:[%s4588_s3 + $0x8] sm:$0xff] }
  0xa6   :  { %566 = vmatprep.mubr.f32.mxu0 %v3910_v0  ;;  %2988 = vmatprep.subr.mxu1 %v631_v22 }
  0xa7   :  { %2989 = vmatpush3.msra.mxu1 %v615_v24 }
  0xa8   :  { %2990 = vmatprep.subr.mxu1 %v630_v26 }
  0xa9   :  { %567 = vmatmul.mubr.f32.gmra.mxu0 %v441_v54  ;;  %2991 = vmatpush3.msra.mxu1 %v614_v28  ;;  %v623_v54 = vld [vmem:[%s4587_s2 + $0x80] sm:$0xff] }
  0xaa   :  { %572 = vmatprep.mubr.f32.mxu0 %v3910_v0  ;;  %2992 = vmatprep.subr.mxu1 %v629_v30 }
  0xab   :  { %2993 = vmatpush3.msra.mxu1 %v613_v32 }
  0xac   :  { %2994 = vmatprep.subr.mxu1 %v628_v34 }
  0xad   :  { %573 = vmatmul.mubr.f32.gmra.mxu0 %v442_v55  ;;  %2995 = vmatpush3.msra.mxu1 %v612_v36  ;;  %v760_v55 = vld [vmem:[%s4588_s3 + $0x80] sm:$0xff] }
  0xae   :  { %578 = vmatprep.mubr.f32.mxu0 %v3910_v0  ;;  %2996 = vmatprep.subr.mxu1 %v627_v38 }
  0xaf   :  { %2997 = vmatpush3.msra.mxu1 %v611_v40 }
  0xb0   :  { %2998 = vmatprep.subr.mxu1 %v626_v42 }
  0xb1   :  { %579 = vmatmul.mubr.f32.gmra.mxu0 %v443_v56  ;;  %2999 = vmatpush3.msra.mxu1 %v610_v44  ;;  %v607_v56 = vld [vmem:[%s4587_s2] sm:$0xff] }
  0xb2   :  { %584 = vmatprep.mubr.f32.mxu0 %v3910_v0  ;;  %v759_v0 = vld [vmem:[%s4588_s3 + $0x78] sm:$0xff]  ;;  %3000 = vmatprep.subr.mxu1 %v625_v46 }
  0xb3   :  { %3031 = vmatpush3.msra.mxu0 %v759_v0  ;;  %3001 = vmatpush3.msra.mxu1 %v609_v48 }
  0xb4   :  { %3032 = vmatprep.subr.mxu0 %v774_v62  ;;  %3002 = vmatprep.subr.mxu1 %v624_v50 }
  0xb5   :  { %585 = vmatmul.mubr.f32.gmra.mxu0 %v444_v57  ;;  %3003 = vmatpush3.msra.mxu1 %v608_v52  ;;  %v744_v57 = vld [vmem:[%s4588_s3] sm:$0xff] }
  0xb6   :  { %3033 = vmatpush3.msra.mxu0 %v758_v1  ;;  %3004 = vmatprep.subr.mxu1 %v623_v54 }
  0xb7   :  { %3034 = vmatprep.subr.mxu0 %v773_v3  ;;  %3005 = vmatpush3.msra.mxu1 %v607_v56 }
  0xb8   :  { %3035 = vmatpush3.msra.mxu0 %v757_v5 }
  0xb9   :  { %3036 = vmatprep.subr.mxu0 %v772_v7 }
  0xba   :  { %3037 = vmatpush3.msra.mxu0 %v756_v9 }
  0xbb   :  { %3038 = vmatprep.subr.mxu0 %v771_v11 }
  0xbc   :  { %3039 = vmatpush3.msra.mxu0 %v755_v13 }
  0xbd   :  { %3040 = vmatprep.subr.mxu0 %v770_v15 }
  0xbe   :  { %3041 = vmatpush3.msra.mxu0 %v754_v17 }
  0xbf   :  { %3042 = vmatprep.subr.mxu0 %v769_v19 }
  0xc0   :  { %3043 = vmatpush3.msra.mxu0 %v753_v21 }
  0xc1   :  { %3044 = vmatprep.subr.mxu0 %v768_v23 }
  0xc2   :  { %3045 = vmatpush3.msra.mxu0 %v752_v25 }
  0xc3   :  { %3046 = vmatprep.subr.mxu0 %v767_v27 }
  0xc4   :  { %3047 = vmatpush3.msra.mxu0 %v751_v29 }
  0xc5   :  { %3048 = vmatprep.subr.mxu0 %v766_v31 }
  0xc6   :  { %3049 = vmatpush3.msra.mxu0 %v750_v33 }
  0xc7   :  { %3050 = vmatprep.subr.mxu0 %v765_v35 }
  0xc8   :  { %3051 = vmatpush3.msra.mxu0 %v749_v37 }
  0xc9   :  { %3052 = vmatprep.subr.mxu0 %v764_v39 }
  0xca   :  { %3053 = vmatpush3.msra.mxu0 %v748_v41 }
  0xcb   :  { %3054 = vmatprep.subr.mxu0 %v763_v43 }
  0xcc   :  { %3055 = vmatpush3.msra.mxu0 %v747_v45 }
  0xcd   :  { %3056 = vmatprep.subr.mxu0 %v762_v47 }
  0xce   :  { %3057 = vmatpush3.msra.mxu0 %v746_v49 }
  0xcf   :  { %3058 = vmatprep.subr.mxu0 %v761_v51 }
  0xd0   :  { %3059 = vmatpush3.msra.mxu0 %v745_v53 }
  0xd1   :  { %3060 = vmatprep.subr.mxu0 %v760_v55 }
  0xd2   :  { %3061 = vmatpush3.msra.mxu0 %v744_v57 }
 0x138   :  { %v277_v58 = vpop.f32.mrf.mxu0  ;;  %v390_v59 = vpop.f32.mrf.mxu1 }
 0x139   :  { %v391_v21 = vadd.f32 %v390_v59, %v277_v58 }
 0x13a   :  { %v279_v60 = vpop.f32.mrf.mxu0  ;;  %v392_v0 = vpop.f32.mrf.mxu1 }
 0x13b   :  { %v393_v20 = vadd.f32 %v392_v0, %v279_v60 }
 0x13c   :  { %v396_v62 = vpop.f32.mrf.mxu1 }
 0x13d   :  { %v283_v61 = vpop.f32.mrf.mxu0 }
 0x13e   :  { %v398_v2 = vpop.f32.mrf.mxu1  ;;  %v397_v28 = vadd.f32 %v396_v62, %v283_v61 }
 0x13f   :  { %v285_v63 = vpop.f32.mrf.mxu0 }
 0x140   :  { %v402_v5 = vpop.f32.mrf.mxu1  ;;  %v399_v27 = vadd.f32 %v398_v2, %v285_v63 }
 0x141   :  { %v289_v1 = vpop.f32.mrf.mxu0 }
 0x142   :  { %v404_v8 = vpop.f32.mrf.mxu1  ;;  %v403_v35 = vadd.f32 %v402_v5, %v289_v1 }
 0x143   :  { %v291_v3 = vpop.f32.mrf.mxu0 }
 0x144   :  { %v408_v11 = vpop.f32.mrf.mxu1  ;;  %v405_v34 = vadd.f32 %v404_v8, %v291_v3 }
 0x145   :  { %v295_v4 = vpop.f32.mrf.mxu0 }
 0x146   :  { %v410_v14 = vpop.f32.mrf.mxu1  ;;  %v409_v42 = vadd.f32 %v408_v11, %v295_v4  ;;  %v1301_v11 = vld [vmem:[#allocation9 + $0x1f8] sm:$0xff] }
 0x147   :  { %v297_v6 = vpop.f32.mrf.mxu0  ;;  %1302 = vmatprep.subr.mxu1 %v1301_v11  ;;  %v1230_v11 = vld [vmem:[#allocation9 + $0x8] sm:$0xff] }
 0x148   :  { %v414_v17 = vpop.f32.mrf.mxu1  ;;  %v411_v41 = vadd.f32 %v410_v14, %v297_v6  ;;  %v1298_v14 = vld [vmem:[#allocation9 + $0x1e0] sm:$0xff] }
 0x149   :  { %v301_v7 = vpop.f32.mrf.mxu0 }
 0x14a   :  { %v416_v22 = vpop.f32.mrf.mxu1  ;;  %v415_v49 = vadd.f32 %v414_v17, %v301_v7  ;;  %v1295_v17 = vld [vmem:[#allocation9 + $0x1c8] sm:$0xff] }
 0x14b   :  { %v303_v9 = vpop.f32.mrf.mxu0 }
 0x14c   :  { %v420_v29 = vpop.f32.mrf.mxu1  ;;  %v417_v48 = vadd.f32 %v416_v22, %v303_v9  ;;  %v1292_v22 = vld [vmem:[#allocation9 + $0x1b0] sm:$0xff] }
 0x14d   :  { %v4304_v10 = vpop.f32.mrf.mxu0 }
 0x14e   :  { %v422_v36 = vpop.f32.mrf.mxu1  ;;  %v421_v56 = vadd.f32 %v420_v29, %v4304_v10  ;;  %v4319_v10 = vld [vmem:[#allocation2] sm:$0xff] }
 0x14f   :  { %v309_v12 = vpop.f32.mrf.mxu0  ;;  %v1255_v29 = vld [vmem:[#allocation9 + $0xd0] sm:$0xff] }
 0x150   :  { %v426_v43 = vpop.f32.mrf.mxu1  ;;  %v423_v55 = vadd.f32 %v422_v36, %v309_v12  ;;  %v1300_v12 = vld [vmem:[#allocation9 + $0x1f0] sm:$0xff]  ;;  %v1285_v36 = vld [vmem:[#allocation9 + $0x178] sm:$0xff] }
 0x151   :  { %v4306_v13 = vpop.f32.mrf.mxu0 }
 0x152   :  { %v428_v50 = vpop.f32.mrf.mxu1  ;;  %v427_v62 = vadd.f32 %v426_v43, %v4306_v13  ;;  %v1299_v13 = vld [vmem:[#allocation9 + $0x1e8] sm:$0xff]  ;;  %v1248_v43 = vld [vmem:[#allocation9 + $0x98] sm:$0xff] }
 0x153   :  { %v4308_v15 = vpop.f32.mrf.mxu0 }
 0x154   :  { %v432_v57 = vpop.f32.mrf.mxu1  ;;  %v429_v61 = vadd.f32 %v428_v50, %v4308_v15  ;;  %v1297_v15 = vld [vmem:[#allocation9 + $0x1d8] sm:$0xff]  ;;  %v1278_v50 = vld [vmem:[#allocation9 + $0x140] sm:$0xff] }
 0x155   :  { %v4310_v16 = vpop.f32.mrf.mxu0 }
 0x156   :  { %v434_v63 = vpop.f32.mrf.mxu1  ;;  %v433_v6 = vadd.f32 %v432_v57, %v4310_v16  ;;  %v1296_v16 = vld [vmem:[#allocation9 + $0x1d0] sm:$0xff]  ;;  %v1241_v57 = vld [vmem:[#allocation9 + $0x60] sm:$0xff] }
 0x157   :  { %v4312_v18 = vpop.f32.mrf.mxu0 }
 0x158   :  { %v435_v5 = vadd.f32 %v434_v63, %v4312_v18  ;;  %v1294_v18 = vld [vmem:[#allocation9 + $0x1c0] sm:$0xff]  ;;  %v1271_v63 = vld [vmem:[#allocation9 + $0x108] sm:$0xff] }
 0x159   :  { %v544_v19 = vpop.f32.mrf.mxu0 }
 0x15a   :  { %v591_v25 = vadd.f32 %v544_v19, %v391_v21  ;;  %v1260_v19 = vld [vmem:[#allocation9 + $0xf8] sm:$0xff]  ;;  %v1259_v21 = vld [vmem:[#allocation9 + $0xf0] sm:$0xff] }
 0x15b   :  { %v546_v23 = vpop.f32.mrf.mxu0  ;;  %1415 = vmatprep.subr.mxu0 %v1260_v19 }
 0x15c   :  { %v592_v24 = vadd.f32 %v546_v23, %v393_v20  ;;  %v1293_v20 = vld [vmem:[#allocation9 + $0x1b8] sm:$0xff]  ;;  %v1258_v23 = vld [vmem:[#allocation9 + $0xe8] sm:$0xff] }
 0x15d   :  { %v550_v26 = vpop.f32.mrf.mxu0 }
 0x15e   :  { %703 = vmatprep.mubr.f32.mxu1 %v592_v24  ;;  %840 = vmatprep.mubr.f32.mxu0 %v592_v24  ;;  %v593_v32 = vadd.f32 %v550_v26, %v397_v28  ;;  %v1291_v24 = vld [vmem:[#allocation9 + $0x1a8] sm:$0xff]  ;;  %v1290_v26 = vld [vmem:[#allocation9 + $0x1a0] sm:$0xff]  ;;  %v1289_v28 = vld [vmem:[#allocation9 + $0x198] sm:$0xff] }
 0x15f   :  { %v552_v30 = vpop.f32.mrf.mxu0  ;;  %704 = vmatmul.mubr.f32.vlgmr.msra.gmra.mxu1 %v591_v25  ;;  %841 = vmatmul.mubr.f32.vlgmr.msra.gmra.mxu0 %v591_v25  ;;  %v1257_v25 = vld [vmem:[#allocation9 + $0xe0] sm:$0xff] }
 0x160   :  { %v594_v31 = vadd.f32 %v552_v30, %v399_v27  ;;  %1303 = vmatpush1.msra.mxu1 %v1300_v12  ;;  %1416 = vmatpush1.msra.mxu0 %v1259_v21  ;;  %v1256_v27 = vld [vmem:[#allocation9 + $0xd8] sm:$0xff]  ;;  %v1288_v30 = vld [vmem:[#allocation9 + $0x190] sm:$0xff]  ;;  %v1229_v12 = vld [vmem:[#allocation9] sm:$0xff] }
 0x161   :  { %v556_v33 = vpop.f32.mrf.mxu0  ;;  %1304 = vmatprep.subr.mxu1 %v1299_v13  ;;  %1417 = vmatprep.subr.mxu0 %v1258_v23 }
 0x162   :  { %708 = vmatprep.mubr.f32.mxu1 %v594_v31  ;;  %845 = vmatprep.mubr.f32.mxu0 %v594_v31  ;;  %v595_v39 = vadd.f32 %v556_v33, %v403_v35  ;;  %v1254_v31 = vld [vmem:[#allocation9 + $0xc8] sm:$0xff]  ;;  %v1253_v33 = vld [vmem:[#allocation9 + $0xc0] sm:$0xff]  ;;  %v1252_v35 = vld [vmem:[#allocation9 + $0xb8] sm:$0xff] }
 0x163   :  { %v558_v37 = vpop.f32.mrf.mxu0  ;;  %709 = vmatmul.mubr.f32.gmra.mxu1 %v593_v32  ;;  %846 = vmatmul.mubr.f32.gmra.mxu0 %v593_v32  ;;  %v1287_v32 = vld [vmem:[#allocation9 + $0x188] sm:$0xff] }
 0x164   :  { %v596_v38 = vadd.f32 %v558_v37, %v405_v34  ;;  %1305 = vmatpush1.msra.mxu1 %v1298_v14  ;;  %1418 = vmatpush1.msra.mxu0 %v1257_v25  ;;  %v1286_v34 = vld [vmem:[#allocation9 + $0x180] sm:$0xff]  ;;  %v1251_v37 = vld [vmem:[#allocation9 + $0xb0] sm:$0xff] }
 0x165   :  { %v562_v40 = vpop.f32.mrf.mxu0  ;;  %1306 = vmatprep.subr.mxu1 %v1297_v15  ;;  %1419 = vmatprep.subr.mxu0 %v1256_v27 }
 0x166   :  { %713 = vmatprep.mubr.f32.mxu1 %v596_v38  ;;  %850 = vmatprep.mubr.f32.mxu0 %v596_v38  ;;  %v597_v46 = vadd.f32 %v562_v40, %v409_v42  ;;  %v1284_v38 = vld [vmem:[#allocation9 + $0x170] sm:$0xff]  ;;  %v1283_v40 = vld [vmem:[#allocation9 + $0x168] sm:$0xff]  ;;  %v1282_v42 = vld [vmem:[#allocation9 + $0x160] sm:$0xff] }
 0x167   :  { %v564_v44 = vpop.f32.mrf.mxu0  ;;  %714 = vmatmul.mubr.f32.gmra.mxu1 %v595_v39  ;;  %851 = vmatmul.mubr.f32.gmra.mxu0 %v595_v39  ;;  %v1250_v39 = vld [vmem:[#allocation9 + $0xa8] sm:$0xff] }
 0x168   :  { %v598_v45 = vadd.f32 %v564_v44, %v411_v41  ;;  %1307 = vmatpush1.msra.mxu1 %v1296_v16  ;;  %1420 = vmatpush1.msra.mxu0 %v1255_v29  ;;  %v1249_v41 = vld [vmem:[#allocation9 + $0xa0] sm:$0xff]  ;;  %v1281_v44 = vld [vmem:[#allocation9 + $0x158] sm:$0xff] }
 0x169   :  { %v568_v47 = vpop.f32.mrf.mxu0  ;;  %1308 = vmatprep.subr.mxu1 %v1295_v17  ;;  %1421 = vmatprep.subr.mxu0 %v1254_v31 }
 0x16a   :  { %718 = vmatprep.mubr.f32.mxu1 %v598_v45  ;;  %855 = vmatprep.mubr.f32.mxu0 %v598_v45  ;;  %v599_v53 = vadd.f32 %v568_v47, %v415_v49  ;;  %v1247_v45 = vld [vmem:[#allocation9 + $0x90] sm:$0xff]  ;;  %v1246_v47 = vld [vmem:[#allocation9 + $0x88] sm:$0xff]  ;;  %v1245_v49 = vld [vmem:[#allocation9 + $0x80] sm:$0xff] }
 0x16b   :  { %v570_v51 = vpop.f32.mrf.mxu0  ;;  %719 = vmatmul.mubr.f32.gmra.mxu1 %v597_v46  ;;  %856 = vmatmul.mubr.f32.gmra.mxu0 %v597_v46  ;;  %v1280_v46 = vld [vmem:[#allocation9 + $0x150] sm:$0xff] }
 0x16c   :  { %v600_v52 = vadd.f32 %v570_v51, %v417_v48  ;;  %1309 = vmatpush1.msra.mxu1 %v1294_v18  ;;  %1422 = vmatpush1.msra.mxu0 %v1253_v33  ;;  %v1279_v48 = vld [vmem:[#allocation9 + $0x148] sm:$0xff]  ;;  %v1244_v51 = vld [vmem:[#allocation9 + $0x78] sm:$0xff] }
 0x16d   :  { %v574_v54 = vpop.f32.mrf.mxu0  ;;  %1310 = vmatprep.subr.mxu1 %v1293_v20  ;;  %1423 = vmatprep.subr.mxu0 %v1252_v35 }
 0x16e   :  { %723 = vmatprep.mubr.f32.mxu1 %v600_v52  ;;  %860 = vmatprep.mubr.f32.mxu0 %v600_v52  ;;  %v601_v60 = vadd.f32 %v574_v54, %v421_v56  ;;  %v1277_v52 = vld [vmem:[#allocation9 + $0x138] sm:$0xff]  ;;  %v1276_v54 = vld [vmem:[#allocation9 + $0x130] sm:$0xff]  ;;  %v1275_v56 = vld [vmem:[#allocation9 + $0x128] sm:$0xff] }
 0x16f   :  { %v576_v58 = vpop.f32.mrf.mxu0  ;;  %724 = vmatmul.mubr.f32.gmra.mxu1 %v599_v53  ;;  %861 = vmatmul.mubr.f32.gmra.mxu0 %v599_v53  ;;  %v1243_v53 = vld [vmem:[#allocation9 + $0x70] sm:$0xff] }
 0x170   :  { %v602_v59 = vadd.f32 %v576_v58, %v423_v55  ;;  %1311 = vmatpush1.msra.mxu1 %v1292_v22  ;;  %1424 = vmatpush1.msra.mxu0 %v1251_v37  ;;  %v1242_v55 = vld [vmem:[#allocation9 + $0x68] sm:$0xff]  ;;  %v1274_v58 = vld [vmem:[#allocation9 + $0x120] sm:$0xff] }
 0x171   :  { %v580_v0 = vpop.f32.mrf.mxu0  ;;  %1312 = vmatprep.subr.mxu1 %v1291_v24  ;;  %1425 = vmatprep.subr.mxu0 %v1250_v39  ;;  %v954_v24 = vlaneseq }
 0x172   :  { %728 = vmatprep.mubr.f32.mxu1 %v602_v59  ;;  %865 = vmatprep.mubr.f32.mxu0 %v602_v59  ;;  %v603_v3 = vadd.f32 %v580_v0, %v427_v62  ;;  %v1240_v59 = vld [vmem:[#allocation9 + $0x58] sm:$0xff]  ;;  %v1239_v0 = vld [vmem:[#allocation9 + $0x50] sm:$0xff]  ;;  %v1238_v62 = vld [vmem:[#allocation9 + $0x48] sm:$0xff] }
 0x173   :  { %v582_v1 = vpop.f32.mrf.mxu0  ;;  %729 = vmatmul.mubr.f32.gmra.mxu1 %v601_v60  ;;  %866 = vmatmul.mubr.f32.gmra.mxu0 %v601_v60  ;;  %v1273_v60 = vld [vmem:[#allocation9 + $0x118] sm:$0xff] }
 0x174   :  { %v604_v2 = vadd.f32 %v582_v1, %v429_v61  ;;  %1313 = vmatpush1.msra.mxu1 %v1290_v26  ;;  %1426 = vmatpush1.msra.mxu0 %v1249_v41  ;;  %v1272_v61 = vld [vmem:[#allocation9 + $0x110] sm:$0xff]  ;;  %v1237_v1 = vld [vmem:[#allocation9 + $0x40] sm:$0xff] }
 0x175   :  { %v586_v4 = vpop.f32.mrf.mxu0  ;;  %1314 = vmatprep.subr.mxu1 %v1289_v28  ;;  %1427 = vmatprep.subr.mxu0 %v1248_v43 }
 0x176   :  { %733 = vmatprep.mubr.f32.mxu1 %v604_v2  ;;  %870 = vmatprep.mubr.f32.mxu0 %v604_v2  ;;  %v605_v9 = vadd.f32 %v586_v4, %v433_v6  ;;  %v1270_v2 = vld [vmem:[#allocation9 + $0x100] sm:$0xff]  ;;  %v1568_v4 = vld [vmem:[#allocation9 + $0x2f8] sm:$0xff]  ;;  %v1234_v6 = vld [vmem:[#allocation9 + $0x28] sm:$0xff] }
 0x177   :  { %v588_v7 = vpop.f32.mrf.mxu0  ;;  %734 = vmatmul.mubr.f32.gmra.mxu1 %v603_v3  ;;  %871 = vmatmul.mubr.f32.gmra.mxu0 %v603_v3  ;;  %v1236_v3 = vld [vmem:[#allocation9 + $0x38] sm:$0xff] }
 0x178   :  { %v606_v8 = vadd.f32 %v588_v7, %v435_v5  ;;  %1315 = vmatpush1.msra.mxu1 %v1288_v30  ;;  %1428 = vmatpush1.msra.mxu0 %v1247_v45  ;;  %v1235_v5 = vld [vmem:[#allocation9 + $0x30] sm:$0xff]  ;;  %v1233_v7 = vld [vmem:[#allocation9 + $0x20] sm:$0xff] }
 0x179   :  { %1316 = vmatprep.subr.mxu1 %v1287_v32  ;;  %1429 = vmatprep.subr.mxu0 %v1246_v47  ;;  %v4323_v32 = vshrl.u32 %v954_v24, 7 }
 0x17a   :  { %738 = vmatprep.mubr.f32.mxu1 %v606_v8  ;;  %875 = vmatprep.mubr.f32.mxu0 %v606_v8  ;;  %v1232_v8 = vld [vmem:[#allocation9 + $0x18] sm:$0xff] }
 0x17b   :  { %739 = vmatmul.mubr.f32.gmra.mxu1 %v605_v9  ;;  %876 = vmatmul.mubr.f32.gmra.mxu0 %v605_v9  ;;  %v1231_v9 = vld [vmem:[#allocation9 + $0x10] sm:$0xff]  ;;  %v956_v41 = vadd.s32 8, %v4323_v32 }
 0x17c   :  { %1366 = vmatprep.mubr.f32.mxu1 %v4319_v10  ;;  %1479 = vmatprep.mubr.f32.mxu0 %v4319_v10 }
 0x17d   :  { %1317 = vmatpush1.msra.mxu1 %v1286_v34  ;;  %1430 = vmatpush1.msra.mxu0 %v1245_v49 }
 0x17e   :  { %1318 = vmatprep.subr.mxu1 %v1285_v36  ;;  %1431 = vmatprep.subr.mxu0 %v1244_v51 }
 0x17f   :  { %1319 = vmatpush1.msra.mxu1 %v1284_v38  ;;  %1432 = vmatpush1.msra.mxu0 %v1243_v53 }
 0x180   :  { %1320 = vmatprep.subr.mxu1 %v1283_v40  ;;  %1433 = vmatprep.subr.mxu0 %v1242_v55  ;;  %v967_v40 = vand.u32 31, %v4323_v32 }
 0x181   :  { %1321 = vmatpush1.msra.mxu1 %v1282_v42  ;;  %1434 = vmatpush1.msra.mxu0 %v1241_v57 }
 0x182   :  { %1322 = vmatprep.subr.mxu1 %v1281_v44  ;;  %1435 = vmatprep.subr.mxu0 %v1240_v59  ;;  %v1063_v53 = vand.u32 1, %v967_v40 }
 0x183   :  { %1323 = vmatpush1.msra.mxu1 %v1280_v46  ;;  %1436 = vmatpush1.msra.mxu0 %v1239_v0  ;;  %v957_v46 = vadd.s32 16, %v4323_v32 }
 0x184   :  { %1324 = vmatprep.subr.mxu1 %v1279_v48  ;;  %1437 = vmatprep.subr.mxu0 %v1238_v62  ;;  %v4334_v48 = vadd.s32 24, %v4323_v32  ;;  %vm1155_vm0 = vcmp.eq.s32.totalorder %v1063_v53, 1 }
 0x185   :  { %1325 = vmatpush1.msra.mxu1 %v1278_v50  ;;  %1438 = vmatpush1.msra.mxu0 %v1237_v1  ;;  %v4339_v50 = vld [vmem:[%s4589_s4] ss:$0 sm:$0xff]  ;;  %s3911_s4 = smov [#allocation18]  }
 0x186   :  { %1326 = vmatprep.subr.mxu1 %v1277_v52  ;;  %1439 = vmatprep.subr.mxu0 %v1236_v3  ;;  %v988_v62 = vand.u32 31, %v4334_v48  ;;  %s2959_s27 = sshll.u32 %s3911_s4, 4  ;;  %s2960_s27 = int_to_ptr.vmem [resolvable:$true] %s2959_s27 }
 0x187   :  { %1327 = vmatpush1.msra.mxu1 %v1276_v54  ;;  %1440 = vmatpush1.msra.mxu0 %v1235_v5  ;;  %v974_v54 = vand.u32 31, %v956_v41  ;;  %s3869_s28 = scalar_lea.vmem %s2960_s27, 32  ;;  %p3874_p8 = scmp.lt.s32.totalorder %s2960_s27, %s2960_s27 }
 0x188   :  { %1328 = vmatprep.subr.mxu1 %v1275_v56  ;;  %1441 = vmatprep.subr.mxu0 %v1234_v6  ;;  %vm4364_vm4 = vcmp.le.s32.totalorder %v988_v62, 27  ;;  %p3870_p7 = scmp.ne.s32.totalorder %s2960_s27, %s3869_s28  ;;  %p3875_p9 = scmp.lt.s32.totalorder %s3869_s28, %s3869_s28 }
 0x189   :  { %1329 = vmatpush1.msra.mxu1 %v1274_v58  ;;  %1442 = vmatpush1.msra.mxu0 %v1233_v7  ;;  %v1070_v3 = vand.u32 1, %v974_v54  ;;  %v1559_v54 = vld [vmem:[#allocation9 + $0x2b0] sm:$0xff] }
 0x18a   :  { %1330 = vmatprep.subr.mxu1 %v1273_v60  ;;  %1443 = vmatprep.subr.mxu0 %v1232_v8  ;;  %v981_v60 = vand.u32 31, %v957_v46  ;;  %p3876_p10 = por %p3875_p9, %p3874_p8 }
 0x18b   :  { %1331 = vmatpush1.msra.mxu1 %v1272_v61  ;;  %1444 = vmatpush1.msra.mxu0 %v1231_v9  ;;  %vm1156_vm1 = vcmp.eq.s32.totalorder %v1070_v3, 1 }
 0x18c   :  { %1332 = vmatprep.subr.mxu1 %v1271_v63  ;;  %1445 = vmatprep.subr.mxu0 %v1230_v11  ;;  %v1567_v11 = vld [vmem:[#allocation9 + $0x2f0] sm:$0xff]  ;;  %p3877_p11 = pnand %p3876_p10, %p3870_p7 }
 0x18d   :  { %1333 = vmatpush1.msra.mxu1 %v1270_v2  ;;  %1446 = vmatpush1.msra.mxu0 %v1229_v12  ;;  %v4347_v12 = vand.u32 1, %v981_v60  ;;  %v961_v60 = vadd.s32 48, %v4323_v32 }
 0x18e   :  { %1569 = vmatprep.subr.mxu1 %v1568_v4 }
 0x18f   :  { %vm1157_vm2 = vcmp.eq.s32.totalorder %v4347_v12, 1 }
 0x21f   :  { %v3006_v13 = vpop.f32.mrf.mxu1  ;;  %v3062_v14 = vpop.f32.mrf.mxu0 }
 0x221   :  { %v3007_v15 = vpop.f32.mrf.mxu1  ;;  %v3063_v16 = vpop.f32.mrf.mxu0 }
 0x222   :  { %v3008_v17 = vadd.f32 %v3007_v15, %v3006_v13  ;;  %v3064_v18 = vadd.f32 %v3063_v16, %v3062_v14  ;;  %v1566_v15 = vld [vmem:[#allocation9 + $0x2e8] sm:$0xff] }
 0x223   :  { %v3009_v19 = vpop.f32.mrf.mxu1  ;;  %v3065_v20 = vpop.f32.mrf.mxu0 }
 0x224   :  { %v881_v21 = vmax.f32 %v3008_v17, %v3064_v18  ;;  %v1084_v17 = vand.u32 1, %v988_v62 }
 0x225   :  { %v3010_v22 = vpop.f32.mrf.mxu1  ;;  %v3066_v23 = vpop.f32.mrf.mxu0 }
 0x226   :  { %899 = vst [vmem:[#allocation2 + $0x8] sm:$0xff] %v881_v21  ;;  %v3011_v25 = vadd.f32 %v3010_v22, %v3009_v19  ;;  %v3067_v26 = vadd.f32 %v3066_v23, %v3065_v20  ;;  %v959_v22 = vadd.s32 32, %v4323_v32  ;;  %vm1158_vm3 = vcmp.eq.s32.totalorder %v1084_v17, 1  ;;  %v1552_v17 = vld [vmem:[#allocation9 + $0x278] sm:$0xff] }
 0x227   :  { %v3012_v27 = vpop.f32.mrf.mxu1  ;;  %v3068_v28 = vpop.f32.mrf.mxu0  ;;  %vm4385_vm5 = vmand %vm1158_vm3, %vm4364_vm4 }
 0x228   :  { %v882_v29 = vmax.f32 %v3011_v25, %v3067_v26  ;;  %v995_v41 = vand.u32 31, %v959_v22 }
 0x229   :  { %v3013_v30 = vpop.f32.mrf.mxu1  ;;  %v3069_v31 = vpop.f32.mrf.mxu0 }
 0x22a   :  { %900 = vst [vmem:[#allocation2 + $0x10] sm:$0xff] %v882_v29  ;;  %v3014_v33 = vadd.f32 %v3013_v30, %v3012_v27  ;;  %v3070_v34 = vadd.f32 %v3069_v31, %v3068_v28  ;;  %v1564_v27 = vld [vmem:[#allocation9 + $0x2d8] sm:$0xff]  ;;  %v1563_v30 = vld [vmem:[#allocation9 + $0x2d0] sm:$0xff] }
 0x22b   :  { %v3015_v35 = vpop.f32.mrf.mxu1  ;;  %v3071_v36 = vpop.f32.mrf.mxu0 }
 0x22c   :  { %v4325_v37 = vmax.f32 %v3014_v33, %v3070_v34  ;;  %v1562_v34 = vld [vmem:[#allocation9 + $0x2c8] sm:$0xff] }
 0x22d   :  { %v3016_v38 = vpop.f32.mrf.mxu1  ;;  %v3072_v39 = vpop.f32.mrf.mxu0 }
 0x22e   :  { %901 = vst [vmem:[#allocation2 + $0x18] sm:$0xff] %v4325_v37  ;;  %v3017_v42 = vadd.f32 %v3016_v38, %v3015_v35  ;;  %v3073_v43 = vadd.f32 %v3072_v39, %v3071_v36  ;;  %v1561_v39 = vld [vmem:[#allocation9 + $0x2c0] sm:$0xff] }
 0x22f   :  { %v3018_v44 = vpop.f32.mrf.mxu1  ;;  %v3074_v45 = vpop.f32.mrf.mxu0 }
 0x230   :  { %v4331_v47 = vmax.f32 %v3017_v42, %v3073_v43  ;;  %v960_v42 = vadd.s32 40, %v4323_v32  ;;  %v4370_v43 = vadd.s32 56, %v4323_v32  ;;  %v1556_v32 = vld [vmem:[#allocation9 + $0x298] sm:$0xff] }
 0x231   :  { %v915_v49 = vld [vmem:[#allocation2 + $0x9] sm:$0xff]  ;;  %v3019_v51 = vpop.f32.mrf.mxu1  ;;  %v3075_v52 = vpop.f32.mrf.mxu0 }
 0x232   :  { %v923_v55 = vmax.f32 %v881_v21, %v915_v49  ;;  %902 = vst [vmem:[#allocation2 + $0x20] sm:$0xff] %v4331_v47  ;;  %v3020_v56 = vadd.f32 %v3019_v51, %v3018_v44  ;;  %v3076_v57 = vadd.f32 %v3075_v52, %v3074_v45  ;;  %v1565_v21 = vld [vmem:[#allocation9 + $0x2e0] sm:$0xff]  ;;  %v1560_v49 = vld [vmem:[#allocation9 + $0x2b8] sm:$0xff] }
 0x233   :  { %v3021_v58 = vpop.f32.mrf.mxu1  ;;  %v3077_v59 = vpop.f32.mrf.mxu0 }
 0x234   :  { %v938_v0 = vadd.f32 %v4339_v50, %v923_v55  ;;  %v4343_v61 = vmax.f32 %v3020_v56, %v3076_v57  ;;  %v1558_v56 = vld [vmem:[#allocation9 + $0x2a8] sm:$0xff] }
 0x235   :  { %v916_v63 = vld [vmem:[#allocation2 + $0x11] sm:$0xff]  ;;  %v3022_v1 = vpop.f32.mrf.mxu1  ;;  %v3078_v2 = vpop.f32.mrf.mxu0 }
 0x236   :  { %v924_v4 = vmax.f32 %v882_v29, %v916_v63  ;;  %903 = vst [vmem:[#allocation2 + $0x28] sm:$0xff] %v4343_v61  ;;  %v3023_v5 = vadd.f32 %v3022_v1, %v3021_v58  ;;  %v3079_v6 = vadd.f32 %v3078_v2, %v3077_v59  ;;  %v946_v7 = vmax.f32 %v938_v0, 0.0  ;;  %v1557_v63 = vld [vmem:[#allocation9 + $0x2a0] sm:$0xff] }
 0x237   :  { %v3024_v8 = vpop.f32.mrf.mxu1  ;;  %v3080_v9 = vpop.f32.mrf.mxu0  ;;  %v1091_v58 = vand.u32 1, %v995_v41  ;;  %v1002_v59 = vand.u32 31, %v960_v42  ;;  %v1016_v0 = vand.u32 31, %v4370_v43  ;;  %v1544_v41 = vld [vmem:[#allocation9 + $0x238] sm:$0xff]  ;;  %v1543_v43 = vld [vmem:[#allocation9 + $0x230] sm:$0xff] }
 0x238   :  { %v4349_v13 = vmax.f32 %v3023_v5, %v3079_v6  ;;  %v1205_v14 = vsel %vm1155_vm0, %v946_v7, 0.0  ;;  %v939_v16 = vadd.f32 %v4339_v50, %v924_v4  ;;  %3721 = vmatmul.mubr.msk.f32.vlgmr.msra.gmra.mxu1 %vm1155_vm0, %v946_v7  ;;  %v1009_v7 = vand.u32 31, %v961_v60 }
 0x239   :  { %v917_v18 = vld [vmem:[#allocation2 + $0x19] sm:$0xff]  ;;  %v3025_v19 = vpop.f32.mrf.mxu1  ;;  %v3081_v20 = vpop.f32.mrf.mxu0  ;;  %1213 = vst [vmem:[#allocation3 + $0x8] sm:$0xff] %v1205_v14  ;;  %1570 = vmatpush1.msra.mxu1 %v1567_v11  ;;  %1372 = vmatprep.mubr.f32.mxu1 %v4319_v10  ;;  %vm1159_vm6 = vcmp.eq.s32.totalorder %v1091_v58, 1  ;;  %v1098_v6 = vand.u32 1, %v1002_v59  ;;  %v1553_v14 = vld [vmem:[#allocation9 + $0x280] sm:$0xff]  ;;  %vm4408_vm9 = vcmp.le.s32.totalorder %v1016_v0, 27 }
 0x23a   :  { %v925_v23 = vmax.f32 %v4325_v37, %v917_v18  ;;  %904 = vst [vmem:[#allocation2 + $0x30] sm:$0xff] %v4349_v13  ;;  %v3026_v24 = vadd.f32 %v3025_v19, %v3024_v8  ;;  %v3082_v25 = vadd.f32 %v3081_v20, %v3080_v9  ;;  %v947_v26 = vmax.f32 %v939_v16, 0.0  ;;  %1571 = vmatprep.subr.mxu1 %v1566_v15  ;;  %v1554_v11 = vld [vmem:[#allocation9 + $0x288] sm:$0xff]  ;;  %v1551_v20 = vld [vmem:[#allocation9 + $0x270] sm:$0xff] }
 0x23b   :  { %v3027_v28 = vpop.f32.mrf.mxu1  ;;  %v3083_v29 = vpop.f32.mrf.mxu0  ;;  %1572 = vmatpush1.msra.mxu1 %v1565_v21  ;;  %v1112_v8 = vand.u32 1, %v1016_v0  ;;  %vm1160_vm7 = vcmp.eq.s32.totalorder %v1098_v6, 1  ;;  %v1105_v21 = vand.u32 1, %v1009_v7  ;;  %v1711_v6 = vld [vmem:[#allocation11 + $0x68] sm:$0xff] }
 0x23c   :  { %v4359_v31 = vmax.f32 %v3026_v24, %v3082_v25  ;;  %v1206_v33 = vsel %vm1156_vm1, %v947_v26, 0.0  ;;  %v940_v35 = vadd.f32 %v4339_v50, %v925_v23  ;;  %3722 = vmatmul.mubr.msk.f32.gmra.mxu1 %vm1156_vm1, %v947_v26  ;;  %1573 = vmatprep.subr.mxu1 %v1564_v27  ;;  %v1550_v24 = vld [vmem:[#allocation9 + $0x268] sm:$0xff]  ;;  %v1549_v27 = vld [vmem:[#allocation9 + $0x260] sm:$0xff] }
 0x23d   :  { %v918_v36 = vld [vmem:[#allocation2 + $0x21] sm:$0xff]  ;;  %v3028_v37 = vpop.f32.mrf.mxu1  ;;  %v3084_v38 = vpop.f32.mrf.mxu0  ;;  %1214 = vst [vmem:[#allocation3 + $0x10] sm:$0xff] %v1206_v33  ;;  %1574 = vmatpush1.msra.mxu1 %v1563_v30  ;;  %1378 = vmatprep.mubr.f32.mxu1 %v4319_v10  ;;  %vm1162_vm8 = vcmp.eq.s32.totalorder %v1112_v8, 1  ;;  %vm1161_vm10 = vcmp.eq.s32.totalorder %v1105_v21, 1  ;;  %v1848_v7 = vld [vmem:[#allocation12 + $0x68] sm:$0xff]  ;;  %v1726_v8 = vld [vmem:[#allocation11 + $0xe0] sm:$0xff] }
 0x23e   :  { %v926_v44 = vmax.f32 %v4331_v47, %v918_v36  ;;  %905 = vst [vmem:[#allocation2 + $0x38] sm:$0xff] %v4359_v31  ;;  %v3029_v45 = vadd.f32 %v3028_v37, %v3027_v28  ;;  %v3085_v46 = vadd.f32 %v3084_v38, %v3083_v29  ;;  %v948_v48 = vmax.f32 %v940_v35, 0.0  ;;  %1575 = vmatprep.subr.mxu1 %v1562_v34  ;;  %v1548_v30 = vld [vmem:[#allocation9 + $0x258] sm:$0xff]  ;;  %v1547_v34 = vld [vmem:[#allocation9 + $0x250] sm:$0xff]  ;;  %vm4420_vm11 = vmand %vm1162_vm8, %vm4408_vm9 }
 0x23f   :  { %1576 = vmatpush1.msra.mxu1 %v1561_v39  ;;  %v1546_v36 = vld [vmem:[#allocation9 + $0x248] sm:$0xff]  ;;  %v1859_v26 = vld [vmem:[#allocation12 + $0xc0] sm:$0xff]  ;;  %v1857_v35 = vld [vmem:[#allocation12 + $0xb0] sm:$0xff] }
 0x240   :  { %v4375_v51 = vmax.f32 %v3029_v45, %v3085_v46  ;;  %v1221_v52 = vld [vmem:[#allocation3 + $0x6] sm:$0xff]  ;;  %v1207_v53 = vsel %vm1157_vm2, %v948_v48, 0.0  ;;  %v941_v47 = vadd.f32 %v4339_v50, %v926_v44  ;;  %3723 = vmatmul.mubr.msk.f32.gmra.mxu1 %vm1157_vm2, %v948_v48  ;;  %1577 = vmatprep.subr.mxu1 %v1560_v49  ;;  %v1540_v48 = vld [vmem:[#allocation9 + $0x218] sm:$0xff]  ;;  %v1539_v49 = vld [vmem:[#allocation9 + $0x210] sm:$0xff] }
 0x241   :  { %v919_v55 = vld [vmem:[#allocation2 + $0x29] sm:$0xff]  ;;  %1480 = vmatmul.mubr.f32.vlgmr.msra.gmra.mxu0 %v1221_v52  ;;  %1215 = vst [vmem:[#allocation3 + $0x18] sm:$0xff] %v1207_v53  ;;  %1578 = vmatpush1.msra.mxu1 %v1559_v54  ;;  %v1542_v44 = vld [vmem:[#allocation9 + $0x228] sm:$0xff] }
 0x242   :  { %v927_v62 = vmax.f32 %v4343_v61, %v919_v55  ;;  %906 = vst [vmem:[#allocation2 + $0x40] sm:$0xff] %v4375_v51  ;;  %1485 = vmatprep.mubr.f32.mxu0 %v4319_v10  ;;  %v949_v1 = vmax.f32 %v941_v47, 0.0  ;;  %1384 = vmatprep.mubr.f32.mxu1 %v4319_v10  ;;  %v1555_v61 = vld [vmem:[#allocation9 + $0x290] sm:$0xff]  ;;  %v1541_v45 = vld [vmem:[#allocation9 + $0x220] sm:$0xff]  ;;  %v1723_v21 = vld [vmem:[#allocation11 + $0xc8] sm:$0xff] }
 0x243   :  { %1579 = vmatprep.subr.mxu1 %v1558_v56  ;;  %v1537_v52 = vld [vmem:[#allocation9 + $0x200] sm:$0xff] }
 0x244   :  { %v1222_v2 = vld [vmem:[#allocation3 + $0xe] sm:$0xff]  ;;  %v1208_v3 = vsel %vm4385_vm5, %v949_v1, 0.0  ;;  %v942_v4 = vadd.f32 %v4339_v50, %v927_v62  ;;  %1580 = vmatpush1.msra.mxu1 %v1557_v63  ;;  %v1729_v62 = vld [vmem:[#allocation11 + $0xf8] sm:$0xff] }
 0x245   :  { %v920_v5 = vld [vmem:[#allocation2 + $0x31] sm:$0xff]  ;;  %1486 = vmatmul.mubr.f32.gmra.mxu0 %v1222_v2  ;;  %1216 = vst [vmem:[#allocation3 + $0x20] sm:$0xff] %v1208_v3  ;;  %3724 = vmatmul.mubr.msk.f32.gmra.mxu1 %vm4385_vm5, %v949_v1  ;;  %v1528_v54 = vld [vmem:[#allocation3 + $0xa] sm:$0xff]  ;;  %v1866_v63 = vld [vmem:[#allocation12 + $0xf8] sm:$0xff] }
 0x246   :  { %v928_v9 = vmax.f32 %v4349_v13, %v920_v5  ;;  %1491 = vmatprep.mubr.f32.mxu0 %v4319_v10  ;;  %v950_v12 = vmax.f32 %v942_v4, 0.0  ;;  %1581 = vmatprep.subr.mxu1 %v1556_v32  ;;  %v1713_v1 = vld [vmem:[#allocation11 + $0x78] sm:$0xff]  ;;  %v1728_v3 = vld [vmem:[#allocation11 + $0xf0] sm:$0xff] }
 0x247   :  { %1390 = vmatprep.mubr.f32.mxu1 %v4319_v10  ;;  %1582 = vmatpush1.msra.mxu1 %v1555_v61  ;;  %v1850_v2 = vld [vmem:[#allocation12 + $0x78] sm:$0xff]  ;;  %v1865_v32 = vld [vmem:[#allocation12 + $0xf0] sm:$0xff]  ;;  %v1727_v61 = vld [vmem:[#allocation11 + $0xe8] sm:$0xff] }
 0x248   :  { %v1223_v15 = vld [vmem:[#allocation3 + $0x16] sm:$0xff]  ;;  %v1209_v16 = vsel %vm1159_vm6, %v950_v12, 0.0  ;;  %v943_v18 = vadd.f32 %v4339_v50, %v928_v9  ;;  %1583 = vmatprep.subr.mxu1 %v1554_v11  ;;  %3086 = vmatprep.subr.mxu0 %v1729_v62  ;;  %v1863_v9 = vld [vmem:[#allocation12 + $0xe0] sm:$0xff] }
 0x249   :  { %v921_v19 = vld [vmem:[#allocation2 + $0x39] sm:$0xff]  ;;  %v922_v13 = vld [vmem:[#allocation2 + $0x41] sm:$0xff]  ;;  %1492 = vmatmul.mubr.f32.gmra.mxu0 %v1223_v15  ;;  %1217 = vst [vmem:[#allocation3 + $0x28] sm:$0xff] %v1209_v16  ;;  %1584 = vmatpush1.msra.mxu1 %v1553_v14  ;;  %v1710_v11 = vld [vmem:[#allocation11 + $0x60] sm:$0xff] }
 0x24a   :  { %v929_v22 = vmax.f32 %v4359_v31, %v921_v19  ;;  %v930_v23 = vmax.f32 %v4375_v51, %v922_v13  ;;  %1497 = vmatprep.mubr.f32.mxu0 %v4319_v10  ;;  %v951_v25 = vmax.f32 %v943_v18, 0.0  ;;  %3725 = vmatmul.mubr.msk.f32.gmra.mxu1 %vm1159_vm6, %v950_v12  ;;  %v1538_v51 = vld [vmem:[#allocation9 + $0x208] sm:$0xff]  ;;  %v1529_v55 = vld [vmem:[#allocation3 + $0x12] sm:$0xff]  ;;  %v1847_v12 = vld [vmem:[#allocation12 + $0x60] sm:$0xff] }
 0x24b   :  { %1585 = vmatprep.subr.mxu1 %v1552_v17  ;;  %1396 = vmatprep.mubr.f32.mxu1 %v4319_v10  ;;  %v1712_v4 = vld [vmem:[#allocation11 + $0x70] sm:$0xff]  ;;  %v1725_v14 = vld [vmem:[#allocation11 + $0xd8] sm:$0xff] }
 0x24c   :  { %v1224_v28 = vld [vmem:[#allocation3 + $0x1e] sm:$0xff]  ;;  %1586 = vmatpush1.msra.mxu1 %v1551_v20  ;;  %v1210_v29 = vsel %vm1160_vm7, %v951_v25, 0.0  ;;  %v944_v31 = vadd.f32 %v4339_v50, %v929_v22  ;;  %v945_v33 = vadd.f32 %v4339_v50, %v930_v23  ;;  %3087 = vmatpush3.msra.mxu0 %v1713_v1  ;;  %v1849_v5 = vld [vmem:[#allocation12 + $0x70] sm:$0xff]  ;;  %v1860_v22 = vld [vmem:[#allocation12 + $0xc8] sm:$0xff] }
 0x24d   :  { %1498 = vmatmul.mubr.f32.gmra.mxu0 %v1224_v28  ;;  %1587 = vmatprep.subr.mxu1 %v1550_v24  ;;  %1218 = vst [vmem:[#allocation3 + $0x30] sm:$0xff] %v1210_v29  ;;  %v1545_v50 = vld [vmem:[#allocation9 + $0x240] sm:$0xff]  ;;  %v1862_v15 = vld [vmem:[#allocation12 + $0xd8] sm:$0xff]  ;;  %v1724_v18 = vld [vmem:[#allocation11 + $0xd0] sm:$0xff] }
 0x24e   :  { %1503 = vmatprep.mubr.f32.mxu0 %v4319_v10  ;;  %1588 = vmatpush1.msra.mxu1 %v1549_v27  ;;  %v952_v37 = vmax.f32 %v944_v31, 0.0  ;;  %v953_v38 = vmax.f32 %v945_v33, 0.0  ;;  %v1530_v56 = vld [vmem:[#allocation3 + $0x1a] sm:$0xff]  ;;  %v1861_v19 = vld [vmem:[#allocation12 + $0xd0] sm:$0xff]  ;;  %v1707_v23 = vld [vmem:[#allocation11 + $0x48] sm:$0xff] }
 0x24f   :  { %3726 = vmatmul.mubr.msk.f32.gmra.mxu1 %vm1160_vm7, %v951_v25  ;;  %1589 = vmatprep.subr.mxu1 %v1548_v30  ;;  %v1709_v16 = vld [vmem:[#allocation11 + $0x58] sm:$0xff]  ;;  %v1708_v13 = vld [vmem:[#allocation11 + $0x50] sm:$0xff]  ;;  %v1844_v24 = vld [vmem:[#allocation12 + $0x48] sm:$0xff] }
 0x250   :  { %v1225_v39 = vld [vmem:[#allocation3 + $0x26] sm:$0xff]  ;;  %1590 = vmatpush1.msra.mxu1 %v1547_v34  ;;  %1402 = vmatprep.mubr.f32.mxu1 %v4319_v10  ;;  %v1211_v40 = vsel %vm1161_vm10, %v952_v37, 0.0  ;;  %v1212_v42 = vsel %vm4420_vm11, %v953_v38, 0.0  ;;  %v1846_v17 = vld [vmem:[#allocation12 + $0x58] sm:$0xff]  ;;  %v1845_v20 = vld [vmem:[#allocation12 + $0x50] sm:$0xff] }
 0x251   :  { %1504 = vmatmul.mubr.f32.gmra.mxu0 %v1225_v39  ;;  %1591 = vmatprep.subr.mxu1 %v1546_v36  ;;  %1219 = vst [vmem:[#allocation3 + $0x38] sm:$0xff] %v1211_v40  ;;  %1220 = vst [vmem:[#allocation3 + $0x40] sm:$0xff] %v1212_v42  ;;  %v1531_v57 = vld [vmem:[#allocation3 + $0x22] sm:$0xff]  ;;  %v1721_v29 = vld [vmem:[#allocation11 + $0xb8] sm:$0xff] }
 0x252   :  { %1509 = vmatprep.mubr.f32.mxu0 %v4319_v10  ;;  %1592 = vmatpush1.msra.mxu1 %v1545_v50  ;;  %v1722_v25 = vld [vmem:[#allocation11 + $0xc0] sm:$0xff]  ;;  %v1858_v30 = vld [vmem:[#allocation12 + $0xb8] sm:$0xff]  ;;  %v1720_v34 = vld [vmem:[#allocation11 + $0xb0] sm:$0xff] }
 0x253   :  { %3727 = vmatmul.mubr.msk.f32.gmra.mxu1 %vm1161_vm10, %v952_v37  ;;  %1593 = vmatprep.subr.mxu1 %v1544_v41  ;;  %v1706_v27 = vld [vmem:[#allocation11 + $0x40] sm:$0xff]  ;;  %v1705_v31 = vld [vmem:[#allocation11 + $0x38] sm:$0xff]  ;;  %v1704_v36 = vld [vmem:[#allocation11 + $0x30] sm:$0xff] }
 0x254   :  { %v1226_v46 = vld [vmem:[#allocation3 + $0x2e] sm:$0xff]  ;;  %1594 = vmatpush1.msra.mxu1 %v1543_v43  ;;  %1408 = vmatprep.mubr.f32.mxu1 %v4319_v10  ;;  %v1843_v28 = vld [vmem:[#allocation12 + $0x40] sm:$0xff]  ;;  %v1842_v33 = vld [vmem:[#allocation12 + $0x38] sm:$0xff] }
 0x255   :  { %1510 = vmatmul.mubr.f32.gmra.mxu0 %v1226_v46  ;;  %1595 = vmatprep.subr.mxu1 %v1542_v44  ;;  %v1532_v58 = vld [vmem:[#allocation3 + $0x2a] sm:$0xff]  ;;  %v1718_v41 = vld [vmem:[#allocation11 + $0xa0] sm:$0xff]  ;;  %v1854_v46 = vld [vmem:[#allocation12 + $0x98] sm:$0xff] }
 0x256   :  { %1515 = vmatprep.mubr.f32.mxu0 %v4319_v10  ;;  %1596 = vmatpush1.msra.mxu1 %v1541_v45  ;;  %v1841_v37 = vld [vmem:[#allocation12 + $0x30] sm:$0xff]  ;;  %v1856_v50 = vld [vmem:[#allocation12 + $0xa8] sm:$0xff]  ;;  %v1855_v42 = vld [vmem:[#allocation12 + $0xa0] sm:$0xff] }
 0x257   :  { %3728 = vmatmul.mubr.msk.f32.gmra.mxu1 %vm4420_vm11, %v953_v38  ;;  %1597 = vmatprep.subr.mxu1 %v1540_v48  ;;  %v1719_v38 = vld [vmem:[#allocation11 + $0xa8] sm:$0xff]  ;;  %v1702_v43 = vld [vmem:[#allocation11 + $0x20] sm:$0xff]  ;;  %v1717_v45 = vld [vmem:[#allocation11 + $0x98] sm:$0xff] }
 0x258   :  { %v1227_v53 = vld [vmem:[#allocation3 + $0x36] sm:$0xff]  ;;  %1598 = vmatpush1.msra.mxu1 %v1539_v49  ;;  %1633 = vmatprep.mubr.f32.mxu1 %v4319_v10  ;;  %v1228_v47 = vld [vmem:[#allocation3 + $0x3e] sm:$0xff]  ;;  %v1703_v39 = vld [vmem:[#allocation11 + $0x28] sm:$0xff] }
 0x259   :  { %1516 = vmatmul.mubr.f32.gmra.mxu0 %v1227_v53  ;;  %1599 = vmatprep.subr.mxu1 %v1538_v51  ;;  %v1533_v59 = vld [vmem:[#allocation3 + $0x32] sm:$0xff]  ;;  %v1534_v60 = vld [vmem:[#allocation3 + $0x3a] sm:$0xff]  ;;  %v1535_v0 = vld [vmem:[#allocation3 + $0x42] sm:$0xff] }
 0x25a   :  { %1521 = vmatprep.mubr.f32.mxu0 %v4319_v10  ;;  %1600 = vmatpush1.msra.mxu1 %v1537_v52  ;;  %v1840_v40 = vld [vmem:[#allocation12 + $0x28] sm:$0xff]  ;;  %v1839_v44 = vld [vmem:[#allocation12 + $0x20] sm:$0xff]  ;;  %v1701_v48 = vld [vmem:[#allocation11 + $0x18] sm:$0xff] }
 0x25b   :  { %1634 = vmatmul.mubr.f32.vlgmr.msra.gmra.mxu1 %v1528_v54  ;;  %3142 = vmatprep.subr.mxu1 %v1866_v63  ;;  %v1838_v49 = vld [vmem:[#allocation12 + $0x18] sm:$0xff]  ;;  %v1716_v51 = vld [vmem:[#allocation11 + $0x90] sm:$0xff] }
 0x25c   :  { %1639 = vmatprep.mubr.f32.mxu1 %v4319_v10  ;;  %3143 = vmatpush3.msra.mxu1 %v1850_v2  ;;  %v1853_v52 = vld [vmem:[#allocation12 + $0x90] sm:$0xff] }
 0x25d   :  { %1522 = vmatmul.mubr.f32.gmra.mxu0 %v1228_v47  ;;  %3088 = vmatprep.subr.mxu0 %v1728_v3  ;;  %v1700_v53 = vld [vmem:[#allocation11 + $0x10] sm:$0xff]  ;;  %v1715_v47 = vld [vmem:[#allocation11 + $0x88] sm:$0xff] }
 0x25e   :  { %3144 = vmatprep.subr.mxu1 %v1865_v32  ;;  %3089 = vmatpush3.msra.mxu0 %v1712_v4  ;;  %v1837_v54 = vld [vmem:[#allocation12 + $0x10] sm:$0xff] }
 0x25f   :  { %1640 = vmatmul.mubr.f32.gmra.mxu1 %v1529_v55  ;;  %3090 = vmatprep.subr.mxu0 %v1727_v61  ;;  %v1852_v55 = vld [vmem:[#allocation12 + $0x88] sm:$0xff] }
 0x260   :  { %1645 = vmatprep.mubr.f32.mxu1 %v4319_v10  ;;  %3145 = vmatpush3.msra.mxu1 %v1849_v5 }
 0x261   :  { %3091 = vmatpush3.msra.mxu0 %v1711_v6 }
 0x262   :  { %3092 = vmatprep.subr.mxu0 %v1726_v8 }
 0x263   :  { %1646 = vmatmul.mubr.f32.gmra.mxu1 %v1530_v56  ;;  %3093 = vmatpush3.msra.mxu0 %v1710_v11  ;;  %v1699_v56 = vld [vmem:[#allocation11 + $0x8] sm:$0xff] }
 0x264   :  { %1651 = vmatprep.mubr.f32.mxu1 %v4319_v10  ;;  %3094 = vmatprep.subr.mxu0 %v1725_v14 }
 0x265   :  { %3095 = vmatpush3.msra.mxu0 %v1709_v16 }
 0x266   :  { %3096 = vmatprep.subr.mxu0 %v1724_v18 }
 0x267   :  { %1652 = vmatmul.mubr.f32.gmra.mxu1 %v1531_v57  ;;  %3097 = vmatpush3.msra.mxu0 %v1708_v13  ;;  %v1836_v57 = vld [vmem:[#allocation12 + $0x8] sm:$0xff] }
 0x268   :  { %1657 = vmatprep.mubr.f32.mxu1 %v4319_v10  ;;  %3098 = vmatprep.subr.mxu0 %v1723_v21 }
 0x269   :  { %3099 = vmatpush3.msra.mxu0 %v1707_v23 }
 0x26a   :  { %3100 = vmatprep.subr.mxu0 %v1722_v25 }
 0x26b   :  { %1658 = vmatmul.mubr.f32.gmra.mxu1 %v1532_v58  ;;  %3101 = vmatpush3.msra.mxu0 %v1706_v27  ;;  %v1714_v58 = vld [vmem:[#allocation11 + $0x80] sm:$0xff] }
 0x26c   :  { %1663 = vmatprep.mubr.f32.mxu1 %v4319_v10  ;;  %3102 = vmatprep.subr.mxu0 %v1721_v29 }
 0x26d   :  { %3103 = vmatpush3.msra.mxu0 %v1705_v31 }
 0x26e   :  { %3104 = vmatprep.subr.mxu0 %v1720_v34 }
 0x26f   :  { %1664 = vmatmul.mubr.f32.gmra.mxu1 %v1533_v59  ;;  %3105 = vmatpush3.msra.mxu0 %v1704_v36  ;;  %v1851_v59 = vld [vmem:[#allocation12 + $0x80] sm:$0xff] }
 0x270   :  { %1669 = vmatprep.mubr.f32.mxu1 %v4319_v10  ;;  %3106 = vmatprep.subr.mxu0 %v1719_v38 }
 0x271   :  { %3107 = vmatpush3.msra.mxu0 %v1703_v39 }
 0x272   :  { %3108 = vmatprep.subr.mxu0 %v1718_v41 }
 0x273   :  { %1670 = vmatmul.mubr.f32.gmra.mxu1 %v1534_v60  ;;  %3109 = vmatpush3.msra.mxu0 %v1702_v43  ;;  %v1698_v60 = vld [vmem:[#allocation11] sm:$0xff] }
 0x274   :  { %1675 = vmatprep.mubr.f32.mxu1 %v4319_v10  ;;  %v1864_v10 = vld [vmem:[#allocation12 + $0xe8] sm:$0xff]  ;;  %3110 = vmatprep.subr.mxu0 %v1717_v45 }
 0x275   :  { %3146 = vmatprep.subr.mxu1 %v1864_v10  ;;  %3111 = vmatpush3.msra.mxu0 %v1701_v48 }
 0x276   :  { %3147 = vmatpush3.msra.mxu1 %v1848_v7  ;;  %3112 = vmatprep.subr.mxu0 %v1716_v51 }
 0x277   :  { %1676 = vmatmul.mubr.f32.gmra.mxu1 %v1535_v0  ;;  %3148 = vmatprep.subr.mxu1 %v1863_v9  ;;  %v1835_v0 = vld [vmem:[#allocation12] sm:$0xff] }
 0x278   :  { %3149 = vmatpush3.msra.mxu1 %v1847_v12  ;;  %3113 = vmatpush3.msra.mxu0 %v1700_v53 }
 0x279   :  { %3150 = vmatprep.subr.mxu1 %v1862_v15  ;;  %3114 = vmatprep.subr.mxu0 %v1715_v47 }
 0x27a   :  { %3151 = vmatpush3.msra.mxu1 %v1846_v17  ;;  %3115 = vmatpush3.msra.mxu0 %v1699_v56 }
 0x27b   :  { %3152 = vmatprep.subr.mxu1 %v1861_v19  ;;  %3116 = vmatprep.subr.mxu0 %v1714_v58 }
 0x27c   :  { %3153 = vmatpush3.msra.mxu1 %v1845_v20  ;;  %3117 = vmatpush3.msra.mxu0 %v1698_v60 }
 0x27d   :  { %3154 = vmatprep.subr.mxu1 %v1860_v22 }
 0x27e   :  { %3155 = vmatpush3.msra.mxu1 %v1844_v24 }
 0x27f   :  { %3156 = vmatprep.subr.mxu1 %v1859_v26 }
 0x280   :  { %3157 = vmatpush3.msra.mxu1 %v1843_v28 }
 0x281   :  { %3158 = vmatprep.subr.mxu1 %v1858_v30 }
 0x282   :  { %3159 = vmatpush3.msra.mxu1 %v1842_v33 }
 0x283   :  { %3160 = vmatprep.subr.mxu1 %v1857_v35 }
 0x284   :  { %3161 = vmatpush3.msra.mxu1 %v1841_v37 }
 0x285   :  { %3162 = vmatprep.subr.mxu1 %v1856_v50 }
 0x286   :  { %3163 = vmatpush3.msra.mxu1 %v1840_v40 }
 0x287   :  { %3164 = vmatprep.subr.mxu1 %v1855_v42 }
 0x288   :  { %3165 = vmatpush3.msra.mxu1 %v1839_v44 }
 0x289   :  { %3166 = vmatprep.subr.mxu1 %v1854_v46 }
 0x28a   :  { %3167 = vmatpush3.msra.mxu1 %v1838_v49 }
 0x28b   :  { %3168 = vmatprep.subr.mxu1 %v1853_v52 }
 0x28c   :  { %3169 = vmatpush3.msra.mxu1 %v1837_v54 }
 0x28d   :  { %3170 = vmatprep.subr.mxu1 %v1852_v55 }
 0x28e   :  { %3171 = vmatpush3.msra.mxu1 %v1836_v57 }
 0x28f   :  { %3172 = vmatprep.subr.mxu1 %v1851_v59 }
 0x290   :  { %3173 = vmatpush3.msra.mxu1 %v1835_v0 }
 0x2f8   :  { %v1368_v62 = vpop.f32.mrf.mxu1 }
 0x2fa   :  { %v1370_v63 = vpop.f32.mrf.mxu1 }
 0x2fc   :  { %v1374_v1 = vpop.f32.mrf.mxu1 }
 0x2fe   :  { %v1376_v2 = vpop.f32.mrf.mxu1 }
 0x300   :  { %v1380_v32 = vpop.f32.mrf.mxu1 }
 0x301   :  { %v1481_v3 = vpop.f32.mrf.mxu0 }
 0x302   :  { %v1382_v5 = vpop.f32.mrf.mxu1  ;;  %v1482_v24 = vadd.f32 %v1481_v3, %v1368_v62 }
 0x303   :  { %v1483_v4 = vpop.f32.mrf.mxu0 }
 0x304   :  { %v1484_v23 = vadd.f32 %v1483_v4, %v1370_v63 }
 0x305   :  { %v1487_v61 = vpop.f32.mrf.mxu0  ;;  %v1386_v10 = vpop.f32.mrf.mxu1 }
 0x306   :  { %v1488_v31 = vadd.f32 %v1487_v61, %v1374_v1 }
 0x307   :  { %v1489_v6 = vpop.f32.mrf.mxu0  ;;  %v1388_v7 = vpop.f32.mrf.mxu1 }
 0x308   :  { %v1490_v30 = vadd.f32 %v1489_v6, %v1376_v2 }
 0x309   :  { %v1493_v8 = vpop.f32.mrf.mxu0 }
 0x30a   :  { %v1392_v9 = vpop.f32.mrf.mxu1  ;;  %v1494_v50 = vadd.f32 %v1493_v8, %v1380_v32 }
 0x30b   :  { %v1495_v11 = vpop.f32.mrf.mxu0 }
 0x30c   :  { %v1394_v12 = vpop.f32.mrf.mxu1  ;;  %v1496_v38 = vadd.f32 %v1495_v11, %v1382_v5 }
 0x30d   :  { %v1499_v15 = vpop.f32.mrf.mxu0 }
 0x30e   :  { %v1500_v45 = vadd.f32 %v1499_v15, %v1386_v10  ;;  %v2087_v15 = vld [vmem:[#allocation15 + $0x70] sm:$0xff] }
 0x30f   :  { %v4445_v14 = vpop.f32.mrf.mxu1  ;;  %v1501_v18 = vpop.f32.mrf.mxu0 }
 0x310   :  { %v1502_v44 = vadd.f32 %v1501_v18, %v1388_v7  ;;  %v2084_v18 = vld [vmem:[#allocation15 + $0x58] sm:$0xff] }
 0x311   :  { %v1400_v16 = vpop.f32.mrf.mxu1  ;;  %v1505_v20 = vpop.f32.mrf.mxu0 }
 0x312   :  { %v1506_v54 = vadd.f32 %v1505_v20, %v1392_v9  ;;  %v2082_v20 = vld [vmem:[#allocation15 + $0x48] sm:$0xff] }
 0x313   :  { %v4447_v17 = vpop.f32.mrf.mxu1  ;;  %v1507_v25 = vpop.f32.mrf.mxu0 }
 0x314   :  { %v1508_v53 = vadd.f32 %v1507_v25, %v1394_v12  ;;  %v2110_v25 = vld [vmem:[#allocation15 + $0xe0] sm:$0xff] }
 0x315   :  { %v4449_v19 = vpop.f32.mrf.mxu1  ;;  %v1511_v33 = vpop.f32.mrf.mxu0 }
 0x316   :  { %v1512_v60 = vadd.f32 %v1511_v33, %v4445_v14  ;;  %v2088_v14 = vld [vmem:[#allocation15 + $0x78] sm:$0xff] }
 0x317   :  { %v4451_v13 = vpop.f32.mrf.mxu1  ;;  %v1513_v39 = vpop.f32.mrf.mxu0  ;;  %3410 = vmatprep.subr.mxu1 %v2088_v14  ;;  %v2076_v33 = vld [vmem:[#allocation15 + $0x18] sm:$0xff] }
 0x318   :  { %v1514_v59 = vadd.f32 %v1513_v39, %v1400_v16  ;;  %v2086_v16 = vld [vmem:[#allocation15 + $0x68] sm:$0xff] }
 0x319   :  { %v4453_v21 = vpop.f32.mrf.mxu1  ;;  %v1517_v46 = vpop.f32.mrf.mxu0  ;;  %v2103_v39 = vld [vmem:[#allocation15 + $0xa8] sm:$0xff] }
 0x31a   :  { %v1518_v32 = vadd.f32 %v1517_v46, %v4447_v17  ;;  %v2085_v17 = vld [vmem:[#allocation15 + $0x60] sm:$0xff]  ;;  %v4463_v46 = vld [vmem:[#allocation15 + $0x178] sm:$0xff] }
 0x31b   :  { %v1635_v22 = vpop.f32.mrf.mxu1  ;;  %v1519_v47 = vpop.f32.mrf.mxu0 }
 0x31c   :  { %v1682_v28 = vadd.f32 %v1635_v22, %v1482_v24  ;;  %v1520_v3 = vadd.f32 %v1519_v47, %v4449_v19  ;;  %v2083_v19 = vld [vmem:[#allocation15 + $0x50] sm:$0xff]  ;;  %v2081_v22 = vld [vmem:[#allocation15 + $0x40] sm:$0xff]  ;;  %v2080_v24 = vld [vmem:[#allocation15 + $0x38] sm:$0xff] }
 0x31d   :  { %v1637_v26 = vpop.f32.mrf.mxu1  ;;  %v1523_v0 = vpop.f32.mrf.mxu0 }
 0x31e   :  { %v1683_v27 = vadd.f32 %v1637_v26, %v1484_v23  ;;  %v1524_v8 = vadd.f32 %v1523_v0, %v4451_v13  ;;  %v2113_v13 = vld [vmem:[#allocation15 + $0xf8] sm:$0xff]  ;;  %v2111_v23 = vld [vmem:[#allocation15 + $0xe8] sm:$0xff]  ;;  %v2079_v26 = vld [vmem:[#allocation15 + $0x30] sm:$0xff] }
 0x31f   :  { %v1641_v29 = vpop.f32.mrf.mxu1  ;;  %v1525_v4 = vpop.f32.mrf.mxu0  ;;  %3366 = vmatprep.subr.mxu0 %v2113_v13 }
 0x320   :  { %1794 = vmatprep.mubr.f32.mxu0 %v1683_v27  ;;  %1931 = vmatprep.mubr.f32.mxu1 %v1683_v27  ;;  %v1684_v36 = vadd.f32 %v1641_v29, %v1488_v31  ;;  %v1526_v7 = vadd.f32 %v1525_v4, %v4453_v21  ;;  %v2112_v21 = vld [vmem:[#allocation15 + $0xf0] sm:$0xff]  ;;  %v2109_v27 = vld [vmem:[#allocation15 + $0xd8] sm:$0xff]  ;;  %v2107_v31 = vld [vmem:[#allocation15 + $0xc8] sm:$0xff] }
 0x321   :  { %v1643_v34 = vpop.f32.mrf.mxu1  ;;  %1795 = vmatmul.mubr.f32.vlgmr.msra.gmra.mxu0 %v1682_v28  ;;  %1932 = vmatmul.mubr.f32.vlgmr.msra.gmra.mxu1 %v1682_v28  ;;  %v2078_v28 = vld [vmem:[#allocation15 + $0x28] sm:$0xff]  ;;  %v2108_v29 = vld [vmem:[#allocation15 + $0xd0] sm:$0xff] }
 0x322   :  { %v1685_v35 = vadd.f32 %v1643_v34, %v1490_v30  ;;  %3411 = vmatpush3.msra.mxu1 %v2088_v14  ;;  %3367 = vmatpush3.msra.mxu0 %v2113_v13  ;;  %v2077_v30 = vld [vmem:[#allocation15 + $0x20] sm:$0xff] }
 0x323   :  { %v1647_v37 = vpop.f32.mrf.mxu1  ;;  %3412 = vmatprep.subr.mxu1 %v2087_v15  ;;  %3368 = vmatprep.subr.mxu0 %v2112_v21  ;;  %v2106_v34 = vld [vmem:[#allocation15 + $0xc0] sm:$0xff] }
 0x324   :  { %1799 = vmatprep.mubr.f32.mxu0 %v1685_v35  ;;  %1936 = vmatprep.mubr.f32.mxu1 %v1685_v35  ;;  %v1686_v42 = vadd.f32 %v1647_v37, %v1494_v50  ;;  %v2075_v35 = vld [vmem:[#allocation15 + $0x10] sm:$0xff]  ;;  %v2074_v37 = vld [vmem:[#allocation15 + $0x8] sm:$0xff]  ;;  %v2073_v50 = vld [vmem:[#allocation15] sm:$0xff] }
 0x325   :  { %v1649_v40 = vpop.f32.mrf.mxu1  ;;  %1800 = vmatmul.mubr.f32.gmra.mxu0 %v1684_v36  ;;  %1937 = vmatmul.mubr.f32.gmra.mxu1 %v1684_v36  ;;  %v2105_v36 = vld [vmem:[#allocation15 + $0xb8] sm:$0xff] }
 0x326   :  { %v1687_v41 = vadd.f32 %v1649_v40, %v1496_v38  ;;  %3413 = vmatpush3.msra.mxu1 %v2087_v15  ;;  %3369 = vmatpush3.msra.mxu0 %v2112_v21  ;;  %v2104_v38 = vld [vmem:[#allocation15 + $0xb0] sm:$0xff]  ;;  %v4460_v40 = vld [vmem:[#allocation15 + $0x1f8] sm:$0xff] }
 0x327   :  { %v1653_v43 = vpop.f32.mrf.mxu1  ;;  %3414 = vmatprep.subr.mxu1 %v2086_v16  ;;  %3370 = vmatprep.subr.mxu0 %v2111_v23  ;;  %v4466_v15 = vld [vmem:[#allocation14] ss:$0 sm:$0xff] }
 0x328   :  { %1804 = vmatprep.mubr.f32.mxu0 %v1687_v41  ;;  %1941 = vmatprep.mubr.f32.mxu1 %v1687_v41  ;;  %v1688_v51 = vadd.f32 %v1653_v43, %v1500_v45  ;;  %v2102_v41 = vld [vmem:[#allocation15 + $0xa0] sm:$0xff]  ;;  %v2100_v43 = vld [vmem:[#allocation15 + $0x90] sm:$0xff] }
 0x329   :  { %v1655_v48 = vpop.f32.mrf.mxu1  ;;  %1805 = vmatmul.mubr.f32.gmra.mxu0 %v1686_v42  ;;  %1942 = vmatmul.mubr.f32.gmra.mxu1 %v1686_v42  ;;  %v2101_v42 = vld [vmem:[#allocation15 + $0x98] sm:$0xff]  ;;  %v2098_v45 = vld [vmem:[#allocation15 + $0x80] sm:$0xff] }
 0x32a   :  { %v1689_v49 = vadd.f32 %v1655_v48, %v1502_v44  ;;  %3415 = vmatpush3.msra.mxu1 %v2086_v16  ;;  %3371 = vmatpush3.msra.mxu0 %v2111_v23  ;;  %v2099_v44 = vld [vmem:[#allocation15 + $0x88] sm:$0xff] }
 0x32b   :  { %v1659_v52 = vpop.f32.mrf.mxu1  ;;  %3416 = vmatprep.subr.mxu1 %v2085_v17  ;;  %3372 = vmatprep.subr.mxu0 %v2110_v25 }
 0x32c   :  { %1809 = vmatprep.mubr.f32.mxu0 %v1689_v49  ;;  %1946 = vmatprep.mubr.f32.mxu1 %v1689_v49  ;;  %v1690_v57 = vadd.f32 %v1659_v52, %v1506_v54 }
 0x32d   :  { %v1661_v55 = vpop.f32.mrf.mxu1  ;;  %1810 = vmatmul.mubr.f32.gmra.mxu0 %v1688_v51  ;;  %1947 = vmatmul.mubr.f32.gmra.mxu1 %v1688_v51 }
 0x32e   :  { %v1691_v56 = vadd.f32 %v1661_v55, %v1508_v53  ;;  %3417 = vmatpush3.msra.mxu1 %v2085_v17  ;;  %3373 = vmatpush3.msra.mxu0 %v2110_v25 }
 0x32f   :  { %v1665_v58 = vpop.f32.mrf.mxu1  ;;  %3418 = vmatprep.subr.mxu1 %v2084_v18  ;;  %3374 = vmatprep.subr.mxu0 %v2109_v27 }
 0x330   :  { %1814 = vmatprep.mubr.f32.mxu0 %v1691_v56  ;;  %1951 = vmatprep.mubr.f32.mxu1 %v1691_v56  ;;  %v1692_v1 = vadd.f32 %v1665_v58, %v1512_v60 }
 0x331   :  { %v1667_v62 = vpop.f32.mrf.mxu1  ;;  %1815 = vmatmul.mubr.f32.gmra.mxu0 %v1690_v57  ;;  %1952 = vmatmul.mubr.f32.gmra.mxu1 %v1690_v57 }
 0x332   :  { %v1693_v63 = vadd.f32 %v1667_v62, %v1514_v59  ;;  %3419 = vmatpush3.msra.mxu1 %v2084_v18  ;;  %3375 = vmatpush3.msra.mxu0 %v2109_v27 }
 0x333   :  { %v1671_v2 = vpop.f32.mrf.mxu1  ;;  %3420 = vmatprep.subr.mxu1 %v2083_v19  ;;  %3376 = vmatprep.subr.mxu0 %v2108_v29 }
 0x334   :  { %1819 = vmatprep.mubr.f32.mxu0 %v1693_v63  ;;  %1956 = vmatprep.mubr.f32.mxu1 %v1693_v63  ;;  %v1694_v10 = vadd.f32 %v1671_v2, %v1518_v32 }
 0x335   :  { %v1673_v5 = vpop.f32.mrf.mxu1  ;;  %1820 = vmatmul.mubr.f32.gmra.mxu0 %v1692_v1  ;;  %1957 = vmatmul.mubr.f32.gmra.mxu1 %v1692_v1 }
 0x336   :  { %v1695_v61 = vadd.f32 %v1673_v5, %v1520_v3  ;;  %3421 = vmatpush3.msra.mxu1 %v2083_v19  ;;  %3377 = vmatpush3.msra.mxu0 %v2108_v29 }
 0x337   :  { %v1677_v6 = vpop.f32.mrf.mxu1  ;;  %3422 = vmatprep.subr.mxu1 %v2082_v20  ;;  %3378 = vmatprep.subr.mxu0 %v2107_v31 }
 0x338   :  { %1824 = vmatprep.mubr.f32.mxu0 %v1695_v61  ;;  %1961 = vmatprep.mubr.f32.mxu1 %v1695_v61  ;;  %v1696_v12 = vadd.f32 %v1677_v6, %v1524_v8 }
 0x339   :  { %v1679_v9 = vpop.f32.mrf.mxu1  ;;  %1825 = vmatmul.mubr.f32.gmra.mxu0 %v1694_v10  ;;  %1962 = vmatmul.mubr.f32.gmra.mxu1 %v1694_v10 }
 0x33a   :  { %v1697_v11 = vadd.f32 %v1679_v9, %v1526_v7  ;;  %3423 = vmatpush3.msra.mxu1 %v2082_v20  ;;  %3379 = vmatpush3.msra.mxu0 %v2107_v31 }
 0x33b   :  { %3424 = vmatprep.subr.mxu1 %v2081_v22  ;;  %3380 = vmatprep.subr.mxu0 %v2106_v34 }
 0x33c   :  { %1829 = vmatprep.mubr.f32.mxu0 %v1697_v11  ;;  %1966 = vmatprep.mubr.f32.mxu1 %v1697_v11 }
 0x33d   :  { %1830 = vmatmul.mubr.f32.gmra.mxu0 %v1696_v12  ;;  %1967 = vmatmul.mubr.f32.gmra.mxu1 %v1696_v12 }
 0x33e   :  { %3425 = vmatpush3.msra.mxu1 %v2081_v22  ;;  %3381 = vmatpush3.msra.mxu0 %v2106_v34 }
 0x33f   :  { %3426 = vmatprep.subr.mxu1 %v2080_v24  ;;  %3382 = vmatprep.subr.mxu0 %v2105_v36 }
 0x340   :  { %3427 = vmatpush3.msra.mxu1 %v2080_v24  ;;  %3383 = vmatpush3.msra.mxu0 %v2105_v36 }
 0x341   :  { %3428 = vmatprep.subr.mxu1 %v2079_v26  ;;  %3384 = vmatprep.subr.mxu0 %v2104_v38 }
 0x342   :  { %3429 = vmatpush3.msra.mxu1 %v2079_v26  ;;  %3385 = vmatpush3.msra.mxu0 %v2104_v38 }
 0x343   :  { %3430 = vmatprep.subr.mxu1 %v2078_v28  ;;  %3386 = vmatprep.subr.mxu0 %v2103_v39 }
 0x344   :  { %3431 = vmatpush3.msra.mxu1 %v2078_v28  ;;  %3387 = vmatpush3.msra.mxu0 %v2103_v39 }
 0x345   :  { %3432 = vmatprep.subr.mxu1 %v2077_v30  ;;  %3388 = vmatprep.subr.mxu0 %v2102_v41 }
 0x346   :  { %3433 = vmatpush3.msra.mxu1 %v2077_v30  ;;  %3389 = vmatpush3.msra.mxu0 %v2102_v41 }
 0x347   :  { %3434 = vmatprep.subr.mxu1 %v2076_v33  ;;  %3390 = vmatprep.subr.mxu0 %v2101_v42 }
 0x348   :  { %3435 = vmatpush3.msra.mxu1 %v2076_v33  ;;  %3391 = vmatpush3.msra.mxu0 %v2101_v42 }
 0x349   :  { %3436 = vmatprep.subr.mxu1 %v2075_v35  ;;  %3392 = vmatprep.subr.mxu0 %v2100_v43 }
 0x34a   :  { %3437 = vmatpush3.msra.mxu1 %v2075_v35  ;;  %3393 = vmatpush3.msra.mxu0 %v2100_v43 }
 0x34b   :  { %3438 = vmatprep.subr.mxu1 %v2074_v37  ;;  %3394 = vmatprep.subr.mxu0 %v2099_v44 }
 0x34c   :  { %3439 = vmatpush3.msra.mxu1 %v2074_v37  ;;  %3395 = vmatpush3.msra.mxu0 %v2099_v44 }
 0x34d   :  { %3440 = vmatprep.subr.mxu1 %v2073_v50  ;;  %3396 = vmatprep.subr.mxu0 %v2098_v45 }
 0x34e   :  { %3441 = vmatpush3.msra.mxu1 %v2073_v50  ;;  %3397 = vmatpush3.msra.mxu0 %v2098_v45  ;;  %v2461_v45 = vld [vmem:[#allocation15 + $0x1f0] sm:$0xff] }
 0x34f   :  { %3498 = vmatprep.subr.mxu1 %v4460_v40  ;;  %3454 = vmatprep.subr.mxu0 %v4463_v46 }
 0x3e1   :  { %v3118_v48 = vpop.f32.mrf.mxu0  ;;  %v3174_v49 = vpop.f32.mrf.mxu1 }
 0x3e3   :  { %v3119_v51 = vpop.f32.mrf.mxu0  ;;  %v3175_v52 = vpop.f32.mrf.mxu1 }
 0x3e4   :  { %v3120_v53 = vadd.f32 %v3119_v51, %v3118_v48  ;;  %v3176_v54 = vadd.f32 %v3175_v52, %v3174_v49 }
 0x3e5   :  { %v3121_v47 = vpop.f32.mrf.mxu0  ;;  %v3177_v55 = vpop.f32.mrf.mxu1 }
 0x3e6   :  { %v1972_v56 = vmax.f32 %v3120_v53, %v3176_v54  ;;  %v2460_v54 = vld [vmem:[#allocation15 + $0x1e8] sm:$0xff] }
 0x3e7   :  { %v3122_v57 = vpop.f32.mrf.mxu0  ;;  %v3178_v58 = vpop.f32.mrf.mxu1 }
 0x3e8   :  { %1990 = vst [vmem:[#allocation4 + $0x8] sm:$0xff] %v1972_v56  ;;  %v3123_v59 = vadd.f32 %v3122_v57, %v3121_v47  ;;  %v3179_v60 = vadd.f32 %v3178_v58, %v3177_v55  ;;  %v2459_v58 = vld [vmem:[#allocation15 + $0x1e0] sm:$0xff] }
 0x3e9   :  { %v3124_v0 = vpop.f32.mrf.mxu0  ;;  %v3180_v62 = vpop.f32.mrf.mxu1 }
 0x3ea   :  { %v1973_v63 = vmax.f32 %v3123_v59, %v3179_v60 }
 0x3eb   :  { %v3125_v1 = vpop.f32.mrf.mxu0  ;;  %v3181_v2 = vpop.f32.mrf.mxu1 }
 0x3ec   :  { %1991 = vst [vmem:[#allocation4 + $0x10] sm:$0xff] %v1973_v63  ;;  %v3126_v3 = vadd.f32 %v3125_v1, %v3124_v0  ;;  %v3182_v32 = vadd.f32 %v3181_v2, %v3180_v62  ;;  %v2458_v0 = vld [vmem:[#allocation15 + $0x1d8] sm:$0xff]  ;;  %v2457_v2 = vld [vmem:[#allocation15 + $0x1d0] sm:$0xff] }
 0x3ed   :  { %v3127_v4 = vpop.f32.mrf.mxu0  ;;  %v3183_v5 = vpop.f32.mrf.mxu1 }
 0x3ee   :  { %v1974_v61 = vmax.f32 %v3126_v3, %v3182_v32 }
 0x3ef   :  { %v3128_v10 = vpop.f32.mrf.mxu0  ;;  %v3184_v6 = vpop.f32.mrf.mxu1 }
 0x3f0   :  { %1992 = vst [vmem:[#allocation4 + $0x18] sm:$0xff] %v1974_v61  ;;  %v3129_v7 = vadd.f32 %v3128_v10, %v3127_v4  ;;  %v3185_v8 = vadd.f32 %v3184_v6, %v3183_v5  ;;  %v2456_v5 = vld [vmem:[#allocation15 + $0x1c8] sm:$0xff]  ;;  %v2335_v6 = vld [vmem:[#allocation15 + $0x170] sm:$0xff] }
 0x3f1   :  { %v3130_v9 = vpop.f32.mrf.mxu0  ;;  %v3186_v11 = vpop.f32.mrf.mxu1 }
 0x3f2   :  { %v1975_v12 = vmax.f32 %v3129_v7, %v3185_v8 }
 0x3f3   :  { %v2006_v14 = vld [vmem:[#allocation4 + $0xa] sm:$0xff]  ;;  %v3131_v16 = vpop.f32.mrf.mxu0  ;;  %v3187_v17 = vpop.f32.mrf.mxu1 }
 0x3f4   :  { %v2014_v18 = vmax.f32 %v1972_v56, %v2006_v14  ;;  %1993 = vst [vmem:[#allocation4 + $0x20] sm:$0xff] %v1975_v12  ;;  %v3132_v19 = vadd.f32 %v3131_v16, %v3130_v9  ;;  %v3188_v13 = vadd.f32 %v3187_v17, %v3186_v11  ;;  %v2334_v11 = vld [vmem:[#allocation15 + $0x168] sm:$0xff]  ;;  %v2455_v16 = vld [vmem:[#allocation15 + $0x1c0] sm:$0xff] }
 0x3f5   :  { %v3133_v20 = vpop.f32.mrf.mxu0  ;;  %v3189_v21 = vpop.f32.mrf.mxu1 }
 0x3f6   :  { %v4468_v22 = vmax.f32 %v3132_v19, %v3188_v13  ;;  %v2029_v23 = vadd.f32 %v4466_v15, %v2014_v18  ;;  %v2333_v19 = vld [vmem:[#allocation15 + $0x160] sm:$0xff] }
 0x3f7   :  { %v2007_v24 = vld [vmem:[#allocation4 + $0x12] sm:$0xff]  ;;  %v3134_v25 = vpop.f32.mrf.mxu0  ;;  %v3190_v26 = vpop.f32.mrf.mxu1 }
 0x3f8   :  { %v2015_v27 = vmax.f32 %v1973_v63, %v2007_v24  ;;  %1994 = vst [vmem:[#allocation4 + $0x28] sm:$0xff] %v4468_v22  ;;  %v3135_v28 = vadd.f32 %v3134_v25, %v3133_v20  ;;  %v3191_v29 = vadd.f32 %v3190_v26, %v3189_v21  ;;  %v2037_v30 = vmax.f32 %v2029_v23, 0.0  ;;  %v2332_v21 = vld [vmem:[#allocation15 + $0x158] sm:$0xff]  ;;  %v2331_v25 = vld [vmem:[#allocation15 + $0x150] sm:$0xff] }
 0x3f9   :  { %v3136_v31 = vpop.f32.mrf.mxu0  ;;  %v3192_v33 = vpop.f32.mrf.mxu1  ;;  %v2453_v26 = vld [vmem:[#allocation15 + $0x1b0] sm:$0xff] }
 0x3fa   :  { %v4472_v34 = vmax.f32 %v3135_v28, %v3191_v29  ;;  %2057 = vst [vmem:[#allocation5 + $0x8] sm:$0xff] %v2037_v30  ;;  %3442 = vmatprep.mubr.f32.mxu1 %v2037_v30  ;;  %v2030_v35 = vadd.f32 %v4466_v15, %v2015_v27  ;;  %v2329_v28 = vld [vmem:[#allocation15 + $0x140] sm:$0xff]  ;;  %v2452_v29 = vld [vmem:[#allocation15 + $0x1a8] sm:$0xff]  ;;  %v2328_v30 = vld [vmem:[#allocation15 + $0x138] sm:$0xff] }
 0x3fb   :  { %v2008_v36 = vld [vmem:[#allocation4 + $0x1a] sm:$0xff]  ;;  %v3137_v37 = vpop.f32.mrf.mxu0  ;;  %v3193_v38 = vpop.f32.mrf.mxu1 }
 0x3fc   :  { %v2016_v50 = vmax.f32 %v1974_v61, %v2008_v36  ;;  %1995 = vst [vmem:[#allocation4 + $0x30] sm:$0xff] %v4472_v34  ;;  %v3138_v39 = vadd.f32 %v3137_v37, %v3136_v31  ;;  %v3194_v41 = vadd.f32 %v3193_v38, %v3192_v33  ;;  %v4476_v42 = vmax.f32 %v2030_v35, 0.0  ;;  %v2451_v35 = vld [vmem:[#allocation15 + $0x1a0] sm:$0xff]  ;;  %v2326_v36 = vld [vmem:[#allocation15 + $0x128] sm:$0xff]  ;;  %v2450_v37 = vld [vmem:[#allocation15 + $0x198] sm:$0xff] }
 0x3fd   :  { %v3139_v43 = vpop.f32.mrf.mxu0  ;;  %v3195_v44 = vpop.f32.mrf.mxu1 }
 0x3fe   :  { %v2031_v48 = vadd.f32 %v4466_v15, %v2016_v50  ;;  %v4479_v49 = vmax.f32 %v3138_v39, %v3194_v41  ;;  %2058 = vst [vmem:[#allocation5 + $0x10] sm:$0xff] %v4476_v42  ;;  %3443 = vmatmul.mubr.f32.vlgmr.msra.gmra.mxu1 %v4476_v42  ;;  %v2325_v50 = vld [vmem:[#allocation15 + $0x120] sm:$0xff]  ;;  %v2449_v39 = vld [vmem:[#allocation15 + $0x190] sm:$0xff]  ;;  %v2324_v41 = vld [vmem:[#allocation15 + $0x118] sm:$0xff] }
 0x3ff   :  { %v2009_v51 = vld [vmem:[#allocation4 + $0x22] sm:$0xff]  ;;  %v3140_v52 = vpop.f32.mrf.mxu0  ;;  %v3196_v53 = vpop.f32.mrf.mxu1  ;;  %3499 = vmatpush3.msra.mxu1 %v4460_v40 }
 0x400   :  { %v2017_v47 = vmax.f32 %v1975_v12, %v2009_v51  ;;  %1996 = vst [vmem:[#allocation4 + $0x38] sm:$0xff] %v4479_v49  ;;  %v3141_v55 = vadd.f32 %v3140_v52, %v3139_v43  ;;  %v3197_v56 = vadd.f32 %v3196_v53, %v3195_v44  ;;  %3500 = vmatprep.subr.mxu1 %v2461_v45  ;;  %v4485_v57 = vmax.f32 %v2031_v48, 0.0  ;;  %v2448_v43 = vld [vmem:[#allocation15 + $0x188] sm:$0xff]  ;;  %v2323_v44 = vld [vmem:[#allocation15 + $0x110] sm:$0xff]  ;;  %v2321_v51 = vld [vmem:[#allocation15 + $0x100] sm:$0xff] }
 0x401   :  { %3501 = vmatpush3.msra.mxu1 %v2461_v45  ;;  %v2447_v45 = vld [vmem:[#allocation15 + $0x180] sm:$0xff]  ;;  %v2322_v48 = vld [vmem:[#allocation15 + $0x108] sm:$0xff]  ;;  %v2588_v52 = vld [vmem:[#allocation15 + $0x278] sm:$0xff] }
 0x402   :  { %v1979_v59 = vmax.f32 %v3141_v55, %v3197_v56  ;;  %3502 = vmatprep.subr.mxu1 %v2460_v54  ;;  %2059 = vst [vmem:[#allocation5 + $0x18] sm:$0xff] %v4485_v57  ;;  %3445 = vmatprep.mubr.f32.mxu1 %v4485_v57  ;;  %v2032_v60 = vadd.f32 %v4466_v15, %v2017_v47  ;;  %v2712_v53 = vld [vmem:[#allocation15 + $0x2e8] sm:$0xff]  ;;  %v2711_v47 = vld [vmem:[#allocation15 + $0x2e0] sm:$0xff]  ;;  %v2710_v56 = vld [vmem:[#allocation15 + $0x2d8] sm:$0xff] }
 0x403   :  { %v2010_v40 = vld [vmem:[#allocation4 + $0x2a] sm:$0xff]  ;;  %3503 = vmatpush3.msra.mxu1 %v2460_v54  ;;  %v2587_v54 = vld [vmem:[#allocation15 + $0x270] sm:$0xff]  ;;  %v2586_v55 = vld [vmem:[#allocation15 + $0x268] sm:$0xff] }
 0x404   :  { %v2018_v62 = vmax.f32 %v4468_v22, %v2010_v40  ;;  %1997 = vst [vmem:[#allocation4 + $0x40] sm:$0xff] %v1979_v59  ;;  %3504 = vmatprep.subr.mxu1 %v2459_v58  ;;  %v4491_v63 = vmax.f32 %v2032_v60, 0.0  ;;  %v4551_v60 = vld [vmem:[#allocation5 + $0x4c] sm:$0xff]  ;;  %v2584_v40 = vld [vmem:[#allocation15 + $0x258] sm:$0xff] }
 0x405   :  { %v2089_v1 = vld [vmem:[#allocation5 + $0xc] sm:$0xff]  ;;  %3505 = vmatpush3.msra.mxu1 %v2459_v58  ;;  %v2585_v58 = vld [vmem:[#allocation15 + $0x260] sm:$0xff] }
 0x406   :  { %3398 = vmatprep.mubr.f32.mxu0 %v2089_v1  ;;  %3506 = vmatprep.subr.mxu1 %v2458_v0  ;;  %2060 = vst [vmem:[#allocation5 + $0x20] sm:$0xff] %v4491_v63  ;;  %v2033_v3 = vadd.f32 %v4466_v15, %v2018_v62  ;;  %v2583_v62 = vld [vmem:[#allocation15 + $0x250] sm:$0xff]  ;;  %v2707_v1 = vld [vmem:[#allocation15 + $0x2c0] sm:$0xff] }
 0x407   :  { %v2011_v32 = vld [vmem:[#allocation4 + $0x32] sm:$0xff]  ;;  %3446 = vmatmul.mubr.f32.gmra.mxu1 %v4491_v63 }
 0x408   :  { %v2019_v4 = vmax.f32 %v4472_v34, %v2011_v32  ;;  %3507 = vmatpush3.msra.mxu1 %v2458_v0  ;;  %v4497_v61 = vmax.f32 %v2033_v3, 0.0  ;;  %v2327_v34 = vld [vmem:[#allocation15 + $0x130] sm:$0xff]  ;;  %v2708_v0 = vld [vmem:[#allocation15 + $0x2c8] sm:$0xff]  ;;  %v2706_v3 = vld [vmem:[#allocation15 + $0x2b8] sm:$0xff] }
 0x409   :  { %v4499_v10 = vld [vmem:[#allocation5 + $0x14] sm:$0xff]  ;;  %3508 = vmatprep.subr.mxu1 %v2457_v2 }
 0x40a   :  { %3399 = vmatmul.mubr.f32.vlgmr.msra.gmra.mxu0 %v4499_v10  ;;  %3509 = vmatpush3.msra.mxu1 %v2457_v2  ;;  %2061 = vst [vmem:[#allocation5 + $0x28] sm:$0xff] %v4497_v61  ;;  %v2034_v7 = vadd.f32 %v4466_v15, %v2019_v4  ;;  %v2582_v2 = vld [vmem:[#allocation15 + $0x248] sm:$0xff]  ;;  %v2581_v4 = vld [vmem:[#allocation15 + $0x240] sm:$0xff] }
 0x40b   :  { %v2012_v8 = vld [vmem:[#allocation4 + $0x3a] sm:$0xff]  ;;  %v2013_v9 = vld [vmem:[#allocation4 + $0x42] sm:$0xff]  ;;  %3455 = vmatpush3.msra.mxu0 %v4463_v46  ;;  %3510 = vmatprep.subr.mxu1 %v2456_v5  ;;  %v2454_v46 = vld [vmem:[#allocation15 + $0x1b8] sm:$0xff] }
 0x40c   :  { %v2020_v12 = vmax.f32 %v4479_v49, %v2012_v8  ;;  %v2021_v14 = vmax.f32 %v1979_v59, %v2013_v9  ;;  %3456 = vmatprep.subr.mxu0 %v2335_v6  ;;  %3448 = vmatprep.mubr.f32.mxu1 %v4497_v61  ;;  %v4507_v17 = vmax.f32 %v2034_v7, 0.0  ;;  %v2714_v49 = vld [vmem:[#allocation15 + $0x2f8] sm:$0xff]  ;;  %v2709_v59 = vld [vmem:[#allocation15 + $0x2d0] sm:$0xff]  ;;  %v2703_v8 = vld [vmem:[#allocation15 + $0x2a0] sm:$0xff] }
 0x40d   :  { %3457 = vmatpush3.msra.mxu0 %v2335_v6  ;;  %v4509_v18 = vld [vmem:[#allocation5 + $0x1c] sm:$0xff]  ;;  %3511 = vmatpush3.msra.mxu1 %v2456_v5  ;;  %v4557_v32 = vld [vmem:[#allocation2] sm:$0xff] }
 0x40e   :  { %3458 = vmatprep.subr.mxu0 %v2334_v11  ;;  %3401 = vmatprep.mubr.f32.mxu0 %v4509_v18  ;;  %2062 = vst [vmem:[#allocation5 + $0x30] sm:$0xff] %v4507_v17  ;;  %v2035_v13 = vadd.f32 %v4466_v15, %v2020_v12  ;;  %v2036_v20 = vadd.f32 %v4466_v15, %v2021_v14  ;;  %v2330_v15 = vld [vmem:[#allocation15 + $0x148] sm:$0xff]  ;;  %v2705_v5 = vld [vmem:[#allocation15 + $0x2b0] sm:$0xff]  ;;  %v2577_v12 = vld [vmem:[#allocation15 + $0x220] sm:$0xff] }
 0x40f   :  { %3459 = vmatpush3.msra.mxu0 %v2334_v11  ;;  %3512 = vmatprep.subr.mxu1 %v2455_v16  ;;  %v2704_v6 = vld [vmem:[#allocation15 + $0x2a8] sm:$0xff]  ;;  %v2579_v7 = vld [vmem:[#allocation15 + $0x230] sm:$0xff]  ;;  %v2702_v11 = vld [vmem:[#allocation15 + $0x298] sm:$0xff] }
 0x410   :  { %3460 = vmatprep.subr.mxu0 %v2333_v19  ;;  %3513 = vmatpush3.msra.mxu1 %v2455_v16  ;;  %v4515_v22 = vmax.f32 %v2035_v13, 0.0  ;;  %v4517_v23 = vmax.f32 %v2036_v20, 0.0  ;;  %v2578_v9 = vld [vmem:[#allocation15 + $0x228] sm:$0xff]  ;;  %v2576_v14 = vld [vmem:[#allocation15 + $0x218] sm:$0xff]  ;;  %v2573_v20 = vld [vmem:[#allocation15 + $0x200] sm:$0xff] }
 0x411   :  { %3461 = vmatpush3.msra.mxu0 %v2333_v19  ;;  %v4519_v24 = vld [vmem:[#allocation5 + $0x24] sm:$0xff]  ;;  %3514 = vmatprep.subr.mxu1 %v2454_v46  ;;  %v2840_v13 = vld [vmem:[#allocation15 + $0x378] sm:$0xff] }
 0x412   :  { %3462 = vmatprep.subr.mxu0 %v2332_v21  ;;  %3402 = vmatmul.mubr.f32.gmra.mxu0 %v4519_v24  ;;  %2063 = vst [vmem:[#allocation5 + $0x38] sm:$0xff] %v4515_v22  ;;  %2064 = vst [vmem:[#allocation5 + $0x40] sm:$0xff] %v4517_v23  ;;  %v2700_v16 = vld [vmem:[#allocation15 + $0x288] sm:$0xff]  ;;  %v2699_v19 = vld [vmem:[#allocation15 + $0x280] sm:$0xff] }
 0x413   :  { %3463 = vmatpush3.msra.mxu0 %v2332_v21  ;;  %3449 = vmatmul.mubr.f32.gmra.mxu1 %v4507_v17  ;;  %v2839_v21 = vld [vmem:[#allocation15 + $0x370] sm:$0xff] }
 0x414   :  { %3464 = vmatprep.subr.mxu0 %v2331_v25  ;;  %3515 = vmatpush3.msra.mxu1 %v2454_v46  ;;  %v2574_v46 = vld [vmem:[#allocation15 + $0x208] sm:$0xff] }
 0x415   :  { %3465 = vmatpush3.msra.mxu0 %v2331_v25  ;;  %v4525_v27 = vld [vmem:[#allocation5 + $0x2c] sm:$0xff]  ;;  %3516 = vmatprep.subr.mxu1 %v2453_v26 }
 0x416   :  { %3466 = vmatprep.subr.mxu0 %v2330_v15  ;;  %3404 = vmatprep.mubr.f32.mxu0 %v4525_v27  ;;  %v2838_v25 = vld [vmem:[#allocation15 + $0x368] sm:$0xff] }
 0x417   :  { %3467 = vmatpush3.msra.mxu0 %v2330_v15  ;;  %3517 = vmatpush3.msra.mxu1 %v2453_v26  ;;  %v2836_v26 = vld [vmem:[#allocation15 + $0x358] sm:$0xff]  ;;  %v2835_v15 = vld [vmem:[#allocation15 + $0x350] sm:$0xff] }
 0x418   :  { %3468 = vmatprep.subr.mxu0 %v2329_v28  ;;  %3518 = vmatprep.subr.mxu1 %v2452_v29 }
 0x419   :  { %3469 = vmatpush3.msra.mxu0 %v2329_v28  ;;  %v4528_v31 = vld [vmem:[#allocation5 + $0x34] sm:$0xff]  ;;  %3451 = vmatprep.mubr.f32.mxu1 %v4515_v22  ;;  %v4531_v33 = vld [vmem:[#allocation5 + $0x3c] sm:$0xff]  ;;  %v4537_v38 = vld [vmem:[#allocation5 + $0x44] sm:$0xff] }
 0x41a   :  { %3470 = vmatprep.subr.mxu0 %v2328_v30  ;;  %3405 = vmatmul.mubr.f32.gmra.mxu0 %v4528_v31  ;;  %v2834_v28 = vld [vmem:[#allocation15 + $0x348] sm:$0xff] }
 0x41b   :  { %3471 = vmatpush3.msra.mxu0 %v2328_v30  ;;  %3519 = vmatpush3.msra.mxu1 %v2452_v29  ;;  %v2833_v29 = vld [vmem:[#allocation15 + $0x340] sm:$0xff]  ;;  %v2832_v30 = vld [vmem:[#allocation15 + $0x338] sm:$0xff] }
 0x41c   :  { %3407 = vmatprep.mubr.f32.mxu0 %v4531_v33  ;;  %3452 = vmatmul.mubr.f32.gmra.mxu1 %v4517_v23 }
 0x41d   :  { %3472 = vmatprep.subr.mxu0 %v2327_v34  ;;  %3520 = vmatprep.subr.mxu1 %v2451_v35 }
 0x41e   :  { %3473 = vmatpush3.msra.mxu0 %v2327_v34  ;;  %3521 = vmatpush3.msra.mxu1 %v2451_v35  ;;  %v2828_v34 = vld [vmem:[#allocation15 + $0x318] sm:$0xff]  ;;  %v2827_v35 = vld [vmem:[#allocation15 + $0x310] sm:$0xff] }
 0x41f   :  { %3530 = vmatprep.mubr.f32.mxu1 %v4499_v10  ;;  %3474 = vmatprep.subr.mxu0 %v2326_v36  ;;  %v2580_v10 = vld [vmem:[#allocation15 + $0x238] sm:$0xff] }
 0x420   :  { %3522 = vmatprep.subr.mxu1 %v2450_v37  ;;  %3408 = vmatmul.mubr.f32.gmra.mxu0 %v4537_v38 }
 0x421   :  { %3475 = vmatpush3.msra.mxu0 %v2326_v36  ;;  %3523 = vmatpush3.msra.mxu1 %v2450_v37  ;;  %v2825_v36 = vld [vmem:[#allocation15 + $0x300] sm:$0xff] }
 0x422   :  { %3476 = vmatprep.subr.mxu0 %v2325_v50  ;;  %3486 = vmatprep.mubr.f32.mxu0 %v4476_v42  ;;  %v2713_v42 = vld [vmem:[#allocation15 + $0x2f0] sm:$0xff] }
 0x423   :  { %3524 = vmatprep.subr.mxu1 %v2449_v39  ;;  %3477 = vmatpush3.msra.mxu0 %v2325_v50 }
 0x424   :  { %3525 = vmatpush3.msra.mxu1 %v2449_v39  ;;  %3478 = vmatprep.subr.mxu0 %v2324_v41 }
 0x425   :  { %3526 = vmatprep.subr.mxu1 %v2448_v43  ;;  %3479 = vmatpush3.msra.mxu0 %v2324_v41 }
 0x426   :  { %3527 = vmatpush3.msra.mxu1 %v2448_v43  ;;  %3480 = vmatprep.subr.mxu0 %v2323_v44 }
 0x427   :  { %3528 = vmatprep.subr.mxu1 %v2447_v45  ;;  %3481 = vmatpush3.msra.mxu0 %v2323_v44 }
 0x428   :  { %3529 = vmatpush3.msra.mxu1 %v2447_v45  ;;  %3482 = vmatprep.subr.mxu0 %v2322_v48 }
 0x429   :  { %3531 = vmatmul.mubr.f32.vlgmr.msra.gmra.mxu1 %v4509_v18  ;;  %3586 = vmatprep.subr.mxu1 %v2714_v49 }
 0x42a   :  { %3483 = vmatpush3.msra.mxu0 %v2322_v48  ;;  %3533 = vmatprep.mubr.f32.mxu1 %v4519_v24 }
 0x42b   :  { %3587 = vmatpush3.msra.mxu1 %v2714_v49  ;;  %3484 = vmatprep.subr.mxu0 %v2321_v51 }
 0x42c   :  { %3588 = vmatprep.subr.mxu1 %v2713_v42  ;;  %3485 = vmatpush3.msra.mxu0 %v2321_v51 }
 0x42d   :  { %3589 = vmatpush3.msra.mxu1 %v2713_v42  ;;  %3487 = vmatmul.mubr.f32.vlgmr.msra.gmra.mxu0 %v4485_v57 }
 0x42e   :  { %3534 = vmatmul.mubr.f32.gmra.mxu1 %v4525_v27  ;;  %3542 = vmatprep.subr.mxu0 %v2588_v52 }
 0x42f   :  { %3590 = vmatprep.subr.mxu1 %v2712_v53  ;;  %3489 = vmatprep.mubr.f32.mxu0 %v4491_v63 }
 0x430   :  { %3536 = vmatprep.mubr.f32.mxu1 %v4528_v31  ;;  %3543 = vmatpush3.msra.mxu0 %v2588_v52 }
 0x431   :  { %3591 = vmatpush3.msra.mxu1 %v2712_v53  ;;  %3544 = vmatprep.subr.mxu0 %v2587_v54 }
 0x432   :  { %3592 = vmatprep.subr.mxu1 %v2711_v47  ;;  %3545 = vmatpush3.msra.mxu0 %v2587_v54 }
 0x433   :  { %3593 = vmatpush3.msra.mxu1 %v2711_v47  ;;  %3490 = vmatmul.mubr.f32.gmra.mxu0 %v4497_v61 }
 0x434   :  { %3537 = vmatmul.mubr.f32.gmra.mxu1 %v4531_v33  ;;  %3546 = vmatprep.subr.mxu0 %v2586_v55 }
 0x435   :  { %3594 = vmatprep.subr.mxu1 %v2710_v56  ;;  %3492 = vmatprep.mubr.f32.mxu0 %v4507_v17 }
 0x436   :  { %3539 = vmatprep.mubr.f32.mxu1 %v4537_v38  ;;  %3547 = vmatpush3.msra.mxu0 %v2586_v55 }
 0x437   :  { %3595 = vmatpush3.msra.mxu1 %v2710_v56  ;;  %3548 = vmatprep.subr.mxu0 %v2585_v58 }
 0x438   :  { %3596 = vmatprep.subr.mxu1 %v2709_v59  ;;  %3549 = vmatpush3.msra.mxu0 %v2585_v58 }
 0x439   :  { %3597 = vmatpush3.msra.mxu1 %v2709_v59  ;;  %3493 = vmatmul.mubr.f32.gmra.mxu0 %v4515_v22 }
 0x43a   :  { %3540 = vmatmul.mubr.f32.gmra.mxu1 %v4551_v60  ;;  %3550 = vmatprep.subr.mxu0 %v2584_v40 }
 0x43b   :  { %3598 = vmatprep.subr.mxu1 %v2708_v0  ;;  %3495 = vmatprep.mubr.f32.mxu0 %v4517_v23 }
 0x43c   :  { %3551 = vmatpush3.msra.mxu0 %v2584_v40  ;;  %3599 = vmatpush3.msra.mxu1 %v2708_v0 }
 0x43d   :  { %3618 = vmatprep.mubr.f32.mxu1 %v4509_v18  ;;  %3552 = vmatprep.subr.mxu0 %v2583_v62  ;;  %v2575_v18 = vld [vmem:[#allocation15 + $0x210] sm:$0xff] }
 0x43e   :  { %3600 = vmatprep.subr.mxu1 %v2707_v1  ;;  %3553 = vmatpush3.msra.mxu0 %v2583_v62 }
 0x43f   :  { %3601 = vmatpush3.msra.mxu1 %v2707_v1  ;;  %3496 = vmatmul.mubr.f32.gmra.mxu0 %v4557_v32 }
 0x440   :  { %3554 = vmatprep.subr.mxu0 %v2582_v2  ;;  %3602 = vmatprep.subr.mxu1 %v2706_v3 }
 0x441   :  { %3555 = vmatpush3.msra.mxu0 %v2582_v2  ;;  %3574 = vmatprep.mubr.f32.mxu0 %v4485_v57  ;;  %v2701_v57 = vld [vmem:[#allocation15 + $0x290] sm:$0xff] }
 0x442   :  { %3603 = vmatpush3.msra.mxu1 %v2706_v3  ;;  %3556 = vmatprep.subr.mxu0 %v2581_v4 }
 0x443   :  { %3604 = vmatprep.subr.mxu1 %v2705_v5  ;;  %3557 = vmatpush3.msra.mxu0 %v2581_v4 }
 0x444   :  { %3605 = vmatpush3.msra.mxu1 %v2705_v5  ;;  %3558 = vmatprep.subr.mxu0 %v2580_v10 }
 0x445   :  { %3606 = vmatprep.subr.mxu1 %v2704_v6  ;;  %3559 = vmatpush3.msra.mxu0 %v2580_v10 }
 0x446   :  { %3607 = vmatpush3.msra.mxu1 %v2704_v6  ;;  %3560 = vmatprep.subr.mxu0 %v2579_v7 }
 0x447   :  { %3608 = vmatprep.subr.mxu1 %v2703_v8  ;;  %3561 = vmatpush3.msra.mxu0 %v2579_v7 }
 0x448   :  { %3609 = vmatpush3.msra.mxu1 %v2703_v8  ;;  %3562 = vmatprep.subr.mxu0 %v2578_v9 }
 0x449   :  { %3610 = vmatprep.subr.mxu1 %v2702_v11  ;;  %3563 = vmatpush3.msra.mxu0 %v2578_v9 }
 0x44a   :  { %3611 = vmatpush3.msra.mxu1 %v2702_v11  ;;  %3564 = vmatprep.subr.mxu0 %v2577_v12 }
 0x44b   :  { %3612 = vmatprep.subr.mxu1 %v2701_v57  ;;  %3565 = vmatpush3.msra.mxu0 %v2577_v12 }
 0x44c   :  { %3613 = vmatpush3.msra.mxu1 %v2701_v57  ;;  %3566 = vmatprep.subr.mxu0 %v2576_v14 }
 0x44d   :  { %3614 = vmatprep.subr.mxu1 %v2700_v16  ;;  %3567 = vmatpush3.msra.mxu0 %v2576_v14 }
 0x44e   :  { %3615 = vmatpush3.msra.mxu1 %v2700_v16  ;;  %3568 = vmatprep.subr.mxu0 %v2575_v18 }
 0x44f   :  { %3616 = vmatprep.subr.mxu1 %v2699_v19  ;;  %3569 = vmatpush3.msra.mxu0 %v2575_v18 }
 0x450   :  { %3617 = vmatpush3.msra.mxu1 %v2699_v19  ;;  %3570 = vmatprep.subr.mxu0 %v2574_v46 }
 0x451   :  { %3619 = vmatmul.mubr.f32.vlgmr.msra.gmra.mxu1 %v4519_v24  ;;  %3674 = vmatprep.subr.mxu1 %v2840_v13  ;;  %v2837_v24 = vld [vmem:[#allocation15 + $0x360] sm:$0xff] }
 0x452   :  { %3571 = vmatpush3.msra.mxu0 %v2574_v46  ;;  %3621 = vmatprep.mubr.f32.mxu1 %v4525_v27  ;;  %v2697_v27 = vld [vmem:[#allocation5 + $0x54] sm:$0xff] }
 0x453   :  { %3690 = vmatpush3.msra.mxu1 %v2840_v13  ;;  %3572 = vmatprep.subr.mxu0 %v2573_v20 }
 0x454   :  { %3675 = vmatprep.subr.mxu1 %v2839_v21  ;;  %3573 = vmatpush3.msra.mxu0 %v2573_v20 }
 0x455   :  { %3691 = vmatpush3.msra.mxu1 %v2839_v21  ;;  %3575 = vmatmul.mubr.f32.vlgmr.msra.gmra.mxu0 %v4491_v63 }
 0x456   :  { %3622 = vmatmul.mubr.f32.gmra.mxu1 %v4528_v31  ;;  %3630 = vmatprep.subr.mxu0 %v2840_v13  ;;  %v2831_v31 = vld [vmem:[#allocation15 + $0x330] sm:$0xff] }
 0x457   :  { %3676 = vmatprep.subr.mxu1 %v2838_v25  ;;  %3577 = vmatprep.mubr.f32.mxu0 %v4497_v61 }
 0x458   :  { %3624 = vmatprep.mubr.f32.mxu1 %v4531_v33  ;;  %3631 = vmatpush3.msra.mxu0 %v2840_v13  ;;  %v2830_v33 = vld [vmem:[#allocation15 + $0x328] sm:$0xff] }
 0x459   :  { %3692 = vmatpush3.msra.mxu1 %v2838_v25  ;;  %3632 = vmatprep.subr.mxu0 %v2839_v21 }
 0x45a   :  { %3677 = vmatprep.subr.mxu1 %v2837_v24  ;;  %3633 = vmatpush3.msra.mxu0 %v2839_v21 }
 0x45b   :  { %3693 = vmatpush3.msra.mxu1 %v2837_v24  ;;  %3578 = vmatmul.mubr.f32.gmra.mxu0 %v4507_v17 }
 0x45c   :  { %3625 = vmatmul.mubr.f32.gmra.mxu1 %v4537_v38  ;;  %3634 = vmatprep.subr.mxu0 %v2838_v25 }
 0x45d   :  { %3678 = vmatprep.subr.mxu1 %v2836_v26  ;;  %3580 = vmatprep.mubr.f32.mxu0 %v4515_v22 }
 0x45e   :  { %3635 = vmatpush3.msra.mxu0 %v2838_v25  ;;  %3694 = vmatpush3.msra.mxu1 %v2836_v26 }
 0x45f   :  { %3636 = vmatprep.subr.mxu0 %v2837_v24  ;;  %3679 = vmatprep.subr.mxu1 %v2835_v15 }
 0x460   :  { %3627 = vmatprep.mubr.f32.mxu1 %v4551_v60  ;;  %3637 = vmatpush3.msra.mxu0 %v2837_v24 }
 0x461   :  { %3695 = vmatpush3.msra.mxu1 %v2835_v15  ;;  %3581 = vmatmul.mubr.f32.gmra.mxu0 %v4517_v23 }
 0x462   :  { %3628 = vmatmul.mubr.f32.gmra.mxu1 %v2697_v27  ;;  %3638 = vmatprep.subr.mxu0 %v2836_v26 }
 0x463   :  { %3680 = vmatprep.subr.mxu1 %v2834_v28  ;;  %3639 = vmatpush3.msra.mxu0 %v2836_v26 }
 0x464   :  { %3696 = vmatpush3.msra.mxu1 %v2834_v28  ;;  %3668 = vmatprep.mubr.f32.mxu1 %v4517_v23  ;;  %v2829_v23 = vld [vmem:[#allocation15 + $0x320] sm:$0xff] }
 0x465   :  { %3640 = vmatprep.subr.mxu0 %v2835_v15  ;;  %3681 = vmatprep.subr.mxu1 %v2833_v29 }
 0x466   :  { %3583 = vmatprep.mubr.f32.mxu0 %v4557_v32  ;;  %3641 = vmatpush3.msra.mxu0 %v2835_v15 }
 0x467   :  { %3697 = vmatpush3.msra.mxu1 %v2833_v29  ;;  %3584 = vmatmul.mubr.f32.gmra.mxu0 %v4557_v32 }
 0x468   :  { %3642 = vmatprep.subr.mxu0 %v2834_v28  ;;  %3682 = vmatprep.subr.mxu1 %v2832_v30 }
 0x469   :  { %3643 = vmatpush3.msra.mxu0 %v2834_v28  ;;  %3698 = vmatpush3.msra.mxu1 %v2832_v30 }
 0x46a   :  { %3662 = vmatprep.mubr.f32.mxu0 %v4491_v63  ;;  %3644 = vmatprep.subr.mxu0 %v2833_v29  ;;  %v2826_v63 = vld [vmem:[#allocation15 + $0x308] sm:$0xff] }
 0x46b   :  { %3683 = vmatprep.subr.mxu1 %v2831_v31  ;;  %3645 = vmatpush3.msra.mxu0 %v2833_v29 }
 0x46c   :  { %3699 = vmatpush3.msra.mxu1 %v2831_v31  ;;  %3646 = vmatprep.subr.mxu0 %v2832_v30 }
 0x46d   :  { %3684 = vmatprep.subr.mxu1 %v2830_v33  ;;  %3647 = vmatpush3.msra.mxu0 %v2832_v30 }
 0x46e   :  { %3700 = vmatpush3.msra.mxu1 %v2830_v33  ;;  %3648 = vmatprep.subr.mxu0 %v2831_v31 }
 0x46f   :  { %3685 = vmatprep.subr.mxu1 %v2829_v23  ;;  %3649 = vmatpush3.msra.mxu0 %v2831_v31 }
 0x470   :  { %3701 = vmatpush3.msra.mxu1 %v2829_v23  ;;  %3650 = vmatprep.subr.mxu0 %v2830_v33 }
 0x471   :  { %3686 = vmatprep.subr.mxu1 %v2828_v34  ;;  %3651 = vmatpush3.msra.mxu0 %v2830_v33 }
 0x472   :  { %3702 = vmatpush3.msra.mxu1 %v2828_v34  ;;  %3652 = vmatprep.subr.mxu0 %v2829_v23 }
 0x473   :  { %3687 = vmatprep.subr.mxu1 %v2827_v35  ;;  %3653 = vmatpush3.msra.mxu0 %v2829_v23  ;;  %v2973_v23 = vld [vmem:[#allocation17] ss:$0 sm:$0xff] }
 0x474   :  { %3703 = vmatpush3.msra.mxu1 %v2827_v35  ;;  %3654 = vmatprep.subr.mxu0 %v2828_v34 }
 0x475   :  { %3688 = vmatprep.subr.mxu1 %v2826_v63  ;;  %3655 = vmatpush3.msra.mxu0 %v2828_v34 }
 0x476   :  { %3704 = vmatpush3.msra.mxu1 %v2826_v63  ;;  %3656 = vmatprep.subr.mxu0 %v2827_v35 }
 0x477   :  { %3689 = vmatprep.subr.mxu1 %v2825_v36  ;;  %3657 = vmatpush3.msra.mxu0 %v2827_v35 }
 0x478   :  { %3705 = vmatpush3.msra.mxu1 %v2825_v36  ;;  %3658 = vmatprep.subr.mxu0 %v2826_v63 }
 0x479   :  { %3669 = vmatmul.mubr.f32.vlgmr.msra.gmra.mxu1 %v4557_v32  ;;  %3659 = vmatpush3.msra.mxu0 %v2826_v63 }
 0x47a   :  { %3660 = vmatprep.subr.mxu0 %v2825_v36  ;;  %3671 = vmatprep.mubr.f32.mxu1 %v4557_v32 }
 0x47b   :  { %3661 = vmatpush3.msra.mxu0 %v2825_v36 }
 0x47c   :  { %3663 = vmatmul.mubr.f32.vlgmr.msra.gmra.mxu0 %v4497_v61 }
 0x47d   :  { %3665 = vmatprep.mubr.f32.mxu0 %v4507_v17  ;;  %3672 = vmatmul.mubr.f32.gmra.mxu1 %v4557_v32 }
 0x480   :  { %3666 = vmatmul.mubr.f32.gmra.mxu0 %v4515_v22 }
 0x4be   :  { %v3444_v37 = vpop.f32.mrf.mxu1 }
 0x4c0   :  { %v2279_v38 = vpop.f32.mrf.mxu1 }
 0x4c7   :  { %v3447_v50 = vpop.f32.mrf.mxu1 }
 0x4c9   :  { %v2288_v39 = vpop.f32.mrf.mxu1 }
 0x4ca   :  { %v3400_v41 = vpop.f32.mrf.mxu0 }
 0x4cc   :  { %v2180_v43 = vpop.f32.mrf.mxu0 }
 0x4cd   :  { %v2280_v44 = vadd.f32 %v2279_v38, %v2180_v43 }
 0x4d2   :  { %v3403_v45 = vpop.f32.mrf.mxu0 }
 0x4d3   :  { %v3450_v48 = vpop.f32.mrf.mxu1 }
 0x4d4   :  { %v2189_v49 = vpop.f32.mrf.mxu0 }
 0x4d5   :  { %v2296_v51 = vpop.f32.mrf.mxu1 }
 0x4da   :  { %v3406_v42 = vpop.f32.mrf.mxu0 }
 0x4dc   :  { %v3453_v52 = vpop.f32.mrf.mxu1  ;;  %v2197_v61 = vpop.f32.mrf.mxu0 }
 0x4dd   :  { %v2297_v53 = vadd.f32 %v2296_v51, %v2197_v61 }
 0x4de   :  { %v2305_v17 = vpop.f32.mrf.mxu1 }
 0x4e0   :  { %v3409_v54 = vpop.f32.mrf.mxu0 }
 0x4e2   :  { %v2206_v47 = vpop.f32.mrf.mxu0 }
 0x4e9   :  { %v3532_v55 = vpop.f32.mrf.mxu1 }
 0x4eb   :  { %v2529_v22 = vpop.f32.mrf.mxu1 }
 0x4ed   :  { %v3488_v56 = vpop.f32.mrf.mxu0 }
 0x4ee   :  { %v3535_v58 = vpop.f32.mrf.mxu1 }
 0x4ef   :  { %v2403_v59 = vpop.f32.mrf.mxu0 }
 0x4f0   :  { %v2436_v60 = vadd.f32 %v2403_v59, %v2280_v44  ;;  %v2538_v40 = vpop.f32.mrf.mxu1 }
 0x4f2   :  { %v2562_v0 = vadd.f32 %v2529_v22, %v2436_v60 }
 0x4f3   :  { %v3491_v62 = vpop.f32.mrf.mxu0 }
 0x4f4   :  { %v3538_v1 = vpop.f32.mrf.mxu1 }
 0x4f5   :  { %v2412_v2 = vpop.f32.mrf.mxu0 }
 0x4f6   :  { %v2546_v3 = vpop.f32.mrf.mxu1 }
 0x4f9   :  { %v3494_v32 = vpop.f32.mrf.mxu0 }
 0x4fa   :  { %v3541_v4 = vpop.f32.mrf.mxu1 }
 0x4fb   :  { %v2420_v10 = vpop.f32.mrf.mxu0 }
 0x4fc   :  { %v2555_v5 = vpop.f32.mrf.mxu1  ;;  %v2437_v15 = vadd.f32 %v2420_v10, %v2297_v53 }
 0x4fe   :  { %v2563_v27 = vadd.f32 %v2546_v3, %v2437_v15 }
 0x4ff   :  { %v3497_v6 = vpop.f32.mrf.mxu0 }
 0x501   :  { %v2429_v7 = vpop.f32.mrf.mxu0 }
 0x511   :  { %v3620_v8 = vpop.f32.mrf.mxu1 }
 0x513   :  { %v2781_v9 = vpop.f32.mrf.mxu1 }
 0x515   :  { %v3576_v11 = vpop.f32.mrf.mxu0 }
 0x516   :  { %v3623_v12 = vpop.f32.mrf.mxu1 }
 0x517   :  { %v2655_v57 = vpop.f32.mrf.mxu0 }
 0x518   :  { %v2790_v14 = vpop.f32.mrf.mxu1  ;;  %v2688_v29 = vadd.f32 %v2655_v57, %v2562_v0 }
 0x51a   :  { %v2814_v63 = vadd.f32 %v2781_v9, %v2688_v29 }
 0x51b   :  { %v3579_v16 = vpop.f32.mrf.mxu0 }
 0x51c   :  { %v3626_v18 = vpop.f32.mrf.mxu1 }
 0x51d   :  { %v2664_v19 = vpop.f32.mrf.mxu0 }
 0x51e   :  { %v2798_v46 = vpop.f32.mrf.mxu1 }
 0x521   :  { %v3582_v13 = vpop.f32.mrf.mxu0 }
 0x522   :  { %v3629_v20 = vpop.f32.mrf.mxu1 }
 0x523   :  { %v2672_v25 = vpop.f32.mrf.mxu0 }
 0x524   :  { %v2807_v21 = vpop.f32.mrf.mxu1  ;;  %v2689_v28 = vadd.f32 %v2672_v25, %v2563_v27 }
 0x526   :  { %v2815_v31 = vadd.f32 %v2798_v46, %v2689_v28 }
 0x527   :  { %v3585_v24 = vpop.f32.mrf.mxu0 }
 0x529   :  { %v2681_v26 = vpop.f32.mrf.mxu0 }
 0x539   :  { %v3670_v30 = vpop.f32.mrf.mxu1 }
 0x53b   :  { %v2924_v33 = vpop.f32.mrf.mxu1 }
 0x53c   :  { %v2941_v34 = vadd.f32 %v2924_v33, %v2815_v31  ;;  %v3664_v35 = vpop.f32.mrf.mxu0 }
 0x53d   :  { %v3673_v36 = vpop.f32.mrf.mxu1 }
 0x53e   :  { %v2950_v37 = vadd.f32 %v2973_v23, %v2941_v34  ;;  %v2907_v38 = vpop.f32.mrf.mxu0 }
 0x53f   :  { %v2940_v50 = vadd.f32 %v2907_v38, %v2814_v63  ;;  %v2933_v39 = vpop.f32.mrf.mxu1 }
 0x540   :  { %2952 = vst [vmem:[#allocation18] sm:$0x2] %v2950_v37  ;;  %v3667_v41 = vpop.f32.mrf.mxu0 }
 0x541   :  { %v2949_v43 = vadd.f32 %v2973_v23, %v2940_v50 }
 0x542   :  { %v2916_v44 = vpop.f32.mrf.mxu0 }
 0x543   :  { %2951 = vst [vmem:[#allocation18 - $0x1] sm:$0x2] %v2949_v43 }
 0x544   :  { %3880 = shalt.err (!%p3877_p11)
}
 0x545   :  { %2962 = dma.vmem_to_hbm [thread:$0]  %s2960_s27, 32, %s4596_s11, [#allocation8]  }
 0x546   :  { %3897 = dma.done.wait [#allocation8], 32  }
 0x547   :  { %3898 = vsyncadd [#allocation8], 4294967264 }
 0x548   :  { %2966 = vsyncpa [#allocation7], 1 }
 0x549   :  { %2967 = vsyncpa [#allocation10], 1 }
 0x54a   :  { %2968 = vsyncpa [#allocation13], 1 }
 0x54b   :  { %2969 = vsyncpa [#allocation16], 1 }
 0x54c   :  { %2970 = vsyncpa [#allocation8], 1 }

</bundles_post_ra>
